<compile_context>
chip_gen: v7x
topology: tpu7x:2x2x1
jax: 0.10.0
libtpu: 0.0.40
codegen_flags: <defaults>
</compile_context>

<pallas_src>
import math

import jax
import jax.numpy as jnp
from jax.experimental import pallas as pl
from jax.experimental.pallas import tpu as pltpu


# ----------------------- host-side weight fusion/packing ----------------------

def _fuse3(params, name):
    """3x3 separable conv -> fused (Co, 9*Ci) matrix; column = t*Ci + ci."""
    dw, pw = params[name]                              # (9, Ci, 1), (Co, Ci, 1)
    KK, Ci, _ = dw.shape
    w = pw[:, None, :, 0] * dw[None, :, :, 0]          # (Co, 9, Ci)
    return w.reshape(pw.shape[0], KK * Ci)


def _fuse1_as3(params, name):
    """1x1 separable conv expressed on the 3x3 tap stack (center tap index 4)."""
    dw, pw = params[name]                              # (1, Ci, 1), (Co, Ci, 1)
    Ci, Co = dw.shape[1], pw.shape[0]
    w = jnp.zeros((Co, 9, Ci), jnp.float32)
    w = w.at[:, 4, :].set(pw[:, :, 0] * dw[0, :, 0])
    return w.reshape(Co, 9 * Ci)


def pack_weights(params):
    """Fold dw into pw, stack branches sharing input taps, pack into one slab."""
    blocks = (
        # consumes taps(x): rows = [cell1_conv | easy]
        ("x", jnp.concatenate([_fuse3(params, "cell1_conv"),
                               _fuse1_as3(params, "easy")], axis=0)),
        # consumes taps(easy): rows = [cell3|cell4|cell5_0|cell6_0|cell7_0|res1|c8_1]
        ("easy", jnp.concatenate([_fuse3(params, "cell3"),
                                  _fuse3(params, "cell4"),
                                  _fuse3(params, "cell5_0"),
                                  _fuse3(params, "cell6_0"),
                                  _fuse3(params, "cell7_0"),
                                  _fuse1_as3(params, "cell8_residual1"),
                                  _fuse3(params, "cell8_1")], axis=0)),
        ("c5",  _fuse3(params, "cell5_1")),
        ("c6",  _fuse3(params, "cell6_1")),
        ("c7a", _fuse3(params, "cell7_1")),
        ("c7b", _fuse3(params, "cell7_2")),
        # consumes taps(cat1): rows = [res2 | c8_2]  -> output IS cat2
        ("cat1", jnp.concatenate([_fuse1_as3(params, "cell8_residual2"),
                                  _fuse3(params, "cell8_2")], axis=0)),
        # consumes taps(cat2): rows = [res3 | c8_3]  -> output IS final cell8
        ("cat2", jnp.concatenate([_fuse1_as3(params, "cell8_residual3"),
                                  _fuse3(params, "cell8_3")], axis=0)),
    )
    kmax = max(int(b.shape[1]) for _, b in blocks)
    meta, rows, slabs = {}, 0, []
    for name, b in blocks:
        r, c = int(b.shape[0]), int(b.shape[1])
        meta[name] = (rows, r, c)                      # static ints
        slabs.append(jnp.pad(b, ((0, 0), (0, kmax - c))))
        rows += r
    w_all = jnp.concatenate(slabs, axis=0).astype(jnp.float32)   # (28, 36)
    return w_all, meta


# ------------------------- fused Pallas forward pass --------------------------

def make_forward(params, in_channels, out_channels, N, H, W):
    """Build the fused forward: x (N,Cin,H,W) f32 -> y (N,C_out,H,W) f32."""
    w_all, meta = pack_weights(params)                 # packed once, outside jit
    Cin = in_channels
    P = H * W
    NP = N * P                                         # batch folded onto lanes
    c_cell = out_channels // 8
    c_half = out_channels // 2 // 8
    C_out = 7 * c_cell + 2 * c_half
    Rw, Kw = int(w_all.shape[0]), int(w_all.shape[1])
    mask_cis = sorted({Cin, c_cell, 2 * c_half})

    def kernel(x_ref, w_ref, o_ref):
        # (Cin, N*P): channels on sublanes, batch stacked along lanes.
        xv = jnp.concatenate([x_ref[n] for n in range(N)], axis=1)

        # Replicate-padding edge masks, built once and pre-broadcast per Ci.
        pos = jax.lax.broadcasted_iota(jnp.int32, (1, NP), 1)
        col = pos % W
        rp = pos % P                                   # position within image
        base = (rp < W, rp >= P - W, col == 0, col == W - 1)
        masks = {ci: tuple(jnp.broadcast_to(m, (ci, NP)) for m in base)
                 for ci in mask_cis}

        def taps3x3(v):                                # 9 edge-clamped shifts of v
            top, bot, left, right = masks[v.shape[0]]

            def sc(u, dj):                             # u[h, clamp(w + dj)]
                if dj == 0:
                    return u
                if dj > 0:
                    return jnp.where(right, u, pltpu.roll(u, NP - dj, 1))
                return jnp.where(left, u, pltpu.roll(u, -dj, 1))

            def sr(u, di):                             # u[clamp(h + di), w]
                if di == 0:
                    return u
                if di > 0:
                    return jnp.where(bot, u, pltpu.roll(u, NP - di * W, 1))
                return jnp.where(top, u, pltpu.roll(u, -di * W, 1))

            cols = [sc(v, dj) for dj in (-1, 0, 1)]
            return [sr(c, di) for di in (-1, 0, 1) for c in cols]

        def conv(name, v):                             # fused sep-conv block on MXU
            off, r, c = meta[name]
            w = w_ref[off:off + r, 0:c]                # (Co_stack, 9*Ci), static slice
            d = jnp.concatenate(taps3x3(v), axis=0)    # (9*Ci, N*P), row = t*Ci+ci
            return jnp.dot(w, d, preferred_element_type=jnp.float32)

        def store(ch, val):                            # lane-dense per-batch store
            co = val.shape[0]
            for n in range(N):
                o_ref[n, ch:ch + co, :] = val[:, n * P:(n + 1) * P].astype(o_ref.dtype)

        # ---- inception wiring (AvgPool2d result is dead -> skipped) ----
        out1 = conv("x", xv)                           # rows: [cell1 | easy]
        store(0, out1)                                 # channels [0, 2*c_cell)
        easy = out1[c_cell:2 * c_cell]

        oute = conv("easy", easy)                      # [c3|c4|c5_0|c6_0|c7_0|cat1]
        store(2 * c_cell, oute[0:2 * c_cell])          # cell3, cell4
        c5a = oute[2 * c_cell:3 * c_cell]
        c6a = oute[3 * c_cell:4 * c_cell]
        c7a = oute[4 * c_cell:5 * c_cell]
        cat1 = oute[5 * c_cell:5 * c_cell + 2 * c_half]

        store(4 * c_cell, conv("c5", c5a))             # cell5
        store(5 * c_cell, conv("c6", c6a))             # cell6
        store(6 * c_cell, conv("c7b", conv("c7a", c7a)))   # cell7
        cat2 = conv("cat1", cat1)                      # [res2 | c8_2]
        store(7 * c_cell, conv("cat2", cat2))          # [res3 | c8_3] = cell8

    flops = 2 * NP * sum(r * c for (_, r, c) in meta.values())
    bytes_accessed = 4 * (N * Cin * P + Rw * Kw + N * C_out * P)

    fused_call = pl.pallas_call(
        kernel,
        out_shape=jax.ShapeDtypeStruct((N, C_out, P), jnp.float32),
        grid=(1,),
        in_specs=[pl.BlockSpec((N, Cin, P), lambda i: (0, 0, 0)),
                  pl.BlockSpec((Rw, Kw), lambda i: (0, 0))],
        out_specs=pl.BlockSpec((N, C_out, P), lambda i: (0, 0, 0)),
        compiler_params=pltpu.CompilerParams(dimension_semantics=("arbitrary",)),
        cost_estimate=pl.CostEstimate(flops=flops, transcendentals=0,
                                      bytes_accessed=bytes_accessed),
    )

    def forward(x):
        y = fused_call(x.reshape(N, Cin, P), w_all)
        return y.reshape(N, C_out, H, W)

    return jax.jit(forward)


# --------------------------- pure-JAX reference check --------------------------

def _sepconv_ref(x, dw, pw):
    """Reference SeparableConv2d: x (N,Cin,H,W); dw (K*K,Cin,1); pw (Cout,Cin,1)."""
    KK, cin, _ = dw.shape
    k = int(round(math.sqrt(KK)))
    p = k // 2
    xp = jnp.pad(x, ((0, 0), (0, 0), (p, p), (p, p)), mode="edge")
    w_dw = dw[:, :, 0].T.reshape(cin, k, k)[:, None, :, :]   # (Cin,1,K,K) OIHW
    d = jax.lax.conv_general_dilated(
        xp, w_dw, (1, 1), "VALID",
        dimension_numbers=("NCHW", "OIHW", "NCHW"),
        feature_group_count=cin, precision=jax.lax.Precision.HIGHEST)
    return jnp.einsum("nchw,oc->nohw", d, pw[:, :, 0],
                      precision=jax.lax.Precision.HIGHEST)


def _forward_ref(x, params):
    sc = lambda v, name: _sepconv_ref(v, *params[name])
    cell1 = sc(x, "cell1_conv")
    easy = sc(x, "easy")
    cell3 = sc(easy, "cell3")
    cell4 = sc(easy, "cell4")
    cell5 = sc(sc(easy, "cell5_0"), "cell5_1")
    cell6 = sc(sc(easy, "cell6_0"), "cell6_1")
    cell7 = sc(sc(sc(easy, "cell7_0"), "cell7_1"), "cell7_2")
    cat1 = jnp.concatenate([sc(easy, "cell8_residual1"), sc(easy, "cell8_1")], axis=1)
    cat2 = jnp.concatenate([sc(cat1, "cell8_residual2"), sc(cat1, "cell8_2")], axis=1)
    cell8 = jnp.concatenate([sc(cat2, "cell8_residual3"), sc(cat2, "cell8_3")], axis=1)
    return jnp.concatenate([cell1, easy, cell3, cell4, cell5, cell6, cell7, cell8],
                           axis=1)


# -------------------------------- parameter init -------------------------------

def init_params(key, in_channels, out_channels):
    """Weights: dw (K*K, Cin, 1) with tap t = kh*K + kw; pw (Cout, Cin, 1).
    Init matches PyTorch Conv2d default U(-1/sqrt(fan_in), 1/sqrt(fan_in))."""
    cell_num = 8
    c_cell = out_channels // cell_num
    c_half = out_channels // 2 // cell_num
    spec = (
        ("cell1_conv", in_channels, c_cell, 3),
        ("easy", in_channels, c_cell, 1),
        ("cell3", c_cell, c_cell, 3),
        ("cell4", c_cell, c_cell, 3),
        ("cell5_0", c_cell, c_cell, 3),
        ("cell5_1", c_cell, c_cell, 3),
        ("cell6_0", c_cell, c_cell, 3),
        ("cell6_1", c_cell, c_cell, 3),
        ("cell7_0", c_cell, c_cell, 3),
        ("cell7_1", c_cell, c_cell, 3),
        ("cell7_2", c_cell, c_cell, 3),
        ("cell8_1", c_cell, c_half, 3),
        ("cell8_residual1", c_cell, c_half, 1),
        ("cell8_2", 2 * c_half, c_half, 3),
        ("cell8_residual2", 2 * c_half, c_half, 1),
        ("cell8_3", 2 * c_half, c_half, 3),
        ("cell8_residual3", 2 * c_half, c_half, 1),
    )
    params = {}
    keys = jax.random.split(key, len(spec))
    for sk, (name, cin, co, k) in zip(keys, spec):
        kd, kp = jax.random.split(sk)
        b_dw = 1.0 / k                        # depthwise fan_in = 1 * k * k
        b_pw = 1.0 / math.sqrt(cin)           # pointwise fan_in = cin
        dw = jax.random.uniform(kd, (k * k, cin, 1), jnp.float32,
                                minval=-b_dw, maxval=b_dw)
        pw = jax.random.uniform(kp, (co, cin, 1), jnp.float32,
                                minval=-b_pw, maxval=b_pw)
        params[name] = (dw, pw)
    return params


# ------------------------------------- main -------------------------------------

if __name__ == "__main__":
    key = jax.random.PRNGKey(0)
    k_x, k_p = jax.random.split(key)
    N, in_channels, H, W = 2, 4, 16, 16
    out_channels = 16

    # NCHW input, same layout as the torch module.
    x = jax.random.normal(k_x, (N, in_channels, H, W), dtype=jnp.float32)
    params = init_params(k_p, in_channels, out_channels)

    fwd = make_forward(params, in_channels, out_channels, N, H, W)
    y = jax.block_until_ready(fwd(x))
    assert y.shape == (N, out_channels, H, W), y.shape

    # Cross-check against a pure-JAX (lax.conv) reference of the same math.
    # Tolerance absorbs possible multi-pass MXU fp32 rounding across the chained
    # convs; any wiring / padding / ordering bug would produce O(1) errors.
    y_ref = jax.block_until_ready(jax.jit(_forward_ref)(x, params))
    max_err = float(jnp.max(jnp.abs(y - y_ref)))
    assert max_err < 1e-2, f"max abs err {max_err}"

    print("KERNEL_OK")
</pallas_src>

<mosaic_0001>
module attributes {stable_mosaic.version = 11 : i64} {
  func.func @kernel(%arg0: i32, %arg1: memref<2x4x256xf32, #tpu.memory_space<vmem>>, %arg2: memref<28x36xf32, #tpu.memory_space<vmem>>, %arg3: memref<2x16x256xf32, #tpu.memory_space<vmem>>) attributes {dimension_semantics = [#tpu.dimension_semantics<arbitrary>], iteration_bounds = array<i64: 1>, scalar_prefetch = 0 : i64, scratch_operands = 0 : i64, tpu.core_type = #tpu.core_type<tc>, window_params = [{pipeline_mode = #tpu.pipeline_mode<synchronous>, transform_indices = @transform_0, window_bounds = array<i64: 2, 4, 256>}, {pipeline_mode = #tpu.pipeline_mode<synchronous>, transform_indices = @transform_1, window_bounds = array<i64: 28, 36>}, {pipeline_mode = #tpu.pipeline_mode<synchronous>, transform_indices = @transform_2, window_bounds = array<i64: 2, 16, 256>}]} {
    %c0 = arith.constant 0 : index
    %c0_0 = arith.constant 0 : index
    %c0_1 = arith.constant 0 : index
    %0 = vector.load %arg1[%c0, %c0_0, %c0_1] : memref<2x4x256xf32, #tpu.memory_space<vmem>>, vector<1x4x256xf32>
    %1 = vector.shape_cast %0 : vector<1x4x256xf32> to vector<4x256xf32>
    %c1 = arith.constant 1 : index
    %c0_2 = arith.constant 0 : index
    %c0_3 = arith.constant 0 : index
    %2 = vector.load %arg1[%c1, %c0_2, %c0_3] : memref<2x4x256xf32, #tpu.memory_space<vmem>>, vector<1x4x256xf32>
    %3 = vector.shape_cast %2 : vector<1x4x256xf32> to vector<4x256xf32>
    %4 = tpu.concatenate %1, %3 in 1 : vector<4x256xf32>, vector<4x256xf32> -> vector<4x512xf32>
    %5 = tpu.iota {dimensions = array<i32: 1>} : vector<1x512xi32>
    %c16_i32 = arith.constant 16 : i32
    %c0_i32 = arith.constant 0 : i32
    %6 = arith.cmpi eq, %c16_i32, %c0_i32 : i32
    %c1_i32 = arith.constant 1 : i32
    %7 = arith.select %6, %c1_i32, %c16_i32 : i32
    %8 = vector.broadcast %7 : i32 to vector<1x512xi32>
    %9 = arith.remsi %5, %8 : vector<1x512xi32>
    %c0_i32_4 = arith.constant 0 : i32
    %10 = vector.broadcast %c0_i32_4 : i32 to vector<1x512xi32>
    %11 = arith.cmpi ne, %9, %10 : vector<1x512xi32>
    %c0_i32_5 = arith.constant 0 : i32
    %12 = vector.broadcast %c0_i32_5 : i32 to vector<1x512xi32>
    %13 = arith.cmpi slt, %9, %12 : vector<1x512xi32>
    %c0_i32_6 = arith.constant 0 : i32
    %14 = arith.cmpi slt, %7, %c0_i32_6 : i32
    %15 = vector.broadcast %14 : i1 to vector<1x512xi1>
    %16 = vector.broadcast %15 : vector<1x512xi1> to vector<1x512xi1>
    %17 = arith.xori %13, %16 : vector<1x512xi1>
    %18 = arith.andi %17, %11 : vector<1x512xi1>
    %19 = vector.broadcast %7 : i32 to vector<1x512xi32>
    %20 = arith.addi %9, %19 : vector<1x512xi32>
    %21 = arith.select %18, %20, %9 : vector<1x512xi1>, vector<1x512xi32>
    %c256_i32 = arith.constant 256 : i32
    %c0_i32_7 = arith.constant 0 : i32
    %22 = arith.cmpi eq, %c256_i32, %c0_i32_7 : i32
    %c1_i32_8 = arith.constant 1 : i32
    %23 = arith.select %22, %c1_i32_8, %c256_i32 : i32
    %24 = vector.broadcast %23 : i32 to vector<1x512xi32>
    %25 = arith.remsi %5, %24 : vector<1x512xi32>
    %c0_i32_9 = arith.constant 0 : i32
    %26 = vector.broadcast %c0_i32_9 : i32 to vector<1x512xi32>
    %27 = arith.cmpi ne, %25, %26 : vector<1x512xi32>
    %c0_i32_10 = arith.constant 0 : i32
    %28 = vector.broadcast %c0_i32_10 : i32 to vector<1x512xi32>
    %29 = arith.cmpi slt, %25, %28 : vector<1x512xi32>
    %c0_i32_11 = arith.constant 0 : i32
    %30 = arith.cmpi slt, %23, %c0_i32_11 : i32
    %31 = vector.broadcast %30 : i1 to vector<1x512xi1>
    %32 = vector.broadcast %31 : vector<1x512xi1> to vector<1x512xi1>
    %33 = arith.xori %29, %32 : vector<1x512xi1>
    %34 = arith.andi %33, %27 : vector<1x512xi1>
    %35 = vector.broadcast %23 : i32 to vector<1x512xi32>
    %36 = arith.addi %25, %35 : vector<1x512xi32>
    %37 = arith.select %34, %36, %25 : vector<1x512xi1>, vector<1x512xi32>
    %c16_i32_12 = arith.constant 16 : i32
    %38 = vector.broadcast %c16_i32_12 : i32 to vector<1x512xi32>
    %39 = arith.cmpi slt, %37, %38 : vector<1x512xi32>
    %c240_i32 = arith.constant 240 : i32
    %40 = vector.broadcast %c240_i32 : i32 to vector<1x512xi32>
    %41 = arith.cmpi sge, %37, %40 : vector<1x512xi32>
    %c0_i32_13 = arith.constant 0 : i32
    %42 = vector.broadcast %c0_i32_13 : i32 to vector<1x512xi32>
    %43 = arith.cmpi eq, %21, %42 : vector<1x512xi32>
    %c15_i32 = arith.constant 15 : i32
    %44 = vector.broadcast %c15_i32 : i32 to vector<1x512xi32>
    %45 = arith.cmpi eq, %21, %44 : vector<1x512xi32>
    %46 = vector.shape_cast %39 : vector<1x512xi1> to vector<1x512xi1>
    %47 = vector.broadcast %46 : vector<1x512xi1> to vector<2x512xi1>
    %48 = vector.shape_cast %41 : vector<1x512xi1> to vector<1x512xi1>
    %49 = vector.broadcast %48 : vector<1x512xi1> to vector<2x512xi1>
    %50 = vector.shape_cast %43 : vector<1x512xi1> to vector<1x512xi1>
    %51 = vector.broadcast %50 : vector<1x512xi1> to vector<2x512xi1>
    %52 = vector.shape_cast %45 : vector<1x512xi1> to vector<1x512xi1>
    %53 = vector.broadcast %52 : vector<1x512xi1> to vector<2x512xi1>
    %54 = vector.shape_cast %39 : vector<1x512xi1> to vector<1x512xi1>
    %55 = vector.broadcast %54 : vector<1x512xi1> to vector<4x512xi1>
    %56 = vector.shape_cast %41 : vector<1x512xi1> to vector<1x512xi1>
    %57 = vector.broadcast %56 : vector<1x512xi1> to vector<4x512xi1>
    %58 = vector.shape_cast %43 : vector<1x512xi1> to vector<1x512xi1>
    %59 = vector.broadcast %58 : vector<1x512xi1> to vector<4x512xi1>
    %60 = vector.shape_cast %45 : vector<1x512xi1> to vector<1x512xi1>
    %61 = vector.broadcast %60 : vector<1x512xi1> to vector<4x512xi1>
    %c0_14 = arith.constant 0 : index
    %c0_15 = arith.constant 0 : index
    %62 = vector.load %arg2[%c0_14, %c0_15] : memref<28x36xf32, #tpu.memory_space<vmem>>, vector<4x36xf32>
    %c1_i32_16 = arith.constant 1 : i32
    %63 = tpu.dynamic_rotate %4 by %c1_i32_16 dim 1 : vector<4x512xf32>, i32 -> vector<4x512xf32>
    %64 = arith.select %59, %4, %63 : vector<4x512xi1>, vector<4x512xf32>
    %c511_i32 = arith.constant 511 : i32
    %65 = tpu.dynamic_rotate %4 by %c511_i32 dim 1 : vector<4x512xf32>, i32 -> vector<4x512xf32>
    %66 = arith.select %61, %4, %65 : vector<4x512xi1>, vector<4x512xf32>
    %c16_i32_17 = arith.constant 16 : i32
    %67 = tpu.dynamic_rotate %64 by %c16_i32_17 dim 1 : vector<4x512xf32>, i32 -> vector<4x512xf32>
    %68 = arith.select %55, %64, %67 : vector<4x512xi1>, vector<4x512xf32>
    %c16_i32_18 = arith.constant 16 : i32
    %69 = tpu.dynamic_rotate %4 by %c16_i32_18 dim 1 : vector<4x512xf32>, i32 -> vector<4x512xf32>
    %70 = arith.select %55, %4, %69 : vector<4x512xi1>, vector<4x512xf32>
    %c16_i32_19 = arith.constant 16 : i32
    %71 = tpu.dynamic_rotate %66 by %c16_i32_19 dim 1 : vector<4x512xf32>, i32 -> vector<4x512xf32>
    %72 = arith.select %55, %66, %71 : vector<4x512xi1>, vector<4x512xf32>
    %c496_i32 = arith.constant 496 : i32
    %73 = tpu.dynamic_rotate %64 by %c496_i32 dim 1 : vector<4x512xf32>, i32 -> vector<4x512xf32>
    %74 = arith.select %57, %64, %73 : vector<4x512xi1>, vector<4x512xf32>
    %c496_i32_20 = arith.constant 496 : i32
    %75 = tpu.dynamic_rotate %4 by %c496_i32_20 dim 1 : vector<4x512xf32>, i32 -> vector<4x512xf32>
    %76 = arith.select %57, %4, %75 : vector<4x512xi1>, vector<4x512xf32>
    %c496_i32_21 = arith.constant 496 : i32
    %77 = tpu.dynamic_rotate %66 by %c496_i32_21 dim 1 : vector<4x512xf32>, i32 -> vector<4x512xf32>
    %78 = arith.select %57, %66, %77 : vector<4x512xi1>, vector<4x512xf32>
    %79 = tpu.concatenate %68, %70, %72, %64, %4, %66, %74, %76, %78 in 0 : vector<4x512xf32>, vector<4x512xf32>, vector<4x512xf32>, vector<4x512xf32>, vector<4x512xf32>, vector<4x512xf32>, vector<4x512xf32>, vector<4x512xf32>, vector<4x512xf32> -> vector<36x512xf32>
    %cst = arith.constant dense<0.000000e+00> : vector<4x512xf32>
    %80 = tpu.matmul %62, %79, %cst {dimension_numbers = #tpu.dot_dimension_numbers<[1], [0], [0], [1], [0, 0, 1, 1], [], []>} : vector<4x36xf32>, vector<36x512xf32>, vector<4x512xf32> -> vector<4x512xf32>
    %81 = vector.extract_strided_slice %80 {offsets = [0, 0], sizes = [4, 256], strides = [1, 1]} : vector<4x512xf32> to vector<4x256xf32>
    %c0_22 = arith.constant 0 : index
    %c0_23 = arith.constant 0 : index
    %c0_24 = arith.constant 0 : index
    %82 = vector.load %arg3[%c0_22, %c0_23, %c0_24] : memref<2x16x256xf32, #tpu.memory_space<vmem>>, vector<1x4x256xf32>
    %83 = vector.shape_cast %82 : vector<1x4x256xf32> to vector<4x256xf32>
    %84 = vector.shape_cast %81 : vector<4x256xf32> to vector<1x4x256xf32>
    tpu.vector_store %arg3[%c0_22, %c0_23, %c0_24], %84 {strides = array<i32>} : memref<2x16x256xf32, #tpu.memory_space<vmem>>, vector<1x4x256xf32>,
    %85 = vector.extract_strided_slice %80 {offsets = [0, 256], sizes = [4, 256], strides = [1, 1]} : vector<4x512xf32> to vector<4x256xf32>
    %c1_25 = arith.constant 1 : index
    %c0_26 = arith.constant 0 : index
    %c0_27 = arith.constant 0 : index
    %86 = vector.load %arg3[%c1_25, %c0_26, %c0_27] : memref<2x16x256xf32, #tpu.memory_space<vmem>>, vector<1x4x256xf32>
    %87 = vector.shape_cast %86 : vector<1x4x256xf32> to vector<4x256xf32>
    %88 = vector.shape_cast %85 : vector<4x256xf32> to vector<1x4x256xf32>
    tpu.vector_store %arg3[%c1_25, %c0_26, %c0_27], %88 {strides = array<i32>} : memref<2x16x256xf32, #tpu.memory_space<vmem>>, vector<1x4x256xf32>,
    %89 = vector.extract_strided_slice %80 {offsets = [2, 0], sizes = [2, 512], strides = [1, 1]} : vector<4x512xf32> to vector<2x512xf32>
    %c4 = arith.constant 4 : index
    %c0_28 = arith.constant 0 : index
    %90 = vector.load %arg2[%c4, %c0_28] : memref<28x36xf32, #tpu.memory_space<vmem>>, vector<12x18xf32>
    %c1_i32_29 = arith.constant 1 : i32
    %91 = tpu.dynamic_rotate %89 by %c1_i32_29 dim 1 : vector<2x512xf32>, i32 -> vector<2x512xf32>
    %92 = arith.select %51, %89, %91 : vector<2x512xi1>, vector<2x512xf32>
    %c511_i32_30 = arith.constant 511 : i32
    %93 = tpu.dynamic_rotate %89 by %c511_i32_30 dim 1 : vector<2x512xf32>, i32 -> vector<2x512xf32>
    %94 = arith.select %53, %89, %93 : vector<2x512xi1>, vector<2x512xf32>
    %c16_i32_31 = arith.constant 16 : i32
    %95 = tpu.dynamic_rotate %92 by %c16_i32_31 dim 1 : vector<2x512xf32>, i32 -> vector<2x512xf32>
    %96 = arith.select %47, %92, %95 : vector<2x512xi1>, vector<2x512xf32>
    %c16_i32_32 = arith.constant 16 : i32
    %97 = tpu.dynamic_rotate %89 by %c16_i32_32 dim 1 : vector<2x512xf32>, i32 -> vector<2x512xf32>
    %98 = arith.select %47, %89, %97 : vector<2x512xi1>, vector<2x512xf32>
    %c16_i32_33 = arith.constant 16 : i32
    %99 = tpu.dynamic_rotate %94 by %c16_i32_33 dim 1 : vector<2x512xf32>, i32 -> vector<2x512xf32>
    %100 = arith.select %47, %94, %99 : vector<2x512xi1>, vector<2x512xf32>
    %c496_i32_34 = arith.constant 496 : i32
    %101 = tpu.dynamic_rotate %92 by %c496_i32_34 dim 1 : vector<2x512xf32>, i32 -> vector<2x512xf32>
    %102 = arith.select %49, %92, %101 : vector<2x512xi1>, vector<2x512xf32>
    %c496_i32_35 = arith.constant 496 : i32
    %103 = tpu.dynamic_rotate %89 by %c496_i32_35 dim 1 : vector<2x512xf32>, i32 -> vector<2x512xf32>
    %104 = arith.select %49, %89, %103 : vector<2x512xi1>, vector<2x512xf32>
    %c496_i32_36 = arith.constant 496 : i32
    %105 = tpu.dynamic_rotate %94 by %c496_i32_36 dim 1 : vector<2x512xf32>, i32 -> vector<2x512xf32>
    %106 = arith.select %49, %94, %105 : vector<2x512xi1>, vector<2x512xf32>
    %107 = tpu.concatenate %96, %98, %100, %92, %89, %94, %102, %104, %106 in 0 : vector<2x512xf32>, vector<2x512xf32>, vector<2x512xf32>, vector<2x512xf32>, vector<2x512xf32>, vector<2x512xf32>, vector<2x512xf32>, vector<2x512xf32>, vector<2x512xf32> -> vector<18x512xf32>
    %cst_37 = arith.constant dense<0.000000e+00> : vector<12x512xf32>
    %108 = tpu.matmul %90, %107, %cst_37 {dimension_numbers = #tpu.dot_dimension_numbers<[1], [0], [0], [1], [0, 0, 1, 1], [], []>} : vector<12x18xf32>, vector<18x512xf32>, vector<12x512xf32> -> vector<12x512xf32>
    %109 = vector.extract_strided_slice %108 {offsets = [0, 0], sizes = [4, 512], strides = [1, 1]} : vector<12x512xf32> to vector<4x512xf32>
    %110 = vector.extract_strided_slice %109 {offsets = [0, 0], sizes = [4, 256], strides = [1, 1]} : vector<4x512xf32> to vector<4x256xf32>
    %c0_38 = arith.constant 0 : index
    %c4_39 = arith.constant 4 : index
    %c0_40 = arith.constant 0 : index
    %111 = vector.load %arg3[%c0_38, %c4_39, %c0_40] : memref<2x16x256xf32, #tpu.memory_space<vmem>>, vector<1x4x256xf32>
    %112 = vector.shape_cast %111 : vector<1x4x256xf32> to vector<4x256xf32>
    %113 = vector.shape_cast %110 : vector<4x256xf32> to vector<1x4x256xf32>
    tpu.vector_store %arg3[%c0_38, %c4_39, %c0_40], %113 {strides = array<i32>} : memref<2x16x256xf32, #tpu.memory_space<vmem>>, vector<1x4x256xf32>,
    %114 = vector.extract_strided_slice %109 {offsets = [0, 256], sizes = [4, 256], strides = [1, 1]} : vector<4x512xf32> to vector<4x256xf32>
    %c1_41 = arith.constant 1 : index
    %c4_42 = arith.constant 4 : index
    %c0_43 = arith.constant 0 : index
    %115 = vector.load %arg3[%c1_41, %c4_42, %c0_43] : memref<2x16x256xf32, #tpu.memory_space<vmem>>, vector<1x4x256xf32>
    %116 = vector.shape_cast %115 : vector<1x4x256xf32> to vector<4x256xf32>
    %117 = vector.shape_cast %114 : vector<4x256xf32> to vector<1x4x256xf32>
    tpu.vector_store %arg3[%c1_41, %c4_42, %c0_43], %117 {strides = array<i32>} : memref<2x16x256xf32, #tpu.memory_space<vmem>>, vector<1x4x256xf32>,
    %118 = vector.extract_strided_slice %108 {offsets = [4, 0], sizes = [2, 512], strides = [1, 1]} : vector<12x512xf32> to vector<2x512xf32>
    %119 = vector.extract_strided_slice %108 {offsets = [6, 0], sizes = [2, 512], strides = [1, 1]} : vector<12x512xf32> to vector<2x512xf32>
    %120 = vector.extract_strided_slice %108 {offsets = [8, 0], sizes = [2, 512], strides = [1, 1]} : vector<12x512xf32> to vector<2x512xf32>
    %121 = vector.extract_strided_slice %108 {offsets = [10, 0], sizes = [2, 512], strides = [1, 1]} : vector<12x512xf32> to vector<2x512xf32>
    %c16 = arith.constant 16 : index
    %c0_44 = arith.constant 0 : index
    %122 = vector.load %arg2[%c16, %c0_44] : memref<28x36xf32, #tpu.memory_space<vmem>>, vector<2x18xf32>
    %c1_i32_45 = arith.constant 1 : i32
    %123 = tpu.dynamic_rotate %118 by %c1_i32_45 dim 1 : vector<2x512xf32>, i32 -> vector<2x512xf32>
    %124 = arith.select %51, %118, %123 : vector<2x512xi1>, vector<2x512xf32>
    %c511_i32_46 = arith.constant 511 : i32
    %125 = tpu.dynamic_rotate %118 by %c511_i32_46 dim 1 : vector<2x512xf32>, i32 -> vector<2x512xf32>
    %126 = arith.select %53, %118, %125 : vector<2x512xi1>, vector<2x512xf32>
    %c16_i32_47 = arith.constant 16 : i32
    %127 = tpu.dynamic_rotate %124 by %c16_i32_47 dim 1 : vector<2x512xf32>, i32 -> vector<2x512xf32>
    %128 = arith.select %47, %124, %127 : vector<2x512xi1>, vector<2x512xf32>
    %c16_i32_48 = arith.constant 16 : i32
    %129 = tpu.dynamic_rotate %118 by %c16_i32_48 dim 1 : vector<2x512xf32>, i32 -> vector<2x512xf32>
    %130 = arith.select %47, %118, %129 : vector<2x512xi1>, vector<2x512xf32>
    %c16_i32_49 = arith.constant 16 : i32
    %131 = tpu.dynamic_rotate %126 by %c16_i32_49 dim 1 : vector<2x512xf32>, i32 -> vector<2x512xf32>
    %132 = arith.select %47, %126, %131 : vector<2x512xi1>, vector<2x512xf32>
    %c496_i32_50 = arith.constant 496 : i32
    %133 = tpu.dynamic_rotate %124 by %c496_i32_50 dim 1 : vector<2x512xf32>, i32 -> vector<2x512xf32>
    %134 = arith.select %49, %124, %133 : vector<2x512xi1>, vector<2x512xf32>
    %c496_i32_51 = arith.constant 496 : i32
    %135 = tpu.dynamic_rotate %118 by %c496_i32_51 dim 1 : vector<2x512xf32>, i32 -> vector<2x512xf32>
    %136 = arith.select %49, %118, %135 : vector<2x512xi1>, vector<2x512xf32>
    %c496_i32_52 = arith.constant 496 : i32
    %137 = tpu.dynamic_rotate %126 by %c496_i32_52 dim 1 : vector<2x512xf32>, i32 -> vector<2x512xf32>
    %138 = arith.select %49, %126, %137 : vector<2x512xi1>, vector<2x512xf32>
    %139 = tpu.concatenate %128, %130, %132, %124, %118, %126, %134, %136, %138 in 0 : vector<2x512xf32>, vector<2x512xf32>, vector<2x512xf32>, vector<2x512xf32>, vector<2x512xf32>, vector<2x512xf32>, vector<2x512xf32>, vector<2x512xf32>, vector<2x512xf32> -> vector<18x512xf32>
    %cst_53 = arith.constant dense<0.000000e+00> : vector<2x512xf32>
    %140 = tpu.matmul %122, %139, %cst_53 {dimension_numbers = #tpu.dot_dimension_numbers<[1], [0], [0], [1], [0, 0, 1, 1], [], []>} : vector<2x18xf32>, vector<18x512xf32>, vector<2x512xf32> -> vector<2x512xf32>
    %141 = vector.extract_strided_slice %140 {offsets = [0, 0], sizes = [2, 256], strides = [1, 1]} : vector<2x512xf32> to vector<2x256xf32>
    %c0_54 = arith.constant 0 : index
    %c8 = arith.constant 8 : index
    %c0_55 = arith.constant 0 : index
    %142 = vector.load %arg3[%c0_54, %c8, %c0_55] : memref<2x16x256xf32, #tpu.memory_space<vmem>>, vector<1x2x256xf32>
    %143 = vector.shape_cast %142 : vector<1x2x256xf32> to vector<2x256xf32>
    %144 = vector.shape_cast %141 : vector<2x256xf32> to vector<1x2x256xf32>
    tpu.vector_store %arg3[%c0_54, %c8, %c0_55], %144 {strides = array<i32>} : memref<2x16x256xf32, #tpu.memory_space<vmem>>, vector<1x2x256xf32>,
    %145 = vector.extract_strided_slice %140 {offsets = [0, 256], sizes = [2, 256], strides = [1, 1]} : vector<2x512xf32> to vector<2x256xf32>
    %c1_56 = arith.constant 1 : index
    %c8_57 = arith.constant 8 : index
    %c0_58 = arith.constant 0 : index
    %146 = vector.load %arg3[%c1_56, %c8_57, %c0_58] : memref<2x16x256xf32, #tpu.memory_space<vmem>>, vector<1x2x256xf32>
    %147 = vector.shape_cast %146 : vector<1x2x256xf32> to vector<2x256xf32>
    %148 = vector.shape_cast %145 : vector<2x256xf32> to vector<1x2x256xf32>
    tpu.vector_store %arg3[%c1_56, %c8_57, %c0_58], %148 {strides = array<i32>} : memref<2x16x256xf32, #tpu.memory_space<vmem>>, vector<1x2x256xf32>,
    %c18 = arith.constant 18 : index
    %c0_59 = arith.constant 0 : index
    %149 = vector.load %arg2[%c18, %c0_59] : memref<28x36xf32, #tpu.memory_space<vmem>>, vector<2x18xf32>
    %c1_i32_60 = arith.constant 1 : i32
    %150 = tpu.dynamic_rotate %119 by %c1_i32_60 dim 1 : vector<2x512xf32>, i32 -> vector<2x512xf32>
    %151 = arith.select %51, %119, %150 : vector<2x512xi1>, vector<2x512xf32>
    %c511_i32_61 = arith.constant 511 : i32
    %152 = tpu.dynamic_rotate %119 by %c511_i32_61 dim 1 : vector<2x512xf32>, i32 -> vector<2x512xf32>
    %153 = arith.select %53, %119, %152 : vector<2x512xi1>, vector<2x512xf32>
    %c16_i32_62 = arith.constant 16 : i32
    %154 = tpu.dynamic_rotate %151 by %c16_i32_62 dim 1 : vector<2x512xf32>, i32 -> vector<2x512xf32>
    %155 = arith.select %47, %151, %154 : vector<2x512xi1>, vector<2x512xf32>
    %c16_i32_63 = arith.constant 16 : i32
    %156 = tpu.dynamic_rotate %119 by %c16_i32_63 dim 1 : vector<2x512xf32>, i32 -> vector<2x512xf32>
    %157 = arith.select %47, %119, %156 : vector<2x512xi1>, vector<2x512xf32>
    %c16_i32_64 = arith.constant 16 : i32
    %158 = tpu.dynamic_rotate %153 by %c16_i32_64 dim 1 : vector<2x512xf32>, i32 -> vector<2x512xf32>
    %159 = arith.select %47, %153, %158 : vector<2x512xi1>, vector<2x512xf32>
    %c496_i32_65 = arith.constant 496 : i32
    %160 = tpu.dynamic_rotate %151 by %c496_i32_65 dim 1 : vector<2x512xf32>, i32 -> vector<2x512xf32>
    %161 = arith.select %49, %151, %160 : vector<2x512xi1>, vector<2x512xf32>
    %c496_i32_66 = arith.constant 496 : i32
    %162 = tpu.dynamic_rotate %119 by %c496_i32_66 dim 1 : vector<2x512xf32>, i32 -> vector<2x512xf32>
    %163 = arith.select %49, %119, %162 : vector<2x512xi1>, vector<2x512xf32>
    %c496_i32_67 = arith.constant 496 : i32
    %164 = tpu.dynamic_rotate %153 by %c496_i32_67 dim 1 : vector<2x512xf32>, i32 -> vector<2x512xf32>
    %165 = arith.select %49, %153, %164 : vector<2x512xi1>, vector<2x512xf32>
    %166 = tpu.concatenate %155, %157, %159, %151, %119, %153, %161, %163, %165 in 0 : vector<2x512xf32>, vector<2x512xf32>, vector<2x512xf32>, vector<2x512xf32>, vector<2x512xf32>, vector<2x512xf32>, vector<2x512xf32>, vector<2x512xf32>, vector<2x512xf32> -> vector<18x512xf32>
    %cst_68 = arith.constant dense<0.000000e+00> : vector<2x512xf32>
    %167 = tpu.matmul %149, %166, %cst_68 {dimension_numbers = #tpu.dot_dimension_numbers<[1], [0], [0], [1], [0, 0, 1, 1], [], []>} : vector<2x18xf32>, vector<18x512xf32>, vector<2x512xf32> -> vector<2x512xf32>
    %168 = vector.extract_strided_slice %167 {offsets = [0, 0], sizes = [2, 256], strides = [1, 1]} : vector<2x512xf32> to vector<2x256xf32>
    %c0_69 = arith.constant 0 : index
    %c10 = arith.constant 10 : index
    %c0_70 = arith.constant 0 : index
    %169 = vector.load %arg3[%c0_69, %c10, %c0_70] : memref<2x16x256xf32, #tpu.memory_space<vmem>>, vector<1x2x256xf32>
    %170 = vector.shape_cast %169 : vector<1x2x256xf32> to vector<2x256xf32>
    %171 = vector.shape_cast %168 : vector<2x256xf32> to vector<1x2x256xf32>
    tpu.vector_store %arg3[%c0_69, %c10, %c0_70], %171 {strides = array<i32>} : memref<2x16x256xf32, #tpu.memory_space<vmem>>, vector<1x2x256xf32>,
    %172 = vector.extract_strided_slice %167 {offsets = [0, 256], sizes = [2, 256], strides = [1, 1]} : vector<2x512xf32> to vector<2x256xf32>
    %c1_71 = arith.constant 1 : index
    %c10_72 = arith.constant 10 : index
    %c0_73 = arith.constant 0 : index
    %173 = vector.load %arg3[%c1_71, %c10_72, %c0_73] : memref<2x16x256xf32, #tpu.memory_space<vmem>>, vector<1x2x256xf32>
    %174 = vector.shape_cast %173 : vector<1x2x256xf32> to vector<2x256xf32>
    %175 = vector.shape_cast %172 : vector<2x256xf32> to vector<1x2x256xf32>
    tpu.vector_store %arg3[%c1_71, %c10_72, %c0_73], %175 {strides = array<i32>} : memref<2x16x256xf32, #tpu.memory_space<vmem>>, vector<1x2x256xf32>,
    %c20 = arith.constant 20 : index
    %c0_74 = arith.constant 0 : index
    %176 = vector.load %arg2[%c20, %c0_74] : memref<28x36xf32, #tpu.memory_space<vmem>>, vector<2x18xf32>
    %c1_i32_75 = arith.constant 1 : i32
    %177 = tpu.dynamic_rotate %120 by %c1_i32_75 dim 1 : vector<2x512xf32>, i32 -> vector<2x512xf32>
    %178 = arith.select %51, %120, %177 : vector<2x512xi1>, vector<2x512xf32>
    %c511_i32_76 = arith.constant 511 : i32
    %179 = tpu.dynamic_rotate %120 by %c511_i32_76 dim 1 : vector<2x512xf32>, i32 -> vector<2x512xf32>
    %180 = arith.select %53, %120, %179 : vector<2x512xi1>, vector<2x512xf32>
    %c16_i32_77 = arith.constant 16 : i32
    %181 = tpu.dynamic_rotate %178 by %c16_i32_77 dim 1 : vector<2x512xf32>, i32 -> vector<2x512xf32>
    %182 = arith.select %47, %178, %181 : vector<2x512xi1>, vector<2x512xf32>
    %c16_i32_78 = arith.constant 16 : i32
    %183 = tpu.dynamic_rotate %120 by %c16_i32_78 dim 1 : vector<2x512xf32>, i32 -> vector<2x512xf32>
    %184 = arith.select %47, %120, %183 : vector<2x512xi1>, vector<2x512xf32>
    %c16_i32_79 = arith.constant 16 : i32
    %185 = tpu.dynamic_rotate %180 by %c16_i32_79 dim 1 : vector<2x512xf32>, i32 -> vector<2x512xf32>
    %186 = arith.select %47, %180, %185 : vector<2x512xi1>, vector<2x512xf32>
    %c496_i32_80 = arith.constant 496 : i32
    %187 = tpu.dynamic_rotate %178 by %c496_i32_80 dim 1 : vector<2x512xf32>, i32 -> vector<2x512xf32>
    %188 = arith.select %49, %178, %187 : vector<2x512xi1>, vector<2x512xf32>
    %c496_i32_81 = arith.constant 496 : i32
    %189 = tpu.dynamic_rotate %120 by %c496_i32_81 dim 1 : vector<2x512xf32>, i32 -> vector<2x512xf32>
    %190 = arith.select %49, %120, %189 : vector<2x512xi1>, vector<2x512xf32>
    %c496_i32_82 = arith.constant 496 : i32
    %191 = tpu.dynamic_rotate %180 by %c496_i32_82 dim 1 : vector<2x512xf32>, i32 -> vector<2x512xf32>
    %192 = arith.select %49, %180, %191 : vector<2x512xi1>, vector<2x512xf32>
    %193 = tpu.concatenate %182, %184, %186, %178, %120, %180, %188, %190, %192 in 0 : vector<2x512xf32>, vector<2x512xf32>, vector<2x512xf32>, vector<2x512xf32>, vector<2x512xf32>, vector<2x512xf32>, vector<2x512xf32>, vector<2x512xf32>, vector<2x512xf32> -> vector<18x512xf32>
    %cst_83 = arith.constant dense<0.000000e+00> : vector<2x512xf32>
    %194 = tpu.matmul %176, %193, %cst_83 {dimension_numbers = #tpu.dot_dimension_numbers<[1], [0], [0], [1], [0, 0, 1, 1], [], []>} : vector<2x18xf32>, vector<18x512xf32>, vector<2x512xf32> -> vector<2x512xf32>
    %c22 = arith.constant 22 : index
    %c0_84 = arith.constant 0 : index
    %195 = vector.load %arg2[%c22, %c0_84] : memref<28x36xf32, #tpu.memory_space<vmem>>, vector<2x18xf32>
    %c1_i32_85 = arith.constant 1 : i32
    %196 = tpu.dynamic_rotate %194 by %c1_i32_85 dim 1 : vector<2x512xf32>, i32 -> vector<2x512xf32>
    %197 = arith.select %51, %194, %196 : vector<2x512xi1>, vector<2x512xf32>
    %c511_i32_86 = arith.constant 511 : i32
    %198 = tpu.dynamic_rotate %194 by %c511_i32_86 dim 1 : vector<2x512xf32>, i32 -> vector<2x512xf32>
    %199 = arith.select %53, %194, %198 : vector<2x512xi1>, vector<2x512xf32>
    %c16_i32_87 = arith.constant 16 : i32
    %200 = tpu.dynamic_rotate %197 by %c16_i32_87 dim 1 : vector<2x512xf32>, i32 -> vector<2x512xf32>
    %201 = arith.select %47, %197, %200 : vector<2x512xi1>, vector<2x512xf32>
    %c16_i32_88 = arith.constant 16 : i32
    %202 = tpu.dynamic_rotate %194 by %c16_i32_88 dim 1 : vector<2x512xf32>, i32 -> vector<2x512xf32>
    %203 = arith.select %47, %194, %202 : vector<2x512xi1>, vector<2x512xf32>
    %c16_i32_89 = arith.constant 16 : i32
    %204 = tpu.dynamic_rotate %199 by %c16_i32_89 dim 1 : vector<2x512xf32>, i32 -> vector<2x512xf32>
    %205 = arith.select %47, %199, %204 : vector<2x512xi1>, vector<2x512xf32>
    %c496_i32_90 = arith.constant 496 : i32
    %206 = tpu.dynamic_rotate %197 by %c496_i32_90 dim 1 : vector<2x512xf32>, i32 -> vector<2x512xf32>
    %207 = arith.select %49, %197, %206 : vector<2x512xi1>, vector<2x512xf32>
    %c496_i32_91 = arith.constant 496 : i32
    %208 = tpu.dynamic_rotate %194 by %c496_i32_91 dim 1 : vector<2x512xf32>, i32 -> vector<2x512xf32>
    %209 = arith.select %49, %194, %208 : vector<2x512xi1>, vector<2x512xf32>
    %c496_i32_92 = arith.constant 496 : i32
    %210 = tpu.dynamic_rotate %199 by %c496_i32_92 dim 1 : vector<2x512xf32>, i32 -> vector<2x512xf32>
    %211 = arith.select %49, %199, %210 : vector<2x512xi1>, vector<2x512xf32>
    %212 = tpu.concatenate %201, %203, %205, %197, %194, %199, %207, %209, %211 in 0 : vector<2x512xf32>, vector<2x512xf32>, vector<2x512xf32>, vector<2x512xf32>, vector<2x512xf32>, vector<2x512xf32>, vector<2x512xf32>, vector<2x512xf32>, vector<2x512xf32> -> vector<18x512xf32>
    %cst_93 = arith.constant dense<0.000000e+00> : vector<2x512xf32>
    %213 = tpu.matmul %195, %212, %cst_93 {dimension_numbers = #tpu.dot_dimension_numbers<[1], [0], [0], [1], [0, 0, 1, 1], [], []>} : vector<2x18xf32>, vector<18x512xf32>, vector<2x512xf32> -> vector<2x512xf32>
    %214 = vector.extract_strided_slice %213 {offsets = [0, 0], sizes = [2, 256], strides = [1, 1]} : vector<2x512xf32> to vector<2x256xf32>
    %c0_94 = arith.constant 0 : index
    %c12 = arith.constant 12 : index
    %c0_95 = arith.constant 0 : index
    %215 = vector.load %arg3[%c0_94, %c12, %c0_95] : memref<2x16x256xf32, #tpu.memory_space<vmem>>, vector<1x2x256xf32>
    %216 = vector.shape_cast %215 : vector<1x2x256xf32> to vector<2x256xf32>
    %217 = vector.shape_cast %214 : vector<2x256xf32> to vector<1x2x256xf32>
    tpu.vector_store %arg3[%c0_94, %c12, %c0_95], %217 {strides = array<i32>} : memref<2x16x256xf32, #tpu.memory_space<vmem>>, vector<1x2x256xf32>,
    %218 = vector.extract_strided_slice %213 {offsets = [0, 256], sizes = [2, 256], strides = [1, 1]} : vector<2x512xf32> to vector<2x256xf32>
    %c1_96 = arith.constant 1 : index
    %c12_97 = arith.constant 12 : index
    %c0_98 = arith.constant 0 : index
    %219 = vector.load %arg3[%c1_96, %c12_97, %c0_98] : memref<2x16x256xf32, #tpu.memory_space<vmem>>, vector<1x2x256xf32>
    %220 = vector.shape_cast %219 : vector<1x2x256xf32> to vector<2x256xf32>
    %221 = vector.shape_cast %218 : vector<2x256xf32> to vector<1x2x256xf32>
    tpu.vector_store %arg3[%c1_96, %c12_97, %c0_98], %221 {strides = array<i32>} : memref<2x16x256xf32, #tpu.memory_space<vmem>>, vector<1x2x256xf32>,
    %c24 = arith.constant 24 : index
    %c0_99 = arith.constant 0 : index
    %222 = vector.load %arg2[%c24, %c0_99] : memref<28x36xf32, #tpu.memory_space<vmem>>, vector<2x18xf32>
    %c1_i32_100 = arith.constant 1 : i32
    %223 = tpu.dynamic_rotate %121 by %c1_i32_100 dim 1 : vector<2x512xf32>, i32 -> vector<2x512xf32>
    %224 = arith.select %51, %121, %223 : vector<2x512xi1>, vector<2x512xf32>
    %c511_i32_101 = arith.constant 511 : i32
    %225 = tpu.dynamic_rotate %121 by %c511_i32_101 dim 1 : vector<2x512xf32>, i32 -> vector<2x512xf32>
    %226 = arith.select %53, %121, %225 : vector<2x512xi1>, vector<2x512xf32>
    %c16_i32_102 = arith.constant 16 : i32
    %227 = tpu.dynamic_rotate %224 by %c16_i32_102 dim 1 : vector<2x512xf32>, i32 -> vector<2x512xf32>
    %228 = arith.select %47, %224, %227 : vector<2x512xi1>, vector<2x512xf32>
    %c16_i32_103 = arith.constant 16 : i32
    %229 = tpu.dynamic_rotate %121 by %c16_i32_103 dim 1 : vector<2x512xf32>, i32 -> vector<2x512xf32>
    %230 = arith.select %47, %121, %229 : vector<2x512xi1>, vector<2x512xf32>
    %c16_i32_104 = arith.constant 16 : i32
    %231 = tpu.dynamic_rotate %226 by %c16_i32_104 dim 1 : vector<2x512xf32>, i32 -> vector<2x512xf32>
    %232 = arith.select %47, %226, %231 : vector<2x512xi1>, vector<2x512xf32>
    %c496_i32_105 = arith.constant 496 : i32
    %233 = tpu.dynamic_rotate %224 by %c496_i32_105 dim 1 : vector<2x512xf32>, i32 -> vector<2x512xf32>
    %234 = arith.select %49, %224, %233 : vector<2x512xi1>, vector<2x512xf32>
    %c496_i32_106 = arith.constant 496 : i32
    %235 = tpu.dynamic_rotate %121 by %c496_i32_106 dim 1 : vector<2x512xf32>, i32 -> vector<2x512xf32>
    %236 = arith.select %49, %121, %235 : vector<2x512xi1>, vector<2x512xf32>
    %c496_i32_107 = arith.constant 496 : i32
    %237 = tpu.dynamic_rotate %226 by %c496_i32_107 dim 1 : vector<2x512xf32>, i32 -> vector<2x512xf32>
    %238 = arith.select %49, %226, %237 : vector<2x512xi1>, vector<2x512xf32>
    %239 = tpu.concatenate %228, %230, %232, %224, %121, %226, %234, %236, %238 in 0 : vector<2x512xf32>, vector<2x512xf32>, vector<2x512xf32>, vector<2x512xf32>, vector<2x512xf32>, vector<2x512xf32>, vector<2x512xf32>, vector<2x512xf32>, vector<2x512xf32> -> vector<18x512xf32>
    %cst_108 = arith.constant dense<0.000000e+00> : vector<2x512xf32>
    %240 = tpu.matmul %222, %239, %cst_108 {dimension_numbers = #tpu.dot_dimension_numbers<[1], [0], [0], [1], [0, 0, 1, 1], [], []>} : vector<2x18xf32>, vector<18x512xf32>, vector<2x512xf32> -> vector<2x512xf32>
    %c26 = arith.constant 26 : index
    %c0_109 = arith.constant 0 : index
    %241 = vector.load %arg2[%c26, %c0_109] : memref<28x36xf32, #tpu.memory_space<vmem>>, vector<2x18xf32>
    %c1_i32_110 = arith.constant 1 : i32
    %242 = tpu.dynamic_rotate %240 by %c1_i32_110 dim 1 : vector<2x512xf32>, i32 -> vector<2x512xf32>
    %243 = arith.select %51, %240, %242 : vector<2x512xi1>, vector<2x512xf32>
    %c511_i32_111 = arith.constant 511 : i32
    %244 = tpu.dynamic_rotate %240 by %c511_i32_111 dim 1 : vector<2x512xf32>, i32 -> vector<2x512xf32>
    %245 = arith.select %53, %240, %244 : vector<2x512xi1>, vector<2x512xf32>
    %c16_i32_112 = arith.constant 16 : i32
    %246 = tpu.dynamic_rotate %243 by %c16_i32_112 dim 1 : vector<2x512xf32>, i32 -> vector<2x512xf32>
    %247 = arith.select %47, %243, %246 : vector<2x512xi1>, vector<2x512xf32>
    %c16_i32_113 = arith.constant 16 : i32
    %248 = tpu.dynamic_rotate %240 by %c16_i32_113 dim 1 : vector<2x512xf32>, i32 -> vector<2x512xf32>
    %249 = arith.select %47, %240, %248 : vector<2x512xi1>, vector<2x512xf32>
    %c16_i32_114 = arith.constant 16 : i32
    %250 = tpu.dynamic_rotate %245 by %c16_i32_114 dim 1 : vector<2x512xf32>, i32 -> vector<2x512xf32>
    %251 = arith.select %47, %245, %250 : vector<2x512xi1>, vector<2x512xf32>
    %c496_i32_115 = arith.constant 496 : i32
    %252 = tpu.dynamic_rotate %243 by %c496_i32_115 dim 1 : vector<2x512xf32>, i32 -> vector<2x512xf32>
    %253 = arith.select %49, %243, %252 : vector<2x512xi1>, vector<2x512xf32>
    %c496_i32_116 = arith.constant 496 : i32
    %254 = tpu.dynamic_rotate %240 by %c496_i32_116 dim 1 : vector<2x512xf32>, i32 -> vector<2x512xf32>
    %255 = arith.select %49, %240, %254 : vector<2x512xi1>, vector<2x512xf32>
    %c496_i32_117 = arith.constant 496 : i32
    %256 = tpu.dynamic_rotate %245 by %c496_i32_117 dim 1 : vector<2x512xf32>, i32 -> vector<2x512xf32>
    %257 = arith.select %49, %245, %256 : vector<2x512xi1>, vector<2x512xf32>
    %258 = tpu.concatenate %247, %249, %251, %243, %240, %245, %253, %255, %257 in 0 : vector<2x512xf32>, vector<2x512xf32>, vector<2x512xf32>, vector<2x512xf32>, vector<2x512xf32>, vector<2x512xf32>, vector<2x512xf32>, vector<2x512xf32>, vector<2x512xf32> -> vector<18x512xf32>
    %cst_118 = arith.constant dense<0.000000e+00> : vector<2x512xf32>
    %259 = tpu.matmul %241, %258, %cst_118 {dimension_numbers = #tpu.dot_dimension_numbers<[1], [0], [0], [1], [0, 0, 1, 1], [], []>} : vector<2x18xf32>, vector<18x512xf32>, vector<2x512xf32> -> vector<2x512xf32>
    %260 = vector.extract_strided_slice %259 {offsets = [0, 0], sizes = [2, 256], strides = [1, 1]} : vector<2x512xf32> to vector<2x256xf32>
    %c0_119 = arith.constant 0 : index
    %c14 = arith.constant 14 : index
    %c0_120 = arith.constant 0 : index
    %261 = vector.load %arg3[%c0_119, %c14, %c0_120] : memref<2x16x256xf32, #tpu.memory_space<vmem>>, vector<1x2x256xf32>
    %262 = vector.shape_cast %261 : vector<1x2x256xf32> to vector<2x256xf32>
    %263 = vector.shape_cast %260 : vector<2x256xf32> to vector<1x2x256xf32>
    tpu.vector_store %arg3[%c0_119, %c14, %c0_120], %263 {strides = array<i32>} : memref<2x16x256xf32, #tpu.memory_space<vmem>>, vector<1x2x256xf32>,
    %264 = vector.extract_strided_slice %259 {offsets = [0, 256], sizes = [2, 256], strides = [1, 1]} : vector<2x512xf32> to vector<2x256xf32>
    %c1_121 = arith.constant 1 : index
    %c14_122 = arith.constant 14 : index
    %c0_123 = arith.constant 0 : index
    %265 = vector.load %arg3[%c1_121, %c14_122, %c0_123] : memref<2x16x256xf32, #tpu.memory_space<vmem>>, vector<1x2x256xf32>
    %266 = vector.shape_cast %265 : vector<1x2x256xf32> to vector<2x256xf32>
    %267 = vector.shape_cast %264 : vector<2x256xf32> to vector<1x2x256xf32>
    tpu.vector_store %arg3[%c1_121, %c14_122, %c0_123], %267 {strides = array<i32>} : memref<2x16x256xf32, #tpu.memory_space<vmem>>, vector<1x2x256xf32>,
    return
  }
  func.func @transform_0(%arg0: i32) -> (i32, i32, i32) {
    %c0_i32 = arith.constant 0 : i32
    %c0_i32_0 = arith.constant 0 : i32
    %c0_i32_1 = arith.constant 0 : i32
    %c0_i32_2 = arith.constant 0 : i32
    return %c0_i32, %c0_i32_0, %c0_i32_1 : i32, i32, i32
  }
  func.func @transform_1(%arg0: i32) -> (i32, i32) {
    %c0_i32 = arith.constant 0 : i32
    %c0_i32_0 = arith.constant 0 : i32
    %c0_i32_1 = arith.constant 0 : i32
    return %c0_i32, %c0_i32_0 : i32, i32
  }
  func.func @transform_2(%arg0: i32) -> (i32, i32, i32) {
    %c0_i32 = arith.constant 0 : i32
    %c0_i32_0 = arith.constant 0 : i32
    %c0_i32_1 = arith.constant 0 : i32
    %c0_i32_2 = arith.constant 0 : i32
    return %c0_i32, %c0_i32_0, %c0_i32_1 : i32, i32, i32
  }
}

</mosaic_0001>

<bundles_post_ra>
// kernel: forward.1
= control target key start
LH: loop header
LB: loop body
LE: loop exit
PB: predicated region body
PF: predicated region fallthrough
CT: control target
= control target key end

     0   :  { %s4415_s13 = smov 127   ;;  %s4417_s14 = smov 16   ;;  %v20_v6 = vlaneseq  ;;  %v7150_v20 = vmov 0  ;;  %v7153_v23 = vmov 0  ;;  %v7156_v24 = vmov 0  ;;  %s7039_s0 = inlined_call_operand.vmem [shape: f32[2,4,256], index: 0, kind: input, shape index: {}]   ;;  %s7040_s1 = inlined_call_operand.vmem [shape: f32[28,36], index: 1, kind: input, shape index: {}]   ;;  %s7041_s2 = inlined_call_operand.vmem [shape: f32[2,16,256], index: 2, kind: output, shape index: {}]  }
   0x1   :  { %v4438_v0 = vld [vmem:[%s7039_s0] sm:$0xff]  ;;  %v4443_v1 = vld [vmem:[%s7039_s0 + $0x8] sm:$0xff]  ;;  %s4416_s0 = smov 1   ;;  %s4418_s15 = smov 112   ;;  %v7159_v28 = vmov 0  ;;  %v7162_v29 = vmov 0 }
   0x2   :  { %187 = vrot.lane.b32.xlu1 %v4438_v0, %s4415_s13  ;;  %v4449_v2 = vcombine.high %v4438_v0, %v4438_v0  ;;  %v4453_v3 = vcombine.high %v4443_v1, %v4443_v1  ;;  %v4471_v7 = vand.u32 127, %v20_v6  ;;  %v7165_v31 = vmov 0 }
   0x3   :  { %v7168_v32 = vmov 0  ;;  %v7171_v33 = vmov 0  ;;  %v7054_v53 = vmov 0.0   ;;  %vm7044_vm10 = vcmask 1043456  }
   0x4   :  { %v3933_v4 = vpack.i.bf16 %v4449_v2, %v4438_v0  ;;  %v3938_v5 = vpack.i.bf16 %v4453_v3, %v4443_v1  ;;  %v4474_v9 = vadd.s32 128, %v4471_v7  ;;  %v4477_v10 = vadd.s32 256, %v4471_v7  ;;  %447 = vmatprep.mubr.f32.mxu0 %v7054_v53  ;;  %518 = vmatprep.mubr.f32.mxu1 %v7054_v53 }
   0x5   :  { %v4480_v11 = vadd.s32 384, %v4471_v7  ;;  %v29_v12 = vand.u32 15, %v4471_v7  ;;  %vm7045_vm0 = vcmp.lt.s32.totalorder %v4471_v7, 1  ;;  %vm7042_vm1 = vcmp.lt.s32.totalorder %v4471_v7, 127 }
   0x6   :  { %189 = vrot.lane.b32.xlu1 %v4449_v2, %s4415_s13  ;;  %3934 = vrot.lane.b32.xlu0 %v3933_v4, %s4416_s0  ;;  %v36_v15 = vand.u32 15, %v4474_v9  ;;  %v43_v18 = vand.u32 15, %v4477_v10  ;;  %v77_v56 = vand.u32 255, %v4471_v7  ;;  %vm7043_vm11 = vcmp.lt.s32.totalorder %v4471_v7, 16 }
   0x7   :  { %v50_v19 = vand.u32 15, %v4480_v11  ;;  %vm4488_vm2 = vcmp.eq.s32.totalorder %v29_v12, 15  ;;  %vm4494_vm3 = vcmp.eq.s32.totalorder %v29_v12, 0  ;;  %v98_v59 = vand.u32 255, %v4480_v11 }
   0x8   :  { %v7151_v20 = vsel %vm4488_vm2, 4294967295, %v7150_v20  ;;  %v7154_v23 = vsel %vm4494_vm3, 4294967295, %v7153_v23  ;;  %vm4498_vm4 = vcmp.eq.s32.totalorder %v36_v15, 0  ;;  %vm4502_vm5 = vcmp.eq.s32.totalorder %v43_v18, 0 }
   0x9   :  { %7152 = vst [vmem:[#allocation2_spill] sm:$0xff] %v7151_v20  ;;  %7155 = vst [vmem:[#allocation3_spill] sm:$0xff] %v7154_v23  ;;  %v7157_v24 = vsel %vm4498_vm4, 4294967295, %v7156_v24  ;;  %v7160_v28 = vsel %vm4502_vm5, 4294967295, %v7159_v28  ;;  %vm4506_vm6 = vcmp.eq.s32.totalorder %v50_v19, 0  ;;  %vm4512_vm7 = vcmp.eq.s32.totalorder %v50_v19, 15 }
   0xa   :  { %193 = vrot.lane.b32.xlu1 %v4453_v3, %s4415_s13  ;;  %3939 = vrot.lane.b32.xlu0 %v3938_v5, %s4416_s0  ;;  %7158 = vst [vmem:[#allocation4_spill] sm:$0xff] %v7157_v24  ;;  %7161 = vst [vmem:[#allocation5_spill] sm:$0xff] %v7160_v28  ;;  %v7163_v29 = vsel %vm4506_vm6, 4294967295, %v7162_v29  ;;  %v7166_v31 = vsel %vm4512_vm7, 4294967295, %v7165_v31  ;;  %vm4516_vm8 = vcmp.eq.s32.totalorder %v36_v15, 15  ;;  %vm4520_vm9 = vcmp.eq.s32.totalorder %v43_v18, 15 }
   0xb   :  { %7164 = vst [vmem:[#allocation6_spill] sm:$0xff] %v7163_v29  ;;  %7167 = vst [vmem:[#allocation7_spill] sm:$0xff] %v7166_v31  ;;  %v7169_v32 = vsel %vm4516_vm8, 4294967295, %v7168_v32  ;;  %v7172_v33 = vsel %vm4520_vm9, 4294967295, %v7171_v33  ;;  %v84_v60 = vand.u32 255, %v4474_v9  ;;  %v91_v61 = vand.u32 255, %v4477_v10 }
   0xc   :  { %7170 = vst [vmem:[#allocation8_spill] sm:$0xff] %v7169_v32  ;;  %7173 = vst [vmem:[#allocation9_spill] sm:$0xff] %v7172_v33  ;;  %vm4605_vm12 = vcmp.lt.s32.totalorder %v77_v56, 16  ;;  %vm7048_vm13 = vcmp.lt.s32.totalorder %v4471_v7, 112  ;;  %vm4612_vm14 = vcmp.ge.s32.totalorder %v98_v59, 240  ;;  %v7178_v15 = vmov 0 }
   0xd   :  { %vm4616_vm15 = vcmp.lt.s32.totalorder %v91_v61, 16 }
   0xe   :  { %191 = vrot.lane.b32.xlu0 %v4443_v1, %s4415_s13  ;;  %3949 = vrot.lane.b32.xlu1 %v3938_v5, %s4417_s14  ;;  %v7179_v15 = vsel %vm4616_vm15, 4294967295, %v7178_v15 }
  0x12   :  { %3944 = vrot.lane.b32.xlu0 %v3933_v4, %s4417_s14  ;;  %3959 = vrot.lane.b32.xlu1 %v3938_v5, %s4418_s15 }
  0x16   :  { %3954 = vrot.lane.b32.xlu0 %v3933_v4, %s4418_s15 }
  0x74   :  { %v188_v8 = vpop.permute.xlu1 %187 }
  0x78   :  { %v190_v13 = vpop.permute.xlu1 %189  ;;  %v3935_v14 = vpop.permute.xlu0 %3934 }
  0x79   :  { %v3937_v16 = vunpack.i.h.bf16 %v3935_v14  ;;  %v3936_v17 = vunpack.i.l.bf16 %v3935_v14  ;;  %v198_v30 = vsel %vm7042_vm1, %v188_v8, %v190_v13  ;;  %v7174_v14 = vmov 0 }
  0x7a   :  { %v4575_v49 = vsel %vm4488_vm2, %v4438_v0, %v198_v30  ;;  %v7175_v14 = vsel %vm4605_vm12, 4294967295, %v7174_v14 }
  0x7b   :  { %v181_v21 = vsel %vm7045_vm0, %v3936_v17, %v3937_v16 }
  0x7c   :  { %v3940_v22 = vpop.permute.xlu0 %3939  ;;  %v194_v25 = vpop.permute.xlu1 %193  ;;  %v4533_v37 = vsel %vm4498_vm4, %v4449_v2, %v181_v21 }
  0x7d   :  { %v3942_v26 = vunpack.i.h.bf16 %v3940_v22  ;;  %v3941_v27 = vunpack.i.l.bf16 %v3940_v22  ;;  %v199_v38 = vsel %vm7042_vm1, %v194_v25, %v188_v8  ;;  %v319_v21 = vrot.slane %v4533_v37, 4 }
  0x7e   :  { %v4580_v50 = vsel %vm4512_vm7, %v4453_v3, %v199_v38 }
  0x7f   :  { %v179_v34 = vsel %vm7045_vm0, %v3941_v27, %v3942_v26  ;;  %v180_v35 = vsel %vm7045_vm0, %v3937_v16, %v3941_v27  ;;  %v182_v36 = vsel %vm7045_vm0, %v3942_v26, %v3936_v17  ;;  %v333_v9 = vrot.slane %v4580_v50, 4 }
  0x80   :  { %v192_v39 = vpop.permute.xlu0 %191  ;;  %v4540_v40 = vsel %vm4502_vm5, %v4443_v1, %v180_v35  ;;  %v4545_v41 = vsel %vm4506_vm6, %v4453_v3, %v179_v34  ;;  %v4550_v42 = vsel %vm4494_vm3, %v4438_v0, %v182_v36  ;;  %v3950_v54 = vpop.permute.xlu1 %3949  ;;  %v330_v17 = vrot.slane %v4575_v49, 4 }
  0x81   :  { %v196_v43 = vsel %vm7042_vm1, %v192_v39, %v194_v25  ;;  %v197_v44 = vsel %vm7042_vm1, %v190_v13, %v192_v39  ;;  %v3968_v45 = vpack.i.bf16 %v4545_v41, %v4540_v40  ;;  %v3963_v46 = vpack.i.bf16 %v4533_v37, %v4550_v42 }
  0x82   :  { %v4563_v47 = vsel %vm4516_vm8, %v4449_v2, %v197_v44  ;;  %v4568_v48 = vsel %vm4520_vm9, %v4443_v1, %v196_v43  ;;  %v3952_v62 = vunpack.i.h.bf16 %v3950_v54  ;;  %v3951_v63 = vunpack.i.l.bf16 %v3950_v54 }
  0x83   :  { %3969 = vrot.lane.b32.xlu1 %v3968_v45, %s4417_s14  ;;  %3964 = vrot.lane.b32.xlu0 %v3963_v46, %s4417_s14  ;;  %v3978_v51 = vpack.i.bf16 %v4580_v50, %v4568_v48  ;;  %v3973_v52 = vpack.i.bf16 %v4563_v47, %v4575_v49  ;;  %v331_v11 = vrot.slane %v4563_v47, 4  ;;  %vm4620_vm1 = vcmp.ge.s32.totalorder %v84_v60, 240 }
  0x84   :  { %v3945_v55 = vpop.permute.xlu0 %3944  ;;  %v3960_v57 = vpop.permute.xlu1 %3959  ;;  %v321_v22 = vrot.slane %v4545_v41, 4  ;;  %v229_v27 = vsel %vm7043_vm11, %v3951_v63, %v3952_v62  ;;  %v318_v30 = vrot.slane %v4550_v42, 4  ;;  %v320_v34 = vrot.slane %v4540_v40, 4 }
  0x85   :  { %v3947_v4 = vunpack.i.h.bf16 %v3945_v55  ;;  %v3946_v5 = vunpack.i.l.bf16 %v3945_v55  ;;  %v3962_v6 = vunpack.i.h.bf16 %v3960_v57  ;;  %v3961_v8 = vunpack.i.l.bf16 %v3960_v57 }
  0x86   :  { %v4641_v35 = vsel %vm7044_vm10, %v4449_v2, %v331_v11  ;;  %v4645_v36 = vsel %vm7044_vm10, %v4453_v3, %v333_v9  ;;  %v332_v38 = vrot.slane %v4568_v48, 4  ;;  %v309_v54 = vrot.slane %v229_v27, 4 }
  0x87   :  { %3979 = vrot.lane.b32.xlu1 %v3978_v51, %s4417_s14  ;;  %3974 = vrot.lane.b32.xlu0 %v3973_v52, %s4417_s14  ;;  %v230_v18 = vsel %vm7043_vm11, %v3947_v4, %v3951_v63  ;;  %v232_v19 = vsel %vm7043_vm11, %v3952_v62, %v3946_v5  ;;  %v231_v43 = vsel %vm7043_vm11, %v3946_v5, %v3947_v4 }
  0x88   :  { %v3955_v58 = vpop.permute.xlu0 %3954  ;;  %v233_v44 = vsel %vm4605_vm12, %v4438_v0, %v232_v19  ;;  %v307_v62 = vrot.slane %v231_v43, 4 }
  0x89   :  { %v3957_v12 = vunpack.i.h.bf16 %v3955_v58  ;;  %v3956_v13 = vunpack.i.l.bf16 %v3955_v58  ;;  %v306_v63 = vrot.slane %v233_v44, 4 }
  0x8b   :  { %3989 = vrot.lane.b32.xlu1 %v3968_v45, %s4418_s15  ;;  %3984 = vrot.lane.b32.xlu0 %v3963_v46, %s4418_s15  ;;  %v279_v25 = vsel %vm7048_vm13, %v3957_v12, %v3961_v8  ;;  %v281_v26 = vsel %vm7048_vm13, %v3962_v6, %v3956_v13  ;;  %v4650_v39 = vsel %vm7048_vm13, %v3956_v13, %v3957_v12 }
  0x8c   :  { %v235_v45 = vsel %vm4616_vm15, %v4443_v1, %v230_v18  ;;  %v4662_v46 = vsel %vm7048_vm13, %v3961_v8, %v3962_v6  ;;  %v283_v55 = vsel %vm4620_vm1, %v4449_v2, %v279_v25  ;;  %v285_v56 = vsel %vm4612_vm14, %v4453_v3, %v281_v26 }
  0x8d   :  { %v342_v61 = vrot.slane %v4650_v39, 4  ;;  %v308_v4 = vrot.slane %v235_v45, 4  ;;  %v343_v9 = vrot.slane %v283_v55, 4  ;;  %v345_v18 = vrot.slane %v285_v56, 4 }
  0x8f   :  { %288 = vrot.lane.b32.xlu1 %v4563_v47, %s4418_s15  ;;  %286 = vrot.lane.b32.xlu0 %v4575_v49, %s4418_s15 }
  0x93   :  { %292 = vrot.lane.b32.xlu1 %v4580_v50, %s4418_s15  ;;  %290 = vrot.lane.b32.xlu0 %v4568_v48, %s4418_s15 }
  0xf5   :  { %v3970_v51 = vpop.permute.xlu1 %3969  ;;  %v3965_v52 = vpop.permute.xlu0 %3964 }
  0xf6   :  { %v3972_v57 = vunpack.i.h.bf16 %v3970_v51  ;;  %v3971_v58 = vunpack.i.l.bf16 %v3970_v51  ;;  %v3967_v59 = vunpack.i.h.bf16 %v3965_v52  ;;  %v3966_v60 = vunpack.i.l.bf16 %v3965_v52 }
  0xf8   :  { %v215_v5 = vsel %vm7043_vm11, %v3966_v60, %v3967_v59  ;;  %v213_v6 = vsel %vm7043_vm11, %v3971_v58, %v3972_v57  ;;  %v216_v2 = vsel %vm7043_vm11, %v3972_v57, %v3966_v60  ;;  %v214_v3 = vsel %vm7043_vm11, %v3967_v59, %v3971_v58 }
  0xf9   :  { %v3980_v8 = vpop.permute.xlu1 %3979  ;;  %v3975_v12 = vpop.permute.xlu0 %3974  ;;  %v217_v13 = vsel %vm4605_vm12, %v4550_v42, %v216_v2  ;;  %v219_v11 = vsel %vm4616_vm15, %v4540_v40, %v214_v3  ;;  %v352_v39 = vsel %vm7044_vm10, %v215_v5, %v307_v62  ;;  %v354_v43 = vsel %vm7044_vm10, %v213_v6, %v309_v54 }
  0xfa   :  { %v3982_v19 = vunpack.i.h.bf16 %v3980_v8  ;;  %v3981_v25 = vunpack.i.l.bf16 %v3980_v8  ;;  %v3977_v26 = vunpack.i.h.bf16 %v3975_v12  ;;  %v3976_v27 = vunpack.i.l.bf16 %v3975_v12 }
  0xfb   :  { %v351_v44 = vsel %vm7044_vm10, %v217_v13, %v306_v63  ;;  %v353_v45 = vsel %vm7044_vm10, %v219_v11, %v308_v4 }
  0xfc   :  { %v247_v42 = vsel %vm7043_vm11, %v3976_v27, %v3977_v26  ;;  %v245_v40 = vsel %vm7043_vm11, %v3981_v25, %v3982_v19  ;;  %v248_v51 = vsel %vm7043_vm11, %v3982_v19, %v3976_v27  ;;  %v246_v52 = vsel %vm7043_vm11, %v3977_v26, %v3981_v25 }
  0xfd   :  { %v3990_v55 = vpop.permute.xlu1 %3989  ;;  %v3985_v56 = vpop.permute.xlu0 %3984  ;;  %v356_v54 = vsel %vm7044_vm10, %v247_v42, %v319_v21  ;;  %v358_v57 = vsel %vm7044_vm10, %v245_v40, %v321_v22  ;;  %v249_v58 = vsel %vm4605_vm12, %v4575_v49, %v248_v51  ;;  %v251_v59 = vsel %vm4616_vm15, %v4568_v48, %v246_v52 }
  0xfe   :  { %v3992_v60 = vunpack.i.h.bf16 %v3990_v55  ;;  %v3991_v62 = vunpack.i.l.bf16 %v3990_v55  ;;  %v3987_v63 = vunpack.i.h.bf16 %v3985_v56  ;;  %v3986_v4 = vunpack.i.l.bf16 %v3985_v56 }
  0xff   :  { %v3856_v5 = vpack.c.bf16 %v356_v54, %v352_v39  ;;  %v3864_v6 = vpack.c.bf16 %v358_v57, %v354_v43  ;;  %v355_v2 = vsel %vm7044_vm10, %v249_v58, %v318_v30  ;;  %v357_v21 = vsel %vm7044_vm10, %v251_v59, %v320_v34 }
 0x100   :  { %v263_v22 = vsel %vm7048_vm13, %v3987_v63, %v3991_v62  ;;  %v265_v3 = vsel %vm7048_vm13, %v3992_v60, %v3986_v4  ;;  %v3858_v8 = vpack.c.bf16 %v355_v2, %v351_v44  ;;  %v3866_v12 = vpack.c.bf16 %v357_v21, %v353_v45 }
 0x101   :  { %3857 = vmatprep.subr.bf16.mxu0 %v3856_v5  ;;  %3865 = vmatprep.subr.bf16.mxu1 %v3864_v6  ;;  %v289_v13 = vpop.permute.xlu1 %288  ;;  %v287_v11 = vpop.permute.xlu0 %286  ;;  %v267_v19 = vsel %vm4620_vm1, %v4533_v37, %v263_v22  ;;  %v269_v30 = vsel %vm4612_vm14, %v4545_v41, %v265_v3  ;;  %v264_v34 = vsel %vm7048_vm13, %v3986_v4, %v3987_v63  ;;  %v344_v25 = vrot.slane %v4662_v46, 4 }
 0x102   :  { %3859 = vmatpush1.bf16.msra.mxu0 %v3858_v8  ;;  %3867 = vmatpush1.bf16.msra.mxu1 %v3866_v12  ;;  %v364_v26 = vsel %vm7044_vm10, %v267_v19, %v343_v9  ;;  %v366_v27 = vsel %vm7044_vm10, %v269_v30, %v345_v18  ;;  %v363_v39 = vsel %vm7044_vm10, %v264_v34, %v342_v61  ;;  %vm367_vm11 = vcmask 293888  }
 0x103   :  { %v3860_v43 = vpack.c.bf16 %v364_v26, %v4641_v35  ;;  %v3868_v37 = vpack.c.bf16 %v366_v27, %v4645_v36  ;;  %v359_v41 = vsel %vm7044_vm10, %v4438_v0, %v330_v17  ;;  %v262_v46 = vsel %vm7048_vm13, %v3991_v62, %v3992_v60  ;;  %v169_v17 = vld [vmem:[%s7040_s1] sm:$0xf] }
 0x104   :  { %v3862_v44 = vpack.c.bf16 %v363_v39, %v359_v41  ;;  %v361_v9 = vsel %vm7044_vm10, %v4443_v1, %v332_v38  ;;  %v365_v61 = vsel %vm7044_vm10, %v262_v46, %v344_v25  ;;  %v296_v38 = vsel %vm7048_vm13, %v287_v11, %v289_v13 }
 0x105   :  { %v293_v18 = vpop.permute.xlu1 %292  ;;  %v291_v35 = vpop.permute.xlu0 %290  ;;  %3861 = vmatprep.subr.bf16.mxu0 %v3860_v43  ;;  %3869 = vmatprep.subr.bf16.mxu1 %v3868_v37  ;;  %v3870_v36 = vpack.c.bf16 %v365_v61, %v361_v9 }
 0x106   :  { %v297_v49 = vsel %vm7048_vm13, %v293_v18, %v287_v11  ;;  %v295_v0 = vsel %vm7048_vm13, %v289_v13, %v291_v35  ;;  %3863 = vmatpush1.bf16.msra.mxu0 %v3862_v44 }
 0x107   :  { %3871 = vmatpush1.bf16.msra.mxu1 %v3870_v36  ;;  %v299_v48 = vsel %vm4620_vm1, %v4563_v47, %v295_v0  ;;  %v301_v1 = vsel %vm4612_vm14, %v4580_v50, %v297_v49  ;;  %v294_v47 = vsel %vm7048_vm13, %v291_v35, %v293_v18 }
 0x108   :  { %3756 = vmatprep.subr.msk.mxu0 %vm7044_vm10, %v299_v48  ;;  %3759 = vmatprep.subr.msk.mxu1 %vm7044_vm10, %v301_v1 }
 0x10a   :  { %3757 = vmatpush1.msk.msra.mxu0 %vm7044_vm10, %v296_v38 }
 0x10b   :  { %3760 = vmatpush1.msk.msra.mxu1 %vm7044_vm10, %v294_v47  ;;  %3758 = vmatmul.mubr.msk.f32.vlgmr.msra.gmra.mrb[0].mxu0 %vm367_vm11, %v169_v17 }
 0x10c   :  { %3761 = vmatmul.mubr.msk.f32.vlgmr.msra.gmra.mrb[0].mxu1 %vm367_vm11, %v169_v17  ;;  %961 = vmatprep.mubr.f32.mxu0 %v7054_v53  ;;  %vm7182_vm11 = vcmp.lt.s32.totalorder %v4471_v7, 127 }
 0x10d   :  { %1038 = vmatprep.mubr.f32.mxu1 %v7054_v53  ;;  %vm7183_vm10 = vmmov %vm7182_vm11 }
 0x1de   :  { %v4759_v50 = vpop.f32.mrb[0].mxu0 }
 0x1df   :  { %525 = vst [vmem:[%s7041_s2] sm:$0xf] %v4759_v50  ;;  %v4766_v45 = vrot.slane %v4759_v50, 2  ;;  %v4768_v42 = vpop.f32.mrb[0].mxu1  ;;  %v4770_v40 = vpop.f32.mrb[1].mxu0 }
 0x1e0   :  { %3762 = vst [vmem:[%s7041_s2 + $0x20] sm:$0xf] %v4768_v42  ;;  %v4777_v51 = vrot.slane %v4768_v42, 2  ;;  %526 = vst [vmem:[%s7041_s2 + $0x8] sm:$0xf] %v4770_v40  ;;  %v4784_v52 = vrot.slane %v4770_v40, 2 }
 0x1e1   :  { %v4786_v55 = vpop.f32.mrb[1].mxu1  ;;  %572 = vrot.lane.b32.xlu0 %v4766_v45, %s4415_s13 }
 0x1e2   :  { %3763 = vst [vmem:[%s7041_s2 + $0x28] sm:$0xf] %v4786_v55  ;;  %v4793_v56 = vrot.slane %v4786_v55, 2  ;;  %v3993_v54 = vpack.i.bf16 %v4784_v52, %v4766_v45 }
 0x1e4   :  { %v3998_v57 = vpack.i.bf16 %v4793_v56, %v4777_v51 }
 0x1e5   :  { %3994 = vrot.lane.b32.xlu0 %v3993_v54, %s4416_s0 }
 0x1e6   :  { %3999 = vrot.lane.b32.xlu1 %v3998_v57, %s4416_s0 }
 0x1e9   :  { %576 = vrot.lane.b32.xlu0 %v4777_v51, %s4415_s13 }
 0x1ea   :  { %574 = vrot.lane.b32.xlu1 %v4784_v52, %s4415_s13 }
 0x1ed   :  { %4004 = vrot.lane.b32.xlu0 %v3993_v54, %s4418_s15 }
 0x1ee   :  { %578 = vrot.lane.b32.xlu1 %v4793_v56, %s4415_s13 }
 0x1f1   :  { %4014 = vrot.lane.b32.xlu0 %v3993_v54, %s4417_s14 }
 0x1f2   :  { %4009 = vrot.lane.b32.xlu1 %v3998_v57, %s4418_s15 }
 0x1f6   :  { %4019 = vrot.lane.b32.xlu1 %v3998_v57, %s4417_s14 }
 0x253   :  { %v573_v58 = vpop.permute.xlu0 %572 }
 0x257   :  { %v3995_v60 = vpop.permute.xlu0 %3994 }
 0x258   :  { %v4000_v59 = vpop.permute.xlu1 %3999  ;;  %v3997_v4 = vunpack.i.h.bf16 %v3995_v60  ;;  %v3996_v5 = vunpack.i.l.bf16 %v3995_v60 }
 0x259   :  { %v4002_v62 = vunpack.i.h.bf16 %v4000_v59  ;;  %v4001_v63 = vunpack.i.l.bf16 %v4000_v59 }
 0x25a   :  { %v554_v21 = vsel %vm7045_vm0, %v3996_v5, %v3997_v4 }
 0x25b   :  { %v552_v6 = vsel %vm7045_vm0, %v4001_v63, %v4002_v62  ;;  %v553_v2 = vsel %vm7045_vm0, %v3997_v4, %v4001_v63  ;;  %v555_v22 = vsel %vm7045_vm0, %v4002_v62, %v3996_v5  ;;  %v561_v13 = vrot.slane %v554_v21, 6  ;;  %v577_v19 = vpop.permute.xlu0 %576 }
 0x25c   :  { %v563_v3 = vrot.slane %v552_v6, 6  ;;  %v562_v8 = vrot.slane %v553_v2, 6  ;;  %v560_v12 = vrot.slane %v555_v22, 6  ;;  %v575_v11 = vpop.permute.xlu1 %574 }
 0x25d   :  { %v582_v30 = vsel %vm7182_vm11, %v573_v58, %v575_v11  ;;  %v581_v34 = vsel %vm7183_vm10, %v575_v11, %v577_v19  ;;  %v4845_v41 = vsel %vm4498_vm4, %v4770_v40, %v561_v13  ;;  %vm7184_vm11 = vmmov %vm7183_vm10 }
 0x25e   :  { %v4828_v25 = vsel %vm4502_vm5, %v4768_v42, %v562_v8  ;;  %v4833_v26 = vsel %vm4506_vm6, %v4786_v55, %v563_v3  ;;  %v4840_v43 = vsel %vm4494_vm3, %v4759_v50, %v560_v12  ;;  %v588_v44 = vrot.slane %v582_v30, 6 }
 0x25f   :  { %v606_v27 = vrot.slane %v4828_v25, 2  ;;  %v607_v39 = vrot.slane %v4833_v26, 2  ;;  %v604_v46 = vrot.slane %v4840_v43, 2  ;;  %v589_v9 = vrot.slane %v581_v34, 6  ;;  %v4005_v63 = vpop.permute.xlu0 %4004 }
 0x260   :  { %v579_v37 = vpop.permute.xlu1 %578  ;;  %v605_v0 = vrot.slane %v4845_v41, 2  ;;  %v4862_v17 = vsel %vm4488_vm2, %v4759_v50, %v588_v44  ;;  %v4007_v6 = vunpack.i.h.bf16 %v4005_v63  ;;  %v4006_v21 = vunpack.i.l.bf16 %v4005_v63 }
 0x261   :  { %v580_v61 = vsel %vm7183_vm10, %v577_v19, %v579_v37  ;;  %v583_v18 = vsel %vm7184_vm11, %v579_v37, %v573_v58  ;;  %v4028_v49 = vpack.i.bf16 %v607_v39, %v606_v27  ;;  %v4867_v38 = vsel %vm4516_vm8, %v4770_v40, %v589_v9 }
 0x262   :  { %v590_v35 = vrot.slane %v580_v61, 6  ;;  %v591_v36 = vrot.slane %v583_v18, 6  ;;  %v4023_v48 = vpack.i.bf16 %v605_v0, %v604_v46  ;;  %v672_v57 = vrot.slane %v4862_v17, 2 }
 0x263   :  { %4029 = vrot.lane.b32.xlu1 %v4028_v49, %s4417_s14  ;;  %v673_v58 = vrot.slane %v4867_v38, 2  ;;  %v4015_v2 = vpop.permute.xlu0 %4014  ;;  %v4891_v30 = vsel %vm7048_vm13, %v4006_v21, %v4007_v6  ;;  %v818_v37 = vrot.slane %v4828_v25, 4  ;;  %vm7185_vm10 = vcmp.lt.s32.totalorder %v4471_v7, 16 }
 0x264   :  { %v4857_v1 = vsel %vm4520_vm9, %v4768_v42, %v590_v35  ;;  %4024 = vrot.lane.b32.xlu0 %v4023_v48, %s4417_s14  ;;  %v4873_v47 = vsel %vm4512_vm7, %v4786_v55, %v591_v36  ;;  %v4010_v4 = vpop.permute.xlu1 %4009  ;;  %v4017_v12 = vunpack.i.h.bf16 %v4015_v2  ;;  %v4016_v13 = vunpack.i.l.bf16 %v4015_v2  ;;  %vm7186_vm0 = vmmov %vm7185_vm10 }
 0x265   :  { %v674_v54 = vrot.slane %v4857_v1, 2  ;;  %v675_v59 = vrot.slane %v4873_v47, 2  ;;  %v4043_v62 = vpack.i.bf16 %v673_v58, %v672_v57  ;;  %v4011_v5 = vunpack.i.l.bf16 %v4010_v4  ;;  %vm7187_vm8 = vmmov %vm7186_vm0 }
 0x266   :  { %v4012_v3 = vunpack.i.h.bf16 %v4010_v4  ;;  %v650_v46 = vsel %vm7185_vm10, %v4016_v13, %v4017_v12  ;;  %vm7051_vm11 = vcmask 1041408   ;;  %v3770_v44 = vrot.slane %v4891_v30, 10  ;;  %vm7191_vm10 = vmmov %vm7186_vm0 }
 0x267   :  { %4039 = vrot.lane.b32.xlu1 %v4028_v49, %s4418_s15  ;;  %v4048_v60 = vpack.i.bf16 %v675_v59, %v674_v54  ;;  %v745_v8 = vsel %vm7048_vm13, %v4007_v6, %v4011_v5  ;;  %v816_v9 = vrot.slane %v4840_v43, 4  ;;  %v4913_v49 = vsel %vm7051_vm11, %v4777_v51, %v4857_v1 }
 0x268   :  { %4034 = vrot.lane.b32.xlu0 %v4023_v48, %s4418_s15  ;;  %v4020_v22 = vpop.permute.xlu1 %4019  ;;  %v753_v34 = vrot.slane %v745_v8, 6  ;;  %v747_v27 = vsel %vm7048_vm13, %v4012_v3, %v4006_v21  ;;  %v4897_v39 = vsel %vm7048_vm13, %v4011_v5, %v4012_v3  ;;  %vm7188_vm13 = vmmov %vm7186_vm0  ;;  %v4924_v63 = vsel %vm7051_vm11, %v4766_v45, %v4862_v17 }
 0x269   :  { %v4022_v11 = vunpack.i.h.bf16 %v4020_v22  ;;  %v4021_v19 = vunpack.i.l.bf16 %v4020_v22  ;;  %v755_v35 = vrot.slane %v747_v27, 6  ;;  %v817_v4 = vrot.slane %v4845_v41, 4 }
 0x26a   :  { %v4918_v48 = vsel %vm4620_vm1, %v4770_v40, %v753_v34  ;;  %v871_v22 = vsel %vm7051_vm11, %v4784_v52, %v4867_v38  ;;  %v819_v45 = vrot.slane %v4833_v26, 4  ;;  %v4940_v8 = vsel %vm7051_vm11, %v4793_v56, %v4873_v47 }
 0x26b   :  { %4049 = vrot.lane.b32.xlu1 %v4048_v60, %s4417_s14  ;;  %v649_v61 = vsel %vm7186_vm0, %v4017_v12, %v4021_v19  ;;  %v651_v18 = vsel %vm7187_vm8, %v4022_v11, %v4016_v13  ;;  %v648_v36 = vsel %vm7188_vm13, %v4021_v19, %v4022_v11  ;;  %v841_v40 = vrot.slane %v4918_v48, 4  ;;  %vm7189_vm8 = vmmov %vm7186_vm0 }
 0x26c   :  { %4044 = vrot.lane.b32.xlu0 %v4043_v62, %s4417_s14  ;;  %v656_v60 = vrot.slane %v651_v18, 6  ;;  %v658_v62 = vrot.slane %v649_v61, 6  ;;  %v659_v5 = vrot.slane %v648_v36, 6  ;;  %v4934_v3 = vsel %vm4612_vm14, %v4786_v55, %v755_v35  ;;  %vm7190_vm13 = vmmov %vm7186_vm0 }
 0x26d   :  { %v843_v48 = vrot.slane %v4934_v3, 4 }
 0x26e   :  { %v664_v56 = vsel %vm4605_vm12, %v4759_v50, %v656_v60  ;;  %v666_v61 = vsel %vm4616_vm15, %v4768_v42, %v658_v62 }
 0x26f   :  { %766 = vrot.lane.b32.xlu1 %v673_v58, %s4418_s15 }
 0x270   :  { %764 = vrot.lane.b32.xlu0 %v672_v57, %s4418_s15  ;;  %v657_v57 = vrot.slane %v650_v46, 6 }
 0x273   :  { %770 = vrot.lane.b32.xlu1 %v675_v59, %s4418_s15 }
 0x274   :  { %768 = vrot.lane.b32.xlu0 %v674_v54, %s4418_s15  ;;  %v3771_v54 = vrot.slane %v4897_v39, 10 }
 0x2d5   :  { %v4030_v0 = vpop.permute.xlu1 %4029 }
 0x2d6   :  { %v4032_v58 = vunpack.i.h.bf16 %v4030_v0  ;;  %v4031_v59 = vunpack.i.l.bf16 %v4030_v0  ;;  %v4025_v51 = vpop.permute.xlu0 %4024 }
 0x2d7   :  { %v4027_v6 = vunpack.i.h.bf16 %v4025_v51  ;;  %v4026_v2 = vunpack.i.l.bf16 %v4025_v51 }
 0x2d8   :  { %v620_v12 = vsel %vm7186_vm0, %v4031_v59, %v4032_v58 }
 0x2d9   :  { %v4040_v21 = vpop.permute.xlu1 %4039  ;;  %v621_v13 = vsel %vm7189_vm8, %v4027_v6, %v4031_v59  ;;  %v623_v52 = vsel %vm7190_vm13, %v4032_v58, %v4026_v2  ;;  %v622_v55 = vsel %vm7191_vm10, %v4026_v2, %v4027_v6  ;;  %v860_v58 = vsel %vm7051_vm11, %v620_v12, %v659_v5 }
 0x2da   :  { %v4042_v11 = vunpack.i.h.bf16 %v4040_v21  ;;  %v630_v19 = vrot.slane %v621_v13, 6  ;;  %v628_v34 = vrot.slane %v623_v52, 6  ;;  %v4041_v27 = vunpack.i.l.bf16 %v4040_v21  ;;  %v4035_v46 = vpop.permute.xlu0 %4034 }
 0x2db   :  { %v4037_v18 = vunpack.i.h.bf16 %v4035_v46  ;;  %v4036_v35 = vunpack.i.l.bf16 %v4035_v46  ;;  %vm7192_vm8 = vcmp.lt.s32.totalorder %v4471_v7, 112  ;;  %v858_v62 = vsel %vm7051_vm11, %v622_v55, %v657_v57 }
 0x2dc   :  { %v638_v36 = vsel %vm4616_vm15, %v4828_v25, %v630_v19  ;;  %v636_v0 = vsel %vm4605_vm12, %v4840_v43, %v628_v34  ;;  %v716_v59 = vsel %vm7192_vm8, %v4041_v27, %v4042_v11  ;;  %vm7193_vm13 = vmmov %vm7192_vm8 }
 0x2dd   :  { %v798_v50 = vrot.slane %v638_v36, 2  ;;  %v717_v42 = vsel %vm7193_vm13, %v4037_v18, %v4041_v27  ;;  %v4050_v60 = vpop.permute.xlu1 %4049  ;;  %vm7194_vm10 = vmmov %vm7192_vm8  ;;  %v796_v5 = vrot.slane %v636_v0, 2  ;;  %v3769_v19 = vrot.slane %v716_v59, 12 }
 0x2de   :  { %v725_v51 = vrot.slane %v717_v42, 6  ;;  %v718_v6 = vsel %vm7194_vm10, %v4036_v35, %v4037_v18  ;;  %vm7195_vm0 = vmmov %vm7192_vm8  ;;  %v4052_v21 = vunpack.i.h.bf16 %v4050_v60  ;;  %v4045_v3 = vpop.permute.xlu0 %4044  ;;  %v4051_v13 = vunpack.i.l.bf16 %v4050_v60 }
 0x2df   :  { %v719_v2 = vsel %vm7195_vm0, %v4042_v11, %v4036_v35  ;;  %v4047_v52 = vunpack.i.h.bf16 %v4045_v3  ;;  %v3768_v34 = vrot.slane %v718_v6, 12  ;;  %v4046_v46 = vunpack.i.l.bf16 %v4045_v3 }
 0x2e0   :  { %v727_v12 = vrot.slane %v719_v2, 6  ;;  %v733_v57 = vsel %vm4620_vm1, %v4845_v41, %v725_v51  ;;  %vm7196_vm8 = vcmp.lt.s32.totalorder %v4471_v7, 16  ;;  %v857_v3 = vsel %vm7051_vm11, %v796_v5, %v664_v56 }
 0x2e1   :  { %v688_v55 = vsel %vm7196_vm8, %v4051_v13, %v4052_v21  ;;  %vm7197_vm13 = vmmov %vm7196_vm8  ;;  %v767_v11 = vpop.permute.xlu1 %766  ;;  %v829_v18 = vrot.slane %v733_v57, 6 }
 0x2e2   :  { %v689_v27 = vsel %vm7197_vm13, %v4047_v52, %v4051_v13  ;;  %v735_v35 = vsel %vm4612_vm14, %v4833_v26, %v727_v12  ;;  %v3767_v36 = vrot.slane %v688_v55, 12  ;;  %vm7198_vm0 = vmmov %vm7196_vm8  ;;  %v765_v60 = vpop.permute.xlu0 %764  ;;  %vm7200_vm8 = vcmask 1043456  }
 0x2e3   :  { %v698_v0 = vrot.slane %v689_v27, 6  ;;  %v690_v59 = vsel %vm7198_vm0, %v4046_v46, %v4047_v52  ;;  %vm7199_vm10 = vmmov %vm7198_vm0  ;;  %v875_v2 = vsel %vm7200_vm8, %v871_v22, %v829_v18  ;;  %vm7201_vm13 = vcmask 1045504  }
 0x2e4   :  { %v691_v42 = vsel %vm7199_vm10, %v4052_v21, %v4046_v46  ;;  %v3766_v6 = vrot.slane %v690_v59, 12  ;;  %v879_v26 = vsel %vm7201_vm13, %v875_v2, %v841_v40  ;;  %v831_v12 = vrot.slane %v735_v35, 6  ;;  %vm7202_vm2 = vmmov %vm7200_vm8 }
 0x2e5   :  { %v696_v51 = vrot.slane %v691_v42, 6  ;;  %v706_v13 = vsel %vm4616_vm15, %v4857_v1, %v698_v0  ;;  %v864_v57 = vsel %vm7202_vm2, %v860_v58, %v3767_v36  ;;  %v771_v46 = vpop.permute.xlu1 %770  ;;  %vm7203_vm0 = vmmov %vm7202_vm2  ;;  %vm7205_vm8 = vcmp.lt.s32.totalorder %v4471_v7, 112 }
 0x2e6   :  { %v810_v52 = vrot.slane %v706_v13, 6  ;;  %v862_v55 = vsel %vm7203_vm0, %v858_v62, %v3766_v6  ;;  %vm7204_vm10 = vmmov %vm7201_vm13  ;;  %v775_v5 = vsel %vm7205_vm8, %v771_v46, %v765_v60  ;;  %v769_v1 = vpop.permute.xlu0 %768 }
 0x2e7   :  { %v704_v21 = vsel %vm4605_vm12, %v4862_v17, %v696_v51  ;;  %v869_v22 = vsel %vm7204_vm10, %v864_v57, %v819_v45  ;;  %vm7206_vm13 = vmmov %vm7204_vm10  ;;  %v783_v27 = vrot.slane %v775_v5, 6 }
 0x2e8   :  { %v808_v56 = vrot.slane %v704_v21, 6  ;;  %v867_v40 = vsel %vm7206_vm13, %v862_v55, %v817_v4  ;;  %vm7207_vm2 = vmmov %vm7203_vm0  ;;  %vm7209_vm0 = vcmask 1041408  }
 0x2e9   :  { %v877_v58 = vsel %vm7207_vm2, %v4940_v8, %v831_v12  ;;  %vm7208_vm11 = vmmov %vm7205_vm8  ;;  %v3872_v18 = vpack.c.bf16 %v879_v26, %v867_v40  ;;  %v859_v62 = vsel %vm7209_vm0, %v798_v50, %v666_v61 }
 0x2ea   :  { %v773_v17 = vsel %vm7208_vm11, %v767_v11, %v769_v1  ;;  %v881_v35 = vsel %vm7204_vm10, %v877_v58, %v843_v48  ;;  %vm7210_vm15 = vmmov %vm7207_vm2  ;;  %v863_v61 = vsel %vm7207_vm2, %v859_v62, %v810_v52 }
 0x2eb   :  { %v781_v45 = vrot.slane %v773_v17, 6  ;;  %v861_v36 = vsel %vm7210_vm15, %v857_v3, %v808_v56  ;;  %vm7211_vm8 = vmmov %vm7207_vm2  ;;  %3873 = vmatprep.subr.bf16.mxu0 %v3872_v18  ;;  %v3876_v4 = vpack.c.bf16 %v881_v35, %v869_v22 }
 0x2ec   :  { %v874_v41 = vsel %vm7211_vm8, %v4924_v63, %v3768_v34  ;;  %vm7212_vm13 = vmmov %vm7204_vm10  ;;  %vm7217_vm8 = vcmask 1041408  }
 0x2ed   :  { %v866_v8 = vsel %vm7212_vm13, %v861_v36, %v816_v9  ;;  %vm7213_vm11 = vmmov %vm7204_vm10  ;;  %v789_v43 = vsel %vm4620_vm1, %v4867_v38, %v781_v45  ;;  %3877 = vmatprep.subr.bf16.mxu1 %v3876_v4  ;;  %v791_v9 = vsel %vm4612_vm14, %v4873_v47, %v783_v27  ;;  %v530_v38 = vld [vmem:[%s7040_s1 + $0x4] sm:$0xff]  ;;  %vm7090_vm13 = vcmask 146432  }
 0x2ee   :  { %v878_v0 = vsel %vm7213_vm11, %v874_v41, %v3770_v44  ;;  %vm7214_vm0 = vmmov %vm7204_vm10  ;;  %v853_v44 = vrot.slane %v789_v43, 2  ;;  %vm7218_vm11 = vcmp.lt.s32.totalorder %v4471_v7, 112 }
 0x2ef   :  { %v3874_v50 = vpack.c.bf16 %v878_v0, %v866_v8  ;;  %v868_v48 = vsel %vm7214_vm0, %v863_v61, %v818_v37  ;;  %vm7215_vm15 = vmmov %vm7207_vm2  ;;  %v855_v37 = vrot.slane %v791_v9, 2  ;;  %v774_v39 = vsel %vm7218_vm11, %v765_v60, %v767_v11 }
 0x2f0   :  { %v876_v63 = vsel %vm7215_vm15, %v4913_v49, %v3769_v19  ;;  %vm7216_vm10 = vmmov %vm7214_vm0  ;;  %v531_v49 = vld [vmem:[%s7040_s1 + $0xc] sm:$0xf] }
 0x2f1   :  { %v880_v30 = vsel %vm7216_vm10, %v876_v63, %v3771_v54  ;;  %3875 = vmatpush1.bf16.msra.mxu0 %v3874_v50  ;;  %vm7219_vm2 = vmmov %vm7217_vm8 }
 0x2f2   :  { %v3878_v25 = vpack.c.bf16 %v880_v30, %v868_v48  ;;  %3774 = vmatprep.subr.msk.mxu0 %vm7217_vm8, %v853_v44  ;;  %vm7220_vm0 = vmmov %vm7219_vm2  ;;  %vm7235_vm8 = vcmp.lt.s32.totalorder %v4471_v7, 1 }
 0x2f3   :  { %vm7221_vm15 = vmmov %vm7218_vm11 }
 0x2f4   :  { %3879 = vmatpush1.bf16.msra.mxu1 %v3878_v25  ;;  %v772_v47 = vsel %vm7221_vm15, %v769_v1, %v771_v46  ;;  %vm7222_vm10 = vmmov %vm7220_vm0 }
 0x2f5   :  { %3778 = vmatprep.subr.msk.mxu1 %vm7219_vm2, %v855_v37  ;;  %3775 = vmatpush1.msk.msra.mxu0 %vm7220_vm0, %v774_v39  ;;  %vm7236_vm11 = vmmov %vm7235_vm8  ;;  %vm7237_vm2 = vcmp.lt.s32.totalorder %v4471_v7, 127 }
 0x2f6   :  { %3776 = vmatmul.mubr.msk.f32.vlgmr.msra.gmra.mrb[2].mxu0 %vm7090_vm13, %v530_v38  ;;  %vm7238_vm0 = vmmov %vm7235_vm8 }
 0x2f7   :  { %967 = vmatprep.mubr.f32.mxu0 %v7054_v53  ;;  %vm7239_vm15 = vmmov %vm7238_vm0 }
 0x2f8   :  { %3779 = vmatpush1.msk.msra.mxu1 %vm7222_vm10, %v772_v47  ;;  %vm7240_vm10 = vmmov %vm7238_vm0 }
 0x2f9   :  { %3780 = vmatmul.mubr.msk.f32.vlgmr.msra.gmra.mrb[2].mxu1 %vm7090_vm13, %v530_v38 }
 0x2fa   :  { %1044 = vmatprep.mubr.f32.mxu1 %v7054_v53  ;;  %3777 = vmatmul.mubr.msk.f32.gmra.mrb[4].mxu0 %vm7090_vm13, %v531_v49 }
 0x2fb   :  { %1475 = vmatprep.mubr.f32.mxu0 %v7054_v53 }
 0x2fd   :  { %3781 = vmatmul.mubr.msk.f32.gmra.mrb[4].mxu1 %vm7090_vm13, %v531_v49  ;;  %vm7285_vm13 = vcmp.lt.s32.totalorder %v4471_v7, 16 }
 0x2fe   :  { %1546 = vmatprep.mubr.f32.mxu1 %v7054_v53 }
 0x3c9   :  { %v5056_v54 = vpop.f32.mrb[2].mxu0 }
 0x3ca   :  { %v5058_v19 = vpop.f32.mrb[3].mxu0  ;;  %v5061_v34 = vrot.slane %v5056_v54, 4  ;;  %v5112_v52 = vrot.slane %v5056_v54, 6 }
 0x3cb   :  { %v5066_v59 = vrot.slane %v5058_v19, 4  ;;  %v5131_v22 = vrot.slane %v5058_v19, 6 }
 0x3cc   :  { %7223 = vst [vmem:[#allocation10_spill] sm:$0xff] %v5061_v34  ;;  %v5063_v11 = vpop.f32.mrb[2].mxu1  ;;  %1096 = vrot.lane.b32.xlu0 %v5061_v34, %s4415_s13  ;;  %1057 = vst [vmem:[%s7041_s2] sm:$0xf0] %v5061_v34 }
 0x3cd   :  { %7224 = vst [vmem:[#allocation11_spill] sm:$0xff] %v5066_v59  ;;  %v5069_v42 = vrot.slane %v5063_v11, 4  ;;  %v5071_v60 = vpop.f32.mrb[3].mxu1  ;;  %1058 = vst [vmem:[%s7041_s2 + $0x8] sm:$0xf0] %v5066_v59  ;;  %v5086_v6 = vpop.f32.mrb[4].mxu0  ;;  %v4053_v55 = vpack.i.bf16 %v5066_v59, %v5061_v34  ;;  %v4063_v5 = vpack.i.bf16 %v5131_v22, %v5112_v52 }
 0x3ce   :  { %v5080_v51 = vrot.slane %v5071_v60, 4  ;;  %7227 = vst [vmem:[#allocation14_spill] sm:$0xff] %v5086_v6  ;;  %v5092_v2 = vpop.f32.mrb[5].mxu0  ;;  %7231 = vst [vmem:[#allocation18_spill] sm:$0xff] %v5112_v52  ;;  %v5119_v21 = vrot.slane %v5063_v11, 6  ;;  %v5122_v46 = vrot.slane %v5071_v60, 6 }
 0x3cf   :  { %7225 = vst [vmem:[#allocation12_spill] sm:$0xff] %v5069_v42  ;;  %3782 = vst [vmem:[%s7041_s2 + $0x20] sm:$0xf0] %v5069_v42  ;;  %v4103_v12 = vpack.i.bf16 %v5092_v2, %v5086_v6 }
 0x3d0   :  { %7226 = vst [vmem:[#allocation13_spill] sm:$0xff] %v5080_v51  ;;  %7228 = vst [vmem:[#allocation15_spill] sm:$0xff] %v5092_v2  ;;  %v4058_v3 = vpack.i.bf16 %v5080_v51, %v5069_v42  ;;  %v5100_v13 = vpop.f32.mrb[4].mxu1  ;;  %1100 = vrot.lane.b32.xlu0 %v5069_v42, %s4415_s13  ;;  %v4068_v56 = vpack.i.bf16 %v5122_v46, %v5119_v21 }
 0x3d1   :  { %3783 = vst [vmem:[%s7041_s2 + $0x28] sm:$0xf0] %v5080_v51  ;;  %7229 = vst [vmem:[#allocation16_spill] sm:$0xff] %v5100_v13  ;;  %v5104_v26 = vpop.f32.mrb[5].mxu1 }
 0x3d2   :  { %7230 = vst [vmem:[#allocation17_spill] sm:$0xff] %v5104_v26  ;;  %4059 = vrot.lane.b32.xlu1 %v4058_v3, %s4416_s0  ;;  %v4113_v57 = vpack.i.bf16 %v5104_v26, %v5100_v13  ;;  %7232 = vst [vmem:[#allocation19_spill] sm:$0xff] %v5119_v21 }
 0x3d3   :  { %7233 = vst [vmem:[#allocation20_spill] sm:$0xff] %v5122_v46  ;;  %7234 = vst [vmem:[#allocation21_spill] sm:$0xff] %v5131_v22 }
 0x3d4   :  { %1594 = vrot.lane.b32.xlu0 %v5112_v52, %s4415_s13 }
 0x3d6   :  { %1098 = vrot.lane.b32.xlu1 %v5066_v59, %s4415_s13 }
 0x3d8   :  { %1598 = vrot.lane.b32.xlu0 %v5119_v21, %s4415_s13 }
 0x3da   :  { %1102 = vrot.lane.b32.xlu1 %v5080_v51, %s4415_s13 }
 0x3dc   :  { %4054 = vrot.lane.b32.xlu0 %v4053_v55, %s4416_s0 }
 0x3de   :  { %4069 = vrot.lane.b32.xlu1 %v4068_v56, %s4416_s0 }
 0x3e0   :  { %4064 = vrot.lane.b32.xlu0 %v4063_v5, %s4416_s0 }
 0x3e2   :  { %1596 = vrot.lane.b32.xlu1 %v5131_v22, %s4415_s13 }
 0x3e4   :  { %4074 = vrot.lane.b32.xlu0 %v4053_v55, %s4417_s14 }
 0x3e6   :  { %1600 = vrot.lane.b32.xlu1 %v5122_v46, %s4415_s13 }
 0x3e8   :  { %4084 = vrot.lane.b32.xlu0 %v4053_v55, %s4418_s15 }
 0x3ea   :  { %4079 = vrot.lane.b32.xlu1 %v4058_v3, %s4417_s14 }
 0x3ec   :  { %4094 = vrot.lane.b32.xlu0 %v4063_v5, %s4417_s14 }
 0x3ee   :  { %4089 = vrot.lane.b32.xlu1 %v4058_v3, %s4418_s15 }
 0x3f0   :  { %2088 = vrot.lane.b32.xlu0 %v5086_v6, %s4415_s13 }
 0x3f2   :  { %4099 = vrot.lane.b32.xlu1 %v4068_v56, %s4417_s14 }
 0x3f4   :  { %2092 = vrot.lane.b32.xlu0 %v5100_v13, %s4415_s13 }
 0x3f6   :  { %4114 = vrot.lane.b32.xlu1 %v4113_v57, %s4416_s0 }
 0x3f8   :  { %4104 = vrot.lane.b32.xlu0 %v4103_v12, %s4416_s0 }
 0x3fa   :  { %2090 = vrot.lane.b32.xlu1 %v5092_v2, %s4415_s13 }
 0x3fc   :  { %4109 = vrot.lane.b32.xlu0 %v4063_v5, %s4418_s15 }
 0x3fe   :  { %2094 = vrot.lane.b32.xlu1 %v5104_v26, %s4415_s13 }
 0x400   :  { %4124 = vrot.lane.b32.xlu0 %v4103_v12, %s4417_s14 }
 0x402   :  { %4119 = vrot.lane.b32.xlu1 %v4068_v56, %s4418_s15 }
 0x404   :  { %4134 = vrot.lane.b32.xlu0 %v4103_v12, %s4418_s15 }
 0x406   :  { %4129 = vrot.lane.b32.xlu1 %v4113_v57, %s4417_s14 }
 0x40a   :  { %4139 = vrot.lane.b32.xlu1 %v4113_v57, %s4418_s15 }
 0x43e   :  { %v1097_v1 = vpop.permute.xlu0 %1096 }
 0x442   :  { %v1101_v40 = vpop.permute.xlu0 %1100 }
 0x444   :  { %v4060_v58 = vpop.permute.xlu1 %4059 }
 0x445   :  { %v4062_v63 = vunpack.i.h.bf16 %v4060_v58  ;;  %v4061_v43 = vunpack.i.l.bf16 %v4060_v58 }
 0x446   :  { %v5166_v27 = vpop.permute.xlu0 %1594 }
 0x447   :  { %v1076_v25 = vsel %vm7235_vm8, %v4061_v43, %v4062_v63  ;;  %vm7241_vm8 = vmmov %vm7237_vm2 }
 0x448   :  { %v1099_v17 = vpop.permute.xlu1 %1098  ;;  %v1087_v47 = vrot.slane %v1076_v25, 4 }
 0x44a   :  { %v5168_v18 = vpop.permute.xlu0 %1598 }
 0x44c   :  { %v1103_v62 = vpop.permute.xlu1 %1102 }
 0x44d   :  { %v1104_v57 = vsel %vm7237_vm2, %v1101_v40, %v1103_v62 }
 0x44e   :  { %v4055_v45 = vpop.permute.xlu0 %4054 }
 0x44f   :  { %v4057_v9 = vunpack.i.h.bf16 %v4055_v45  ;;  %v4056_v37 = vunpack.i.l.bf16 %v4055_v45 }
 0x450   :  { %v5170_v35 = vpop.permute.xlu1 %4069 }
 0x451   :  { %v1077_v49 = vsel %vm7236_vm11, %v4057_v9, %v4061_v43  ;;  %v1078_v55 = vsel %vm7238_vm0, %v4056_v37, %v4057_v9  ;;  %v1079_v56 = vsel %vm7239_vm15, %v4062_v63, %v4056_v37  ;;  %v1105_v43 = vsel %vm7241_vm8, %v1099_v17, %v1101_v40  ;;  %vm7242_vm11 = vmmov %vm7237_vm2 }
 0x452   :  { %v5172_v36 = vpop.permute.xlu0 %4064  ;;  %v1086_v58 = vrot.slane %v1077_v49, 4  ;;  %v1107_v9 = vsel %vm7237_vm2, %v1103_v62, %v1097_v1  ;;  %v5211_v63 = vsel %vm4506_vm6, %v5071_v60, %v1087_v47  ;;  %v1114_v37 = vrot.slane %v1104_v57, 4  ;;  %vm7243_vm15 = vmmov %vm7238_vm0 }
 0x453   :  { %v1084_v49 = vrot.slane %v1079_v56, 4  ;;  %v1085_v40 = vrot.slane %v1078_v55, 4  ;;  %vm7247_vm8 = vmmov %vm7237_vm2  ;;  %v1113_v22 = vrot.slane %v1105_v43, 4 }
 0x454   :  { %v5174_v41 = vpop.permute.xlu1 %1596 }
 0x456   :  { %v5176_v4 = vpop.permute.xlu0 %4074 }
 0x458   :  { %v5178_v8 = vpop.permute.xlu1 %1600 }
 0x45a   :  { %v5180_v0 = vpop.permute.xlu0 %4084 }
 0x45c   :  { %v5182_v61 = vpop.permute.xlu1 %4079 }
 0x45e   :  { %v5184_v50 = vpop.permute.xlu0 %4094 }
 0x460   :  { %v5186_v48 = vpop.permute.xlu1 %4089 }
 0x462   :  { %v2089_v30 = vpop.permute.xlu0 %2088 }
 0x464   :  { %v5188_v44 = vpop.permute.xlu1 %4099 }
 0x466   :  { %v2093_v38 = vpop.permute.xlu0 %2092 }
 0x468   :  { %v4115_v39 = vpop.permute.xlu1 %4114 }
 0x469   :  { %v4117_v3 = vunpack.i.h.bf16 %v4115_v39  ;;  %v4116_v12 = vunpack.i.l.bf16 %v4115_v39  ;;  %v1106_v39 = vsel %vm7242_vm11, %v1097_v1, %v1099_v17  ;;  %vm7248_vm11 = vmmov %vm7237_vm2 }
 0x46a   :  { %v4105_v5 = vpop.permute.xlu0 %4104 }
 0x46b   :  { %v2080_v45 = vsel %vm7240_vm10, %v4116_v12, %v4117_v3  ;;  %v4107_v53 = vunpack.i.h.bf16 %v4105_v5  ;;  %v4106_v21 = vunpack.i.l.bf16 %v4105_v5  ;;  %vm7244_vm10 = vmmov %vm7238_vm0 }
 0x46c   :  { %v2091_v25 = vpop.permute.xlu1 %2090  ;;  %v5227_v62 = vsel %vm4506_vm6, %v5104_v26, %v2080_v45  ;;  %v4072_v45 = vunpack.i.h.bf16 %v5170_v35 }
 0x46d   :  { %v2081_v52 = vsel %vm7238_vm0, %v4107_v53, %v4116_v12  ;;  %v2082_v5 = vsel %vm7243_vm15, %v4106_v21, %v4107_v53  ;;  %v2083_v17 = vsel %vm7244_vm10, %v4117_v3, %v4106_v21  ;;  %7246 = vst [vmem:[#allocation23_spill] sm:$0xff] %v5227_v62  ;;  %v2097_v47 = vsel %vm7247_vm8, %v2091_v25, %v2093_v38  ;;  %vm7249_vm0 = vmmov %vm7237_vm2 }
 0x46e   :  { %v5222_v1 = vsel %vm4502_vm5, %v5100_v13, %v2081_v52  ;;  %v2098_v53 = vsel %vm7248_vm11, %v2089_v30, %v2091_v25  ;;  %v5240_v52 = vsel %vm4502_vm5, %v5063_v11, %v1086_v58  ;;  %v5249_v55 = vsel %vm4494_vm3, %v5086_v6, %v2083_v17 }
 0x46f   :  { %7245 = vst [vmem:[#allocation22_spill] sm:$0xff] %v5222_v1  ;;  %v5235_v21 = vpack.i.bf16 %v5227_v62, %v5222_v1  ;;  %7250 = vst [vmem:[#allocation24_spill] sm:$0xff] %v5249_v55  ;;  %v5254_v56 = vsel %vm4498_vm4, %v5092_v2, %v2082_v5  ;;  %v4067_v58 = vunpack.i.h.bf16 %v5172_v36  ;;  %v4071_v25 = vunpack.i.l.bf16 %v5170_v35 }
 0x470   :  { %v2095_v12 = vpop.permute.xlu1 %2094  ;;  %7251 = vst [vmem:[#allocation25_spill] sm:$0xff] %v5254_v56  ;;  %v5273_v5 = vpack.i.bf16 %v5254_v56, %v5249_v55  ;;  %v1130_v17 = vrot.slane %v5240_v52, 4  ;;  %vm7253_vm15 = vnez %v7151_v20  ;;  %vm7254_vm10 = vnez %v7169_v32 }
 0x471   :  { %v2096_v3 = vsel %vm7237_vm2, %v2093_v38, %v2095_v12  ;;  %v2099_v57 = vsel %vm7249_vm0, %v2095_v12, %v2089_v30  ;;  %4149 = vrot.lane.b32.xlu1 %v5235_v21, %s4418_s15  ;;  %v5279_v12 = vsel %vm4494_vm3, %v5056_v54, %v1084_v49  ;;  %v5289_v35 = vsel %vm7254_vm10, %v5092_v2, %v2097_v47 }
 0x472   :  { %v5261_v38 = vsel %vm4520_vm9, %v5100_v13, %v2096_v3  ;;  %v5266_v30 = vsel %vm4512_vm7, %v5104_v26, %v2099_v57  ;;  %v5284_v3 = vsel %vm7253_vm15, %v5086_v6, %v2098_v53  ;;  %7255 = vst [vmem:[#allocation27_spill] sm:$0xff] %v5289_v35  ;;  %v5296_v62 = vsel %vm4498_vm4, %v5058_v19, %v1085_v40 }
 0x473   :  { %7252 = vst [vmem:[#allocation26_spill] sm:$0xff] %v5266_v30  ;;  %v4158_v57 = vpack.i.bf16 %v5266_v30, %v5261_v38  ;;  %v1115_v49 = vrot.slane %v1107_v9, 4  ;;  %v4066_v56 = vunpack.i.l.bf16 %v5172_v36  ;;  %4144 = vrot.lane.b32.xlu0 %v5273_v5, %s4418_s15  ;;  %v1112_v53 = vrot.slane %v1106_v39, 4 }
 0x474   :  { %vm7256_vm8 = vcmp.lt.s32.totalorder %v4471_v7, 1  ;;  %v1131_v47 = vrot.slane %v5211_v63, 4  ;;  %v4153_v42 = vpack.i.bf16 %v5289_v35, %v5284_v3  ;;  %v1128_v40 = vrot.slane %v5279_v12, 4 }
 0x475   :  { %v1575_v46 = vsel %vm7256_vm8, %v4067_v58, %v4071_v25  ;;  %4159 = vrot.lane.b32.xlu1 %v4158_v57, %s4417_s14  ;;  %v1129_v9 = vrot.slane %v5296_v62, 4  ;;  %vm7257_vm11 = vmmov %vm7256_vm8  ;;  %v5314_v39 = vsel %vm4520_vm9, %v5063_v11, %v1114_v37  ;;  %v5324_v59 = vsel %vm4512_vm7, %v5071_v60, %v1115_v49 }
 0x476   :  { %v1574_v36 = vsel %vm7257_vm11, %v4071_v25, %v4072_v45  ;;  %v4168_v34 = vpack.i.bf16 %v1131_v47, %v1130_v17  ;;  %v1584_v57 = vrot.slane %v1575_v46, 2  ;;  %vm7258_vm2 = vmmov %vm7256_vm8  ;;  %v5330_v37 = vsel %vm7253_vm15, %v5056_v54, %v1112_v53 }
 0x477   :  { %v1576_v43 = vsel %vm7258_vm2, %v4066_v56, %v4067_v58  ;;  %vm7259_vm0 = vmmov %vm7258_vm2  ;;  %4154 = vrot.lane.b32.xlu0 %v4153_v42, %s4417_s14  ;;  %v1585_v46 = vrot.slane %v1574_v36, 2  ;;  %v4163_v25 = vpack.i.bf16 %v1129_v9, %v1128_v40  ;;  %v1198_v58 = vrot.slane %v5314_v39, 4 }
 0x478   :  { %v1577_v51 = vsel %vm7259_vm0, %v4072_v45, %v4066_v56  ;;  %v5336_v42 = vsel %vm7254_vm10, %v5058_v19, %v1113_v22  ;;  %v1583_v45 = vrot.slane %v1576_v43, 2  ;;  %v1199_v17 = vrot.slane %v5324_v59, 4 }
 0x479   :  { %4169 = vrot.lane.b32.xlu1 %v4168_v34, %s4417_s14  ;;  %v1582_v56 = vrot.slane %v1577_v51, 2  ;;  %v5343_v49 = vsel %vm4502_vm5, %v5063_v11, %v1584_v57  ;;  %vm7261_vm8 = vcmp.lt.s32.totalorder %v4471_v7, 127  ;;  %v1196_v22 = vrot.slane %v5330_v37, 4 }
 0x47a   :  { %7260 = vst [vmem:[#allocation28_spill] sm:$0xff] %v5343_v49  ;;  %v1602_v53 = vsel %vm7261_vm8, %v5168_v18, %v5178_v8  ;;  %vm7262_vm11 = vmmov %vm7261_vm8  ;;  %v1197_v47 = vrot.slane %v5336_v42, 4  ;;  %v5359_v40 = vsel %vm4506_vm6, %v5071_v60, %v1585_v46  ;;  %v4188_v9 = vpack.i.bf16 %v1199_v17, %v1198_v58 }
 0x47b   :  { %4164 = vrot.lane.b32.xlu0 %v4163_v25, %s4417_s14  ;;  %v1605_v51 = vsel %vm7262_vm11, %v5178_v8, %v5166_v27  ;;  %v1628_v36 = vrot.slane %v5343_v49, 6  ;;  %v5365_v57 = vsel %vm4494_vm3, %v5056_v54, %v1582_v56  ;;  %vm7263_vm2 = vmmov %vm7261_vm8  ;;  %v1612_v46 = vrot.slane %v1602_v53, 2 }
 0x47c   :  { %v1603_v8 = vsel %vm7263_vm2, %v5174_v41, %v5168_v18  ;;  %vm7264_vm0 = vmmov %vm7263_vm2  ;;  %v1613_v28 = vrot.slane %v1605_v51, 2  ;;  %v1629_v56 = vrot.slane %v5359_v40, 6  ;;  %v1626_v29 = vrot.slane %v5365_v57, 6 }
 0x47d   :  { %4179 = vrot.lane.b32.xlu1 %v4168_v34, %s4418_s15  ;;  %v5370_v34 = vsel %vm4498_vm4, %v5058_v19, %v1583_v45  ;;  %v1604_v43 = vsel %vm7264_vm0, %v5166_v27, %v5174_v41  ;;  %v4183_v45 = vpack.i.bf16 %v1197_v47, %v1196_v22  ;;  %v1611_v18 = vrot.slane %v1603_v8, 2 }
 0x47e   :  { %v1627_v24 = vrot.slane %v5370_v34, 6  ;;  %v1610_v23 = vrot.slane %v1604_v43, 2  ;;  %v4198_v49 = vpack.i.bf16 %v1629_v56, %v1628_v36  ;;  %v5389_v27 = vsel %vm4520_vm9, %v5063_v11, %v1612_v46 }
 0x47f   :  { %4174 = vrot.lane.b32.xlu0 %v4163_v25, %s4418_s15  ;;  %v5394_v41 = vsel %vm4512_vm7, %v5071_v60, %v1613_v28  ;;  %v1696_v53 = vrot.slane %v5389_v27, 6  ;;  %v5407_v36 = vsel %vm7254_vm10, %v5058_v19, %v1611_v18  ;;  %v4081_v8 = vunpack.i.l.bf16 %v5182_v61  ;;  %vm7286_vm7 = vmmov %vm7285_vm13 }
 0x480   :  { %7265 = vst [vmem:[#allocation29_spill] sm:$0xff] %v5394_v41  ;;  %v4193_v25 = vpack.i.bf16 %v1627_v24, %v1626_v29  ;;  %v1697_v51 = vrot.slane %v5394_v41, 6  ;;  %7266 = vst [vmem:[#allocation30_spill] sm:$0xff] %v5407_v36  ;;  %v1695_v28 = vrot.slane %v5407_v36, 6  ;;  %v4076_v43 = vunpack.i.l.bf16 %v5176_v4 }
 0x481   :  { %4189 = vrot.lane.b32.xlu1 %v4188_v9, %s4417_s14  ;;  %v5402_v9 = vsel %vm7253_vm15, %v5056_v54, %v1610_v23  ;;  %v4077_v46 = vunpack.i.h.bf16 %v5176_v4  ;;  %v4102_v56 = vunpack.i.h.bf16 %v5188_v44  ;;  %vm7273_vm8 = vcmp.lt.s32.totalorder %v4471_v7, 16  ;;  %v5480_v4 = vpop.permute.xlu1 %4119 }
 0x482   :  { %v1694_v24 = vrot.slane %v5402_v9, 6  ;;  %v4218_v29 = vpack.i.bf16 %v1697_v51, %v1696_v53  ;;  %vm7274_vm11 = vmmov %vm7273_vm8  ;;  %v1850_v20 = vrot.slane %v5402_v9, 4 }
 0x483   :  { %4184 = vrot.lane.b32.xlu0 %v4183_v45, %s4417_s14  ;;  %v4101_v45 = vunpack.i.l.bf16 %v5188_v44  ;;  %vm7275_vm2 = vmmov %vm7273_vm8 }
 0x484   :  { %v4213_v23 = vpack.i.bf16 %v1695_v28, %v1694_v24  ;;  %vm7276_vm0 = vmmov %vm7275_vm2 }
 0x485   :  { %4199 = vrot.lane.b32.xlu1 %v4198_v49, %s4417_s14 }
 0x487   :  { %4194 = vrot.lane.b32.xlu0 %v4193_v25, %s4417_s14 }
 0x489   :  { %4209 = vrot.lane.b32.xlu1 %v4198_v49, %s4418_s15 }
 0x48b   :  { %4204 = vrot.lane.b32.xlu0 %v4193_v25, %s4418_s15  ;;  %v4087_v25 = vunpack.i.h.bf16 %v5180_v0 }
 0x48d   :  { %4219 = vrot.lane.b32.xlu1 %v4218_v29, %s4417_s14 }
 0x48f   :  { %4214 = vrot.lane.b32.xlu0 %v4213_v23, %s4417_s14 }
 0x491   :  { %1290 = vrot.lane.b32.xlu1 %v1197_v47, %s4418_s15  ;;  %v4082_v47 = vunpack.i.h.bf16 %v5182_v61  ;;  %v4097_v61 = vunpack.i.h.bf16 %v5184_v50 }
 0x493   :  { %1288 = vrot.lane.b32.xlu0 %v1196_v22, %s4418_s15  ;;  %v1175_v18 = vsel %vm7273_vm8, %v4082_v47, %v4076_v43  ;;  %v1671_v44 = vsel %vm7275_vm2, %v4097_v61, %v4101_v45  ;;  %vm7277_vm8 = vmmov %vm7276_vm0 }
 0x494   :  { %v1180_v29 = vrot.slane %v1175_v18, 4  ;;  %v4092_v18 = vunpack.i.h.bf16 %v5186_v48  ;;  %v1680_v32 = vrot.slane %v1671_v44, 2  ;;  %vm7279_vm2 = vmmov %vm7276_vm0 }
 0x495   :  { %1294 = vrot.lane.b32.xlu1 %v1199_v17, %s4418_s15  ;;  %v5431_v17 = vrot.slane %v5100_v13, 2 }
 0x497   :  { %1292 = vrot.lane.b32.xlu0 %v1198_v58, %s4418_s15  ;;  %7267 = vst [vmem:[#allocation31_spill] sm:$0xff] %v5431_v17  ;;  %v5434_v58 = vrot.slane %v5104_v26, 2 }
 0x499   :  { %1788 = vrot.lane.b32.xlu1 %v1695_v28, %s4418_s15  ;;  %7268 = vst [vmem:[#allocation32_spill] sm:$0xff] %v5434_v58  ;;  %v5448_v49 = vpack.i.bf16 %v5434_v58, %v5431_v17  ;;  %v5478_v28 = vpop.permute.xlu0 %4109 }
 0x49b   :  { %1786 = vrot.lane.b32.xlu0 %v1694_v24, %s4418_s15  ;;  %7271 = vst [vmem:[#allocation35_spill] sm:$0xff] %v5448_v49  ;;  %v4096_v24 = vunpack.i.l.bf16 %v5184_v50  ;;  %v5504_v50 = vsel %vm7279_vm2, %v4081_v8, %v4082_v47 }
 0x49d   :  { %1792 = vrot.lane.b32.xlu1 %v1697_v51, %s4418_s15  ;;  %v4086_v51 = vunpack.i.l.bf16 %v5180_v0  ;;  %v1673_v23 = vsel %vm7276_vm0, %v4102_v56, %v4096_v24  ;;  %vm7280_vm0 = vnez %v7179_v15  ;;  %v4125_v47 = vpop.permute.xlu0 %4124 }
 0x49e   :  { %v1678_v33 = vrot.slane %v1673_v23, 2 }
 0x49f   :  { %1790 = vrot.lane.b32.xlu0 %v1696_v53, %s4418_s15  ;;  %v1173_v53 = vsel %vm7274_vm11, %v4077_v46, %v4081_v8  ;;  %vm7278_vm11 = vcmp.lt.s32.totalorder %v4471_v7, 112  ;;  %v4130_v8 = vpop.permute.xlu1 %4129 }
 0x4a0   :  { %v1182_v0 = vrot.slane %v1173_v53, 4 }
 0x4a1   :  { %4229 = vrot.lane.b32.xlu1 %v5235_v21, %s4417_s14  ;;  %v5441_v21 = vrot.slane %v5086_v6, 2  ;;  %v4135_v31 = vpop.permute.xlu0 %4134 }
 0x4a2   :  { %v5515_v44 = vsel %vm7280_vm0, %v5063_v11, %v1182_v0  ;;  %v5533_v0 = vsel %vm7285_vm13, %v4096_v24, %v4097_v61  ;;  %v4137_v58 = vunpack.i.h.bf16 %v4135_v31  ;;  %v4136_v17 = vunpack.i.l.bf16 %v4135_v31 }
 0x4a3   :  { %4224 = vrot.lane.b32.xlu0 %v5273_v5, %s4417_s14  ;;  %7269 = vst [vmem:[#allocation33_spill] sm:$0xff] %v5441_v21  ;;  %v5444_v5 = vrot.slane %v5092_v2, 2  ;;  %v4140_v23 = vpop.permute.xlu1 %4139 }
 0x4a5   :  { %2186 = vrot.lane.b32.xlu1 %v5289_v35, %s4418_s15  ;;  %7270 = vst [vmem:[#allocation34_spill] sm:$0xff] %v5444_v5  ;;  %v5456_v22 = vpack.i.bf16 %v5444_v5, %v5441_v21 }
 0x4a7   :  { %2184 = vrot.lane.b32.xlu0 %v5284_v3, %s4418_s15  ;;  %7272 = vst [vmem:[#allocation36_spill] sm:$0xff] %v5456_v22 }
 0x4a9   :  { %2190 = vrot.lane.b32.xlu1 %v5266_v30, %s4418_s15 }
 0x4ab   :  { %2188 = vrot.lane.b32.xlu0 %v5261_v38, %s4418_s15 }
 0x4ad   :  { %4239 = vrot.lane.b32.xlu1 %v5448_v49, %s4416_s0  ;;  %v5494_v49 = vsel %vm7278_vm11, %v4086_v51, %v4087_v25 }
 0x4af   :  { %4234 = vrot.lane.b32.xlu0 %v5456_v22, %s4416_s0 }
 0x4b1   :  { %2894 = vrot.lane.b32.xlu1 %v5444_v5, %s4415_s13  ;;  %v5488_v5 = vsel %vm7277_vm8, %v4076_v43, %v4077_v46  ;;  %vm7281_vm8 = vmmov %vm7278_vm11  ;;  %v4127_v46 = vunpack.i.h.bf16 %v4125_v47  ;;  %v4132_v43 = vunpack.i.h.bf16 %v4130_v8 }
 0x4b2   :  { %vm7282_vm11 = vmmov %vm7281_vm8 }
 0x4b3   :  { %2892 = vrot.lane.b32.xlu0 %v5441_v21, %s4415_s13  ;;  %v4091_v21 = vunpack.i.l.bf16 %v5186_v48  ;;  %v5509_v48 = vsel %vm4605_vm12, %v5056_v54, %v1180_v29  ;;  %vm7284_vm2 = vmmov %vm7281_vm8 }
 0x4b4   :  { %v5529_v22 = vsel %vm7284_vm2, %v4092_v18, %v4086_v51  ;;  %v5549_v51 = vsel %vm7280_vm0, %v5063_v11, %v1680_v32  ;;  %v4131_v32 = vunpack.i.l.bf16 %v4130_v8  ;;  %vm7291_vm13 = vmmov %vm7284_vm2  ;;  %v4142_v11 = vunpack.i.h.bf16 %v4140_v23 }
 0x4b5   :  { %v5520_v53 = vsel %vm7281_vm8, %v4087_v25, %v4091_v21  ;;  %v5525_v29 = vsel %vm7282_vm11, %v4091_v21, %v4092_v18  ;;  %v5537_v25 = vsel %vm7286_vm7, %v4101_v45, %v4102_v56  ;;  %v5544_v21 = vsel %vm4605_vm12, %v5056_v54, %v1678_v33  ;;  %7288 = vst [vmem:[#allocation39_spill] sm:$0xff] %v5549_v51  ;;  %vm7289_vm7 = vmmov %vm7284_vm2 }
 0x4b6   :  { %7283 = vst [vmem:[#allocation37_spill] sm:$0xff] %v5525_v29  ;;  %7287 = vst [vmem:[#allocation38_spill] sm:$0xff] %v5544_v21  ;;  %v1277_v24 = vrot.slane %v5520_v53, 4  ;;  %v4112_v56 = vunpack.i.h.bf16 %v5478_v28  ;;  %v4111_v45 = vunpack.i.l.bf16 %v5478_v28  ;;  %v1279_v18 = vrot.slane %v5529_v22, 4 }
 0x4b7   :  { %v4121_v28 = vunpack.i.l.bf16 %v5480_v4  ;;  %v4126_v22 = vunpack.i.l.bf16 %v4125_v47  ;;  %v2242_v33 = vrot.slane %v5261_v38, 6  ;;  %v4122_v53 = vunpack.i.h.bf16 %v5480_v4  ;;  %vm7297_vm9 = vmmov %vm7291_vm13 }
 0x4b8   :  { %v5568_v54 = vsel %vm7289_vm7, %v4111_v45, %v4112_v56  ;;  %v4141_v51 = vunpack.i.l.bf16 %v4140_v23  ;;  %vm7292_vm8 = vcmp.lt.s32.totalorder %v4471_v7, 16  ;;  %vm7294_vm11 = vcmask 1041408  }
 0x4b9   :  { %7290 = vst [vmem:[#allocation40_spill] sm:$0xff] %v5568_v54  ;;  %v1767_v29 = vsel %vm7291_vm13, %v4112_v56, %v4121_v28  ;;  %v5580_v8 = vsel %vm7292_vm8, %v4126_v22, %v4127_v46  ;;  %v5584_v4 = vsel %vm7294_vm11, %v5100_v13, %v2242_v33  ;;  %vm7295_vm2 = vmmov %vm7292_vm8  ;;  %v5593_v56 = vsel %vm7297_vm9, %v4121_v28, %v4122_v53 }
 0x4ba   :  { %7293 = vst [vmem:[#allocation41_spill] sm:$0xff] %v5580_v8  ;;  %v2129_v61 = vsel %vm7295_vm2, %v4127_v46, %v4131_v32  ;;  %vm7296_vm7 = vmmov %vm7295_vm2  ;;  %v1851_v33 = vrot.slane %v5407_v36, 4  ;;  %v1775_v47 = vrot.slane %v1767_v29, 2 }
 0x4bb   :  { %v2131_v31 = vsel %vm7296_vm7, %v4132_v43, %v4126_v22  ;;  %7298 = vst [vmem:[#allocation42_spill] sm:$0xff] %v5593_v56  ;;  %vm7299_vm13 = vmmov %vm7297_vm9  ;;  %v7321_v56 = vld [vmem:[#allocation12_spill] sm:$0xff] }
 0x4bc   :  { %v1769_v21 = vsel %vm7299_vm13, %v4122_v53, %v4111_v45  ;;  %vm7300_vm8 = vmmov %vm7295_vm2  ;;  %v2132_v45 = vsel %vm4605_vm12, %v5086_v6, %v2131_v31  ;;  %vm7311_vm13 = vcmask 1041408  }
 0x4bd   :  { %v5599_v23 = vsel %vm7300_vm8, %v4131_v32, %v4132_v43  ;;  %vm7302_vm11 = vmmov %vm7297_vm9  ;;  %v2134_v43 = vsel %vm7280_vm0, %v5100_v13, %v2129_v61  ;;  %v5620_v32 = vsel %vm4620_vm1, %v5058_v19, %v1277_v24  ;;  %v1777_v46 = vrot.slane %v1769_v21, 2  ;;  %v7310_v13 = vld [vmem:[#allocation11_spill] sm:$0xff] }
 0x4be   :  { %7301 = vst [vmem:[#allocation43_spill] sm:$0xff] %v5599_v23  ;;  %v5605_v22 = vsel %vm7302_vm11, %v4136_v17, %v4137_v58  ;;  %vm7303_vm2 = vmmov %vm7297_vm9  ;;  %v5636_v24 = vsel %vm4612_vm14, %v5071_v60, %v1279_v18  ;;  %v5638_v21 = vrot.slane %v2132_v45, 6  ;;  %v7312_v18 = vrot.slane %v5324_v59, 2  ;;  %v7313_v45 = vld [vmem:[#allocation13_spill] sm:$0xff] }
 0x4bf   :  { %v2177_v28 = vsel %vm7303_vm2, %v4137_v58, %v4141_v51  ;;  %vm7304_vm9 = vmmov %vm7303_vm2  ;;  %v5640_v58 = vrot.slane %v2134_v43, 6  ;;  %v7320_v23 = vrot.slane %v5314_v39, 2 }
 0x4c0   :  { %v2179_v29 = vsel %vm7304_vm9, %v4142_v11, %v4136_v17  ;;  %vm7305_vm7 = vmmov %vm7303_vm2  ;;  %v2181_v17 = vsel %vm4620_vm1, %v5092_v2, %v2177_v28  ;;  %7307 = vst [vmem:[#allocation45_spill] sm:$0xff] %v5638_v21  ;;  %v7309_v28 = vrot.slane %v5336_v42, 2 }
 0x4c1   :  { %v5628_v61 = vsel %vm7305_vm7, %v4141_v51, %v4142_v11  ;;  %7308 = vst [vmem:[#allocation46_spill] sm:$0xff] %v5640_v58  ;;  %v2183_v53 = vsel %vm4612_vm14, %v5104_v26, %v2179_v29  ;;  %vm7314_vm8 = vmmov %vm7311_vm13  ;;  %v5658_v21 = vrot.slane %v2181_v17, 2  ;;  %v7317_v58 = vld [vmem:[#allocation10_spill] sm:$0xff]  ;;  %v5679_v17 = vsel %vm4620_vm1, %v5058_v19, %v1775_v47  ;;  %v7327_v47 = vld [vmem:[#allocation20_spill] sm:$0xff] }
 0x4c2   :  { %7306 = vst [vmem:[#allocation44_spill] sm:$0xff] %v5628_v61  ;;  %v5650_v55 = vsel %vm7311_vm13, %v7310_v13, %v7309_v28  ;;  %v5656_v43 = vsel %vm7314_vm8, %v7313_v45, %v7312_v18  ;;  %vm7318_vm11 = vmmov %vm7314_vm8  ;;  %v5668_v13 = vrot.slane %v2183_v53, 2  ;;  %v7323_v45 = vld [vmem:[#allocation21_spill] sm:$0xff]  ;;  %v7326_v19 = vrot.slane %v5394_v41, 4 }
 0x4c3   :  { %7315 = vst [vmem:[#allocation11_spill] sm:$0xff] %v5658_v21  ;;  %vm7322_vm2 = vmmov %vm7314_vm8 }
 0x4c4   :  { %7319 = vst [vmem:[#allocation13_spill] sm:$0xff] %v5668_v13  ;;  %v5674_v18 = vsel %vm7322_vm2, %v7321_v56, %v7320_v23  ;;  %vm7324_vm9 = vmmov %vm7322_vm2  ;;  %v5690_v56 = vsel %vm4612_vm14, %v5071_v60, %v1777_v46  ;;  %v7335_v46 = vrot.slane %v5389_v27, 4 }
 0x4c5   :  { %v5683_v29 = vsel %vm7324_vm9, %v7323_v45, %v1851_v33  ;;  %7325 = vst [vmem:[#allocation10_spill] sm:$0xff] %v5690_v56  ;;  %vm7328_vm13 = vmmov %vm7322_vm2  ;;  %v7329_v33 = vld [vmem:[#allocation18_spill] sm:$0xff]  ;;  %v7341_v56 = vrot.slane %v5289_v35, 6 }
 0x4c6   :  { %v5696_v13 = vsel %vm7328_vm13, %v7327_v47, %v7326_v19  ;;  %vm7330_vm8 = vmmov %vm7322_vm2  ;;  %v7339_v47 = vld [vmem:[#allocation25_spill] sm:$0xff] }
 0x4c7   :  { %v5700_v45 = vsel %vm7330_vm8, %v7329_v33, %v1850_v20  ;;  %vm7333_vm2 = vmmov %vm7305_vm7  ;;  %v7340_v33 = vld [vmem:[#allocation23_spill] sm:$0xff] }
 0x4c8   :  { %7331 = vst [vmem:[#allocation12_spill] sm:$0xff] %v5700_v45  ;;  %vm7334_vm9 = vmmov %vm7333_vm2 }
 0x4e3   :  { %v4150_v8 = vpop.permute.xlu1 %4149 }
 0x4e4   :  { %v4152_v11 = vunpack.i.h.bf16 %v4150_v8  ;;  %v4151_v31 = vunpack.i.l.bf16 %v4150_v8  ;;  %v7316_v8 = vrot.slane %v5330_v37, 2 }
 0x4e5   :  { %v4145_v28 = vpop.permute.xlu0 %4144 }
 0x4e6   :  { %v5666_v1 = vsel %vm7318_vm11, %v7317_v58, %v7316_v8  ;;  %v2160_v53 = vsel %vm7305_vm7, %v4151_v31, %v4152_v11  ;;  %v4147_v58 = vunpack.i.h.bf16 %v4145_v28  ;;  %v4146_v8 = vunpack.i.l.bf16 %v4145_v28  ;;  %vm7332_vm11 = vmmov %vm7305_vm7 }
 0x4e7   :  { %v4160_v51 = vpop.permute.xlu1 %4159  ;;  %vm7337_vm7 = vmmov %vm7330_vm8  ;;  %v2254_v19 = vrot.slane %v2160_v53, 4  ;;  %vm7343_vm8 = vcmp.lt.s32.totalorder %v4471_v7, 16 }
 0x4e8   :  { %v4162_v23 = vunpack.i.h.bf16 %v4160_v51  ;;  %v4161_v61 = vunpack.i.l.bf16 %v4160_v51  ;;  %v2161_v28 = vsel %vm7332_vm11, %v4147_v58, %v4151_v31  ;;  %v2162_v21 = vsel %vm7333_vm2, %v4146_v8, %v4147_v58  ;;  %v7336_v51 = vld [vmem:[#allocation19_spill] sm:$0xff]  ;;  %vm7342_vm13 = vmmov %vm7337_vm7 }
 0x4e9   :  { %v2163_v60 = vsel %vm7334_vm9, %v4152_v11, %v4146_v8  ;;  %v5712_v36 = vsel %vm7337_vm7, %v7336_v51, %v7335_v46  ;;  %v2165_v20 = vsel %vm4620_vm1, %v7339_v47, %v2161_v28  ;;  %v2252_v54 = vrot.slane %v2162_v21, 4  ;;  %v4155_v58 = vpop.permute.xlu0 %4154  ;;  %vm7345_vm11 = vmmov %vm7343_vm8 }
 0x4ea   :  { %7338 = vst [vmem:[#allocation21_spill] sm:$0xff] %v5712_v36  ;;  %v2167_v31 = vsel %vm4612_vm14, %v7340_v33, %v2163_v60  ;;  %v2253_v41 = vrot.slane %v2165_v20, 4  ;;  %v4157_v45 = vunpack.i.h.bf16 %v4155_v58  ;;  %v2285_v53 = vsel %vm7342_vm13, %v5092_v2, %v7341_v56  ;;  %vm7347_vm2 = vmmov %vm7337_vm7 }
 0x4eb   :  { %v4170_v11 = vpop.permute.xlu1 %4169  ;;  %v2255_v46 = vrot.slane %v2167_v31, 4  ;;  %v5727_v28 = vsel %vm7343_vm8, %v4161_v61, %v4162_v23  ;;  %v4156_v51 = vunpack.i.l.bf16 %v4155_v58  ;;  %v7346_v8 = vrot.slane %v5284_v3, 6  ;;  %vm7349_vm9 = vmmov %vm7347_vm2 }
 0x4ec   :  { %7344 = vst [vmem:[#allocation20_spill] sm:$0xff] %v5727_v28  ;;  %v2145_v21 = vsel %vm7345_vm11, %v4157_v45, %v4161_v61  ;;  %v4172_v20 = vunpack.i.h.bf16 %v4170_v11  ;;  %v4171_v36 = vunpack.i.l.bf16 %v4170_v11  ;;  %v7348_v2 = vrot.slane %v5266_v30, 6  ;;  %vm7352_vm11 = vmmov %vm7343_vm8 }
 0x4ed   :  { %v2284_v35 = vsel %vm7347_vm2, %v5086_v6, %v7346_v8  ;;  %v2150_v56 = vsel %vm7280_vm0, %v5261_v38, %v2145_v21  ;;  %v4165_v31 = vpop.permute.xlu0 %4164  ;;  %vm7350_vm7 = vcmask 1043456   ;;  %v5751_v8 = vsel %vm7343_vm8, %v4156_v51, %v4157_v45 }
 0x4ee   :  { %v2287_v58 = vsel %vm7349_vm9, %v5104_v26, %v7348_v2  ;;  %v2288_v60 = vsel %vm7350_vm7, %v2284_v35, %v2252_v54  ;;  %vm7351_vm13 = vmmov %vm7350_vm7  ;;  %v2147_v38 = vsel %vm7352_vm11, %v4162_v23, %v4156_v51  ;;  %v4167_v2 = vunpack.i.h.bf16 %v4165_v31 }
 0x4ef   :  { %v5746_v61 = vsel %vm7351_vm13, %v5584_v4, %v2254_v19  ;;  %v4180_v21 = vpop.permute.xlu1 %4179  ;;  %vm7353_vm2 = vmmov %vm7350_vm7  ;;  %v4166_v26 = vunpack.i.l.bf16 %v4165_v31  ;;  %v5761_v4 = vrot.slane %v2150_v56, 4  ;;  %v7357_v11 = vrot.slane %v5605_v22, 2 }
 0x4f0   :  { %v5756_v6 = vsel %vm7353_vm2, %v2285_v53, %v2253_v41  ;;  %v4182_v35 = vunpack.i.h.bf16 %v4180_v21  ;;  %vm7354_vm9 = vmmov %vm7353_vm2  ;;  %v4181_v45 = vunpack.i.l.bf16 %v4180_v21  ;;  %vm7358_vm13 = vcmask 1045504  }
 0x4f1   :  { %v5759_v54 = vsel %vm7354_vm9, %v2287_v58, %v2255_v46  ;;  %7355 = vst [vmem:[#allocation18_spill] sm:$0xff] %v5761_v4  ;;  %vm7356_vm7 = vmmov %vm7343_vm8  ;;  %v5768_v23 = vsel %vm7358_vm13, %v2288_v60, %v7357_v11  ;;  %v2148_v41 = vsel %vm4605_vm12, %v5284_v3, %v2147_v38  ;;  %v4175_v56 = vpop.permute.xlu0 %4174  ;;  %vm7363_vm9 = vcmp.lt.s32.totalorder %v4471_v7, 112 }
 0x4f2   :  { %v1144_v19 = vsel %vm7356_vm7, %v4171_v36, %v4172_v20  ;;  %7359 = vst [vmem:[#allocation19_spill] sm:$0xff] %v5768_v23  ;;  %vm7360_vm8 = vmmov %vm7356_vm7  ;;  %v5782_v60 = vsel %vm7363_vm9, %v4181_v45, %v4182_v35  ;;  %v7364_v3 = vrot.slane %v5504_v50, 6  ;;  %v4176_v21 = vunpack.i.l.bf16 %v4175_v56 }
 0x4f3   :  { %v1145_v46 = vsel %vm7360_vm8, %v4167_v2, %v4171_v36  ;;  %vm7361_vm11 = vmmov %vm7356_vm7  ;;  %v4190_v11 = vpop.permute.xlu1 %4189  ;;  %v4177_v36 = vunpack.i.h.bf16 %v4175_v56  ;;  %v7367_v50 = vrot.slane %v5488_v5, 6 }
 0x4f4   :  { %v1147_v51 = vsel %vm7361_vm11, %v4172_v20, %v4166_v26  ;;  %v1154_v31 = vrot.slane %v1145_v46, 4  ;;  %vm7362_vm2 = vmmov %vm7356_vm7  ;;  %vm7365_vm7 = vcmask 1041408   ;;  %v4192_v53 = vunpack.i.h.bf16 %v4190_v11 }
 0x4f5   :  { %v1146_v22 = vsel %vm7362_vm2, %v4166_v26, %v4167_v2  ;;  %v1152_v58 = vrot.slane %v1147_v51, 4  ;;  %v5787_v38 = vsel %vm7365_vm7, %v1144_v19, %v7364_v3  ;;  %v5789_v20 = vrot.slane %v2148_v41, 4  ;;  %vm7368_vm13 = vmmov %vm7365_vm7 }
 0x4f6   :  { %v5794_v26 = vsel %vm7280_vm0, %v5240_v52, %v1154_v31  ;;  %v4191_v46 = vunpack.i.l.bf16 %v4190_v11  ;;  %v1377_v19 = vsel %vm7368_vm13, %v1146_v22, %v7367_v50  ;;  %vm7369_vm8 = vmmov %vm7363_vm9  ;;  %v4185_v31 = vpop.permute.xlu0 %4184  ;;  %vm7372_vm9 = vcmp.lt.s32.totalorder %v4471_v7, 16 }
 0x4f7   :  { %7366 = vst [vmem:[#allocation47_spill] sm:$0xff] %v5789_v20  ;;  %v1160_v2 = vsel %vm4605_vm12, %v5279_v12, %v1152_v58  ;;  %v1241_v41 = vsel %vm7369_vm8, %v4177_v36, %v4181_v45  ;;  %vm7370_vm11 = vmmov %vm7369_vm8  ;;  %v4200_v11 = vpop.permute.xlu1 %4199  ;;  %v4187_v51 = vunpack.i.h.bf16 %v4185_v31  ;;  %v4186_v45 = vunpack.i.l.bf16 %v4185_v31 }
 0x4f8   :  { %v5807_v56 = vsel %vm7370_vm11, %v4176_v21, %v4177_v36  ;;  %v1320_v3 = vrot.slane %v1160_v2, 4  ;;  %v1249_v30 = vrot.slane %v1241_v41, 4  ;;  %vm7371_vm2 = vmmov %vm7369_vm8  ;;  %v1212_v5 = vsel %vm7372_vm9, %v4191_v46, %v4192_v53 }
 0x4f9   :  { %v1243_v58 = vsel %vm7371_vm2, %v4182_v35, %v4176_v21  ;;  %v1248_v50 = vrot.slane %v5807_v56, 4  ;;  %v1223_v4 = vrot.slane %v1212_v5, 4  ;;  %v4202_v36 = vunpack.i.h.bf16 %v4200_v11  ;;  %vm7373_vm7 = vmmov %vm7372_vm9 }
 0x4fa   :  { %v1251_v23 = vrot.slane %v1243_v58, 4  ;;  %v4201_v20 = vunpack.i.l.bf16 %v4200_v11  ;;  %v1213_v2 = vsel %vm7373_vm7, %v4187_v51, %v4191_v46  ;;  %vm7374_vm13 = vmmov %vm7373_vm7  ;;  %v4195_v41 = vpop.permute.xlu0 %4194  ;;  %v1257_v56 = vsel %vm4620_vm1, %v5296_v62, %v1249_v30 }
 0x4fb   :  { %v1214_v35 = vsel %vm7374_vm13, %v4186_v45, %v4187_v51  ;;  %vm7375_vm8 = vmmov %vm7373_vm7  ;;  %v1222_v22 = vrot.slane %v1213_v2, 4  ;;  %v4210_v5 = vpop.permute.xlu1 %4209  ;;  %v7377_v11 = vrot.slane %v5509_v48, 2  ;;  %vm7378_vm2 = vcmask 1041408  }
 0x4fc   :  { %v1215_v21 = vsel %vm7375_vm8, %v4192_v53, %v4186_v45  ;;  %v1221_v31 = vrot.slane %v1214_v35, 4  ;;  %vm7376_vm11 = vmmov %vm7373_vm7  ;;  %v4197_v51 = vunpack.i.h.bf16 %v4195_v41  ;;  %v4196_v47 = vunpack.i.l.bf16 %v4195_v41 }
 0x4fd   :  { %v1642_v58 = vsel %vm7376_vm11, %v4201_v20, %v4202_v36  ;;  %v1376_v46 = vsel %vm7378_vm2, %v1320_v3, %v7377_v11  ;;  %v1220_v33 = vrot.slane %v1215_v21, 4  ;;  %v4212_v28 = vunpack.i.h.bf16 %v4210_v5  ;;  %vm7380_vm9 = vmmov %vm7378_vm2 }
 0x4fe   :  { %v7379_v53 = vrot.slane %v5537_v25, 6  ;;  %v4211_v30 = vunpack.i.l.bf16 %v4210_v5  ;;  %vm7381_vm7 = vcmask 1043456   ;;  %v1643_v48 = vsel %vm7375_vm8, %v4197_v51, %v4201_v20  ;;  %vm7383_vm11 = vmmov %vm7375_vm8  ;;  %v4205_v41 = vpop.permute.xlu0 %4204 }
 0x4ff   :  { %v1381_v2 = vsel %vm7381_vm7, %v1377_v19, %v1221_v31  ;;  %vm7382_vm13 = vmmov %vm7381_vm7  ;;  %v1644_v3 = vsel %vm7383_vm11, %v4196_v47, %v4197_v51  ;;  %v7385_v25 = vrot.slane %v5296_v62, 6  ;;  %v1230_v19 = vsel %vm7280_vm0, %v5314_v39, %v1222_v22  ;;  %v7390_v51 = vld [vmem:[#allocation28_spill] sm:$0xff] }
 0x500   :  { %v5832_v45 = vsel %vm7380_vm9, %v1642_v58, %v7379_v53  ;;  %v1393_v35 = vsel %vm7382_vm13, %v5650_v55, %v1257_v56  ;;  %vm7384_vm2 = vmmov %vm7375_vm8  ;;  %vm7386_vm9 = vcmask 1045504   ;;  %v1652_v31 = vrot.slane %v1643_v48, 2  ;;  %v4220_v56 = vpop.permute.xlu1 %4219 }
 0x501   :  { %v1645_v21 = vsel %vm7384_vm2, %v4202_v36, %v4196_v47  ;;  %v1385_v58 = vsel %vm7386_vm9, %v1381_v2, %v7385_v25  ;;  %vm7387_vm7 = vcmp.lt.s32.totalorder %v4471_v7, 112  ;;  %v1228_v47 = vsel %vm4605_vm12, %v5330_v37, %v1220_v33  ;;  %vm7389_vm13 = vmmov %vm7386_vm9 }
 0x502   :  { %v1650_v55 = vrot.slane %v1645_v21, 2  ;;  %v5851_v20 = vsel %vm7387_vm7, %v4211_v30, %v4212_v28  ;;  %v4207_v36 = vunpack.i.h.bf16 %v4205_v41  ;;  %v4206_v5 = vunpack.i.l.bf16 %v4205_v41  ;;  %vm7393_vm11 = vmmov %vm7387_vm7  ;;  %v4215_v48 = vpop.permute.xlu0 %4214 }
 0x503   :  { %v7388_v62 = vrot.slane %v5620_v32, 6  ;;  %v5862_v39 = vsel %vm7280_vm0, %v7390_v51, %v1652_v31  ;;  %v7391_v22 = vrot.slane %v5533_v0, 6  ;;  %vm7392_vm8 = vcmask 1041408   ;;  %vm7394_vm2 = vmmov %vm7387_vm7 }
 0x504   :  { %v1259_v37 = vsel %vm4612_vm14, %v5211_v63, %v1251_v23  ;;  %v1820_v33 = vrot.slane %v5862_v39, 6  ;;  %v5876_v32 = vsel %vm4605_vm12, %v5365_v57, %v1650_v55  ;;  %v1739_v0 = vsel %vm7393_vm11, %v4207_v36, %v4211_v30  ;;  %vm7395_vm9 = vmmov %vm7394_vm2  ;;  %v1291_v25 = vpop.permute.xlu1 %1290 }
 0x505   :  { %v1397_v11 = vsel %vm7389_vm13, %v1393_v35, %v7388_v62  ;;  %v5867_v53 = vsel %vm7392_vm8, %v1644_v3, %v7391_v22  ;;  %v3807_v35 = vrot.slane %v5851_v20, 4  ;;  %v1747_v3 = vrot.slane %v1739_v0, 2 }
 0x506   :  { %v3880_v2 = vpack.c.bf16 %v1397_v11, %v1385_v58  ;;  %v5883_v21 = vsel %vm7394_vm2, %v4206_v5, %v4207_v36  ;;  %v1741_v23 = vsel %vm7395_vm9, %v4212_v28, %v4206_v5  ;;  %vm7396_vm7 = vcmask 1043456   ;;  %vm7401_vm2 = vmmov %vm7389_vm13 }
 0x507   :  { %v1383_v41 = vsel %vm7396_vm7, %v5787_v38, %v1223_v4  ;;  %v1749_v58 = vrot.slane %v1741_v23, 2  ;;  %v7397_v31 = vrot.slane %v5211_v63, 6  ;;  %vm7398_vm8 = vmmov %vm7396_vm7  ;;  %v1755_v36 = vsel %vm4620_vm1, %v5370_v34, %v1747_v3 }
 0x508   :  { %3881 = vmatprep.subr.bf16.mxu0 %v3880_v2  ;;  %v1395_v30 = vsel %vm7398_vm8, %v5656_v43, %v1259_v37  ;;  %vm7399_vm11 = vmmov %vm7396_vm7  ;;  %v7400_v28 = vrot.slane %v5636_v24, 6  ;;  %v7402_v4 = vrot.slane %v5279_v12, 6  ;;  %v1392_v63 = vsel %vm7396_vm7, %v5666_v1, %v1248_v50  ;;  %v1289_v2 = vpop.permute.xlu0 %1288  ;;  %v1295_v23 = vpop.permute.xlu1 %1294 }
 0x509   :  { %v1387_v55 = vsel %vm7389_vm13, %v1383_v41, %v7397_v31  ;;  %v1380_v62 = vsel %vm7399_vm11, %v1376_v46, %v1228_v47  ;;  %vm7403_vm9 = vmmov %vm7401_vm2  ;;  %v1818_v11 = vrot.slane %v5876_v32, 6  ;;  %v1863_v43 = vrot.slane %v1755_v36, 2 }
 0x50a   :  { %v1399_v5 = vsel %vm7401_vm2, %v1395_v30, %v7400_v28  ;;  %v1384_v38 = vsel %vm7403_vm9, %v1380_v62, %v7402_v4  ;;  %v7404_v46 = vrot.slane %v5494_v49, 10  ;;  %vm7405_vm13 = vmmov %vm7401_vm2  ;;  %v3806_v24 = vrot.slane %v5883_v21, 4 }
 0x50b   :  { %v3884_v22 = vpack.c.bf16 %v1399_v5, %v1387_v55  ;;  %v7406_v0 = vrot.slane %v5515_v44, 2  ;;  %v7407_v12 = vrot.slane %v5794_v26, 4  ;;  %vm7408_vm8 = vcmask 1041408   ;;  %vm7410_vm11 = vmmov %vm7396_vm7  ;;  %v7413_v55 = vld [vmem:[#allocation37_spill] sm:$0xff] }
 0x50c   :  { %v1396_v47 = vsel %vm7405_vm13, %v1392_v63, %v7404_v46  ;;  %v7409_v1 = vrot.slane %v5782_v60, 4  ;;  %v1757_v49 = vsel %vm4612_vm14, %v5359_v40, %v1749_v58  ;;  %vm7411_vm2 = vmmov %vm7396_vm7  ;;  %v4222_v41 = vunpack.i.h.bf16 %v4220_v56  ;;  %v1293_v28 = vpop.permute.xlu0 %1292 }
 0x50d   :  { %v3882_v37 = vpack.c.bf16 %v1396_v47, %v1384_v38  ;;  %v1378_v3 = vsel %vm7408_vm8, %v7407_v12, %v7406_v0  ;;  %3885 = vmatprep.subr.bf16.mxu1 %v3884_v22  ;;  %v4221_v31 = vunpack.i.l.bf16 %v4220_v56  ;;  %v7412_v44 = vrot.slane %v5240_v52, 6  ;;  %vm7415_vm7 = vmmov %vm7403_vm9  ;;  %v5942_v38 = vpop.permute.xlu1 %1788 }
 0x50e   :  { %v1394_v50 = vsel %vm7410_vm11, %v5674_v18, %v7409_v1  ;;  %v1382_v21 = vsel %vm7411_vm2, %v1378_v3, %v1230_v19  ;;  %v7414_v60 = vrot.slane %v7413_v55, 10  ;;  %v4217_v18 = vunpack.i.h.bf16 %v4215_v48  ;;  %vm7418_vm11 = vmmov %vm7411_vm2 }
 0x50f   :  { %3883 = vmatpush1.bf16.msra.mxu0 %v3882_v37  ;;  %v1386_v26 = vsel %vm7403_vm9, %v1382_v21, %v7412_v44  ;;  %v4216_v62 = vunpack.i.l.bf16 %v4215_v48  ;;  %vm7416_vm13 = vcmp.lt.s32.totalorder %v4471_v7, 16  ;;  %vm7417_vm8 = vcmp.lt.s32.totalorder %v4471_v7, 112 }
 0x510   :  { %v1398_v30 = vsel %vm7415_vm7, %v1394_v50, %v7414_v60  ;;  %v1710_v58 = vsel %vm7416_vm13, %v4221_v31, %v4222_v41  ;;  %v1299_v19 = vsel %vm7417_vm8, %v1295_v23, %v1289_v2  ;;  %v1895_v56 = vsel %vm7418_vm11, %v5683_v29, %v1863_v43  ;;  %vm7419_vm2 = vmmov %vm7416_vm13 }
 0x511   :  { %v3886_v36 = vpack.c.bf16 %v1398_v30, %v1386_v26  ;;  %v3805_v52 = vrot.slane %v1710_v58, 4  ;;  %v1711_v5 = vsel %vm7419_vm2, %v4217_v18, %v4221_v31  ;;  %vm7420_vm9 = vmmov %vm7419_vm2  ;;  %v1307_v47 = vrot.slane %v1299_v19, 4  ;;  %v1067_v26 = vld [vmem:[%s7040_s1 + $0x10] sm:$0x3]  ;;  %v7439_v19 = vld [vmem:[#allocation38_spill] sm:$0xff] }
 0x512   :  { %v1712_v4 = vsel %vm7420_vm9, %v4216_v62, %v4217_v18  ;;  %vm7421_vm7 = vmmov %vm7419_vm2  ;;  %v1720_v63 = vrot.slane %v1711_v5, 2  ;;  %v1865_v37 = vrot.slane %v1757_v49, 2  ;;  %v1297_v43 = vsel %vm7417_vm8, %v1291_v25, %v1293_v28  ;;  %v1787_v49 = vpop.permute.xlu0 %1786  ;;  %v7434_v18 = vld [vmem:[#allocation12_spill] sm:$0xff] }
 0x513   :  { %v1713_v48 = vsel %vm7421_vm7, %v4222_v41, %v4216_v62  ;;  %3887 = vmatpush1.bf16.msra.mxu1 %v3886_v36  ;;  %v3804_v46 = vrot.slane %v1712_v4, 4  ;;  %vm7422_vm13 = vmmov %vm7417_vm8  ;;  %v1885_v0 = vsel %vm7418_vm11, %v5832_v45, %v3805_v52  ;;  %v1315_v3 = vsel %vm4612_vm14, %v5324_v59, %v1307_v47  ;;  %v5961_v45 = vpop.permute.xlu1 %1792 }
 0x514   :  { %v1718_v22 = vrot.slane %v1713_v48, 2  ;;  %v1298_v29 = vsel %vm7422_vm13, %v1289_v2, %v1291_v25  ;;  %vm7423_vm2 = vmmov %vm7417_vm8  ;;  %v1305_v50 = vrot.slane %v1297_v43, 4  ;;  %v1728_v25 = vsel %vm7280_vm0, %v5389_v27, %v1720_v63  ;;  %v7443_v48 = vld [vmem:[#allocation40_spill] sm:$0xff] }
 0x515   :  { %v1296_v1 = vsel %vm7423_vm2, %v1293_v28, %v1295_v23  ;;  %v1375_v21 = vrot.slane %v1315_v3, 4  ;;  %vm7424_vm9 = vcmask 1045504   ;;  %vm7425_vm7 = vmmov %vm7423_vm2  ;;  %v1844_v55 = vrot.slane %v1728_v25, 2 }
 0x516   :  { %v1726_v12 = vsel %vm4605_vm12, %v5402_v9, %v1718_v22  ;;  %v1899_v9 = vsel %vm7424_vm9, %v1895_v56, %v5679_v17  ;;  %v1313_v59 = vsel %vm4620_vm1, %v5336_v42, %v1305_v50  ;;  %v1797_v23 = vsel %vm7425_vm7, %v5961_v45, %v1787_v49  ;;  %vm7426_vm13 = vmmov %vm7418_vm11  ;;  %v1791_v60 = vpop.permute.xlu0 %1790 }
 0x517   :  { %v1842_v2 = vrot.slane %v1726_v12, 2  ;;  %v1883_v41 = vsel %vm7426_vm13, %v5867_v53, %v3804_v46  ;;  %vm7427_vm8 = vmmov %vm7424_vm9  ;;  %v1373_v31 = vrot.slane %v1313_v59, 4  ;;  %vm7428_vm11 = vcmask 1041408   ;;  %v4230_v52 = vpop.permute.xlu1 %4229  ;;  %v7447_v46 = vld [vmem:[#allocation39_spill] sm:$0xff] }
 0x518   :  { %v1889_v27 = vsel %vm7427_vm8, %v1885_v0, %v5359_v40  ;;  %3795 = vmatprep.subr.msk.mxu1 %vm7428_vm11, %v1375_v21  ;;  %v1805_v44 = vrot.slane %v1797_v23, 2  ;;  %vm7429_vm2 = vmmov %vm7427_vm8  ;;  %v7432_v40 = vld [vmem:[#allocation10_spill] sm:$0xff]  ;;  %v7440_v28 = vrot.slane %v7439_v19, 4  ;;  %v7444_v63 = vrot.slane %v7443_v48, 2 }
 0x519   :  { %v1887_v17 = vsel %vm7429_vm2, %v1883_v41, %v5370_v34  ;;  %vm7430_vm9 = vmmov %vm7426_vm13  ;;  %v7437_v34 = vld [vmem:[#allocation29_spill] sm:$0xff]  ;;  %v4232_v43 = vunpack.i.h.bf16 %v4230_v52  ;;  %v7452_v0 = vld [vmem:[#allocation30_spill] sm:$0xff] }
 0x51a   :  { %v1897_v42 = vsel %vm7430_vm9, %v5696_v13, %v1865_v37  ;;  %vm7431_vm7 = vmmov %vm7428_vm11  ;;  %v3888_v53 = vpack.c.bf16 %v1899_v9, %v1887_v17  ;;  %v1813_v13 = vsel %vm4612_vm14, %v7437_v34, %v1805_v44  ;;  %v7450_v37 = vld [vmem:[#allocation21_spill] sm:$0xff]  ;;  %v7457_v9 = vmov 0.0   ;;  %v7458_v41 = vld [vmem:[#allocation11_spill] sm:$0xff] }
 0x51b   :  { %3796 = vmatpush1.msk.msra.mxu1 %vm7431_vm7, %v1296_v1  ;;  %vm7433_vm13 = vmmov %vm7429_vm2  ;;  %vm7438_vm2 = vcmp.lt.s32.totalorder %v4471_v7, 112  ;;  %v1877_v5 = vrot.slane %v1813_v13, 6  ;;  %v7454_v1 = vld [vmem:[#allocation42_spill] sm:$0xff]  ;;  %v2187_v21 = vpop.permute.xlu1 %2186 }
 0x51c   :  { %v1901_v30 = vsel %vm7433_vm13, %v1897_v42, %v7432_v40  ;;  %vm7435_vm8 = vmmov %vm7430_vm9  ;;  %v1795_v36 = vsel %vm7438_vm2, %v5942_v38, %v1791_v60  ;;  %vm7442_vm13 = vcmask 146432   ;;  %v7455_v50 = vrot.slane %v7454_v1, 2  ;;  %v7475_v13 = vld [vmem:[#allocation46_spill] sm:$0xff] }
 0x51d   :  { %v1894_v62 = vsel %vm7435_vm8, %v7434_v18, %v3806_v24  ;;  %vm7436_vm11 = vmmov %vm7431_vm7  ;;  %v3892_v58 = vpack.c.bf16 %v1901_v30, %v1889_v27  ;;  %v1803_v24 = vrot.slane %v1795_v36, 2  ;;  %3797 = vmatmul.mubr.msk.f32.vlgmr.msra.gmra.mrb[6].mxu1 %vm7442_vm13, %v1067_v26  ;;  %v7472_v30 = vld [vmem:[#allocation22_spill] sm:$0xff] }
 0x51e   :  { %3792 = vmatprep.subr.msk.mxu0 %vm7436_vm11, %v1373_v31  ;;  %vm7441_vm9 = vmmov %vm7431_vm7  ;;  %vm7445_vm11 = vcmask 1045504   ;;  %2048 = vmatprep.mubr.f32.mxu1 %v7457_v9  ;;  %v7460_v31 = vld [vmem:[#allocation13_spill] sm:$0xff] }
 0x51f   :  { %v1878_v56 = vsel %vm7441_vm9, %v1818_v11, %v7440_v28  ;;  %3793 = vmatpush1.msk.msra.mxu0 %vm7431_vm7, %v1298_v29  ;;  %v1898_v22 = vsel %vm7445_vm11, %v1894_v62, %v7444_v63  ;;  %3893 = vmatprep.subr.bf16.mxu1 %v3892_v58  ;;  %vm7446_vm2 = vmmov %vm7445_vm11  ;;  %v7448_v11 = vrot.slane %v7447_v46, 4  ;;  %v1811_v12 = vsel %vm4620_vm1, %v7452_v0, %v1803_v24  ;;  %v7476_v58 = vld [vmem:[#allocation24_spill] sm:$0xff]  ;;  %v7477_v28 = vld [vmem:[#allocation41_spill] sm:$0xff]  ;;  %v2191_v24 = vpop.permute.xlu1 %2190 }
 0x520   :  { %v1882_v4 = vsel %vm7435_vm8, %v1878_v56, %v1842_v2  ;;  %3889 = vmatprep.subr.bf16.mxu0 %v3888_v53  ;;  %vm7449_vm9 = vmmov %vm7431_vm7  ;;  %3794 = vmatmul.mubr.msk.f32.vlgmr.msra.gmra.mrb[6].mxu0 %vm7442_vm13, %v1067_v26  ;;  %v1875_v25 = vrot.slane %v1811_v12, 6  ;;  %vm7462_vm13 = vcmp.lt.s32.totalorder %v4471_v7, 112  ;;  %v7466_v26 = vld [vmem:[#allocation44_spill] sm:$0xff]  ;;  %v7469_v53 = vld [vmem:[#allocation43_spill] sm:$0xff]  ;;  %v7478_v56 = vrot.slane %v7477_v28, 6 }
 0x521   :  { %v1886_v32 = vsel %vm7446_vm2, %v1882_v4, %v5365_v57  ;;  %v1880_v47 = vsel %vm7449_vm9, %v1820_v33, %v7448_v11  ;;  %vm7451_vm7 = vmmov %vm7435_vm8  ;;  %v4225_v33 = vpop.permute.xlu0 %4224  ;;  %1977 = vmatprep.mubr.f32.mxu0 %v7457_v9  ;;  %v7481_v4 = vld [vmem:[#allocation45_spill] sm:$0xff]  ;;  %v7496_v0 = vld [vmem:[#allocation47_spill] sm:$0xff] }
 0x522   :  { %v1896_v29 = vsel %vm7451_vm7, %v7450_v37, %v3807_v35  ;;  %v3890_v3 = vpack.c.bf16 %v1898_v22, %v1886_v32  ;;  %vm7453_vm8 = vmmov %vm7451_vm7  ;;  %v4231_v35 = vunpack.i.l.bf16 %v4230_v52  ;;  %v4227_v2 = vunpack.i.h.bf16 %v4225_v33  ;;  %v7486_v22 = vld [vmem:[#allocation20_spill] sm:$0xff]  ;;  %v7489_v11 = vld [vmem:[#allocation25_spill] sm:$0xff] }
 0x523   :  { %v1884_v57 = vsel %vm7453_vm8, %v1880_v47, %v1844_v55  ;;  %vm7456_vm11 = vmmov %vm7446_vm2  ;;  %v4226_v23 = vunpack.i.l.bf16 %v4225_v33  ;;  %vm7463_vm8 = vcmp.lt.s32.totalorder %v4471_v7, 16  ;;  %v7467_v55 = vrot.slane %v7466_v26, 2  ;;  %v7492_v37 = vld [vmem:[#allocation23_spill] sm:$0xff] }
 0x524   :  { %v1900_v39 = vsel %vm7456_vm11, %v1896_v29, %v7455_v50  ;;  %v1888_v20 = vsel %vm7446_vm2, %v1884_v57, %v7390_v51  ;;  %3891 = vmatpush1.bf16.msra.mxu0 %v3890_v3  ;;  %vm7459_vm9 = vmmov %vm7446_vm2  ;;  %v1796_v51 = vsel %vm7462_vm13, %v1787_v49, %v5942_v38  ;;  %v2112_v17 = vsel %vm7463_vm8, %v4231_v35, %v4232_v43 }
 0x525   :  { %v3894_v59 = vpack.c.bf16 %v1900_v39, %v1888_v20  ;;  %v2293_v27 = vsel %vm7459_vm9, %v5756_v6, %v7458_v41  ;;  %vm7461_vm7 = vmmov %vm7446_vm2  ;;  %vm7465_vm2 = vcmask 1041408   ;;  %v2115_v18 = vsel %vm7463_vm8, %v4232_v43, %v4226_v23  ;;  %v2185_v62 = vpop.permute.xlu0 %2184  ;;  %v7507_v41 = vld [vmem:[#allocation27_spill] sm:$0xff] }
 0x526   :  { %v2295_v44 = vsel %vm7461_vm7, %v5759_v54, %v7460_v31  ;;  %vm7464_vm11 = vmmov %vm7463_vm8  ;;  %3810 = vmatprep.subr.msk.mxu0 %vm7465_vm2, %v1875_v25  ;;  %v7470_v54 = vrot.slane %v7469_v53, 6  ;;  %v2116_v19 = vsel %vm4605_vm12, %v7476_v58, %v2115_v18  ;;  %v7487_v32 = vrot.slane %v7486_v22, 4  ;;  %v7508_v31 = vld [vmem:[#allocation26_spill] sm:$0xff] }
 0x527   :  { %v2113_v42 = vsel %vm7464_vm11, %v4227_v2, %v4231_v35  ;;  %vm7468_vm9 = vmmov %vm7461_vm7  ;;  %3895 = vmatpush1.bf16.msra.mxu1 %v3894_v59  ;;  %vm7474_vm11 = vcmp.lt.s32.totalorder %v4471_v7, 112  ;;  %v7490_v47 = vrot.slane %v7489_v11, 2  ;;  %v7493_v29 = vrot.slane %v7492_v37, 2 }
 0x528   :  { %v2294_v6 = vsel %vm7468_vm9, %v5746_v61, %v7467_v55  ;;  %vm7471_vm7 = vmmov %vm7465_vm2  ;;  %v2118_v38 = vsel %vm7280_vm0, %v7472_v30, %v2113_v42  ;;  %v1557_v61 = vld [vmem:[%s7040_s1 + $0x12] sm:$0x3]  ;;  %v1794_v34 = vsel %vm7474_vm11, %v1791_v60, %v5961_v45  ;;  %v2195_v45 = vsel %vm7474_vm11, %v2191_v24, %v2185_v62 }
 0x529   :  { %v2275_v40 = vsel %vm7471_vm7, %v2112_v17, %v7470_v54  ;;  %vm7473_vm13 = vmmov %vm7463_vm8  ;;  %v2274_v36 = vsel %vm7465_vm2, %v2118_v38, %v7475_v13  ;;  %v7484_v60 = vrot.slane %v5751_v8, 4  ;;  %v7498_v8 = vld [vmem:[#allocation18_spill] sm:$0xff]  ;;  %v2189_v57 = vpop.permute.xlu0 %2188  ;;  %v7501_v39 = vrot.slane %v7476_v58, 2 }
 0x52a   :  { %v2114_v49 = vsel %vm7473_vm13, %v4226_v23, %v4227_v2  ;;  %vm7479_vm9 = vmmov %vm7465_vm2  ;;  %v7503_v25 = vrot.slane %v7472_v30, 2  ;;  %v7506_v2 = vld [vmem:[#allocation19_spill] sm:$0xff]  ;;  %v4240_v30 = vpop.permute.xlu1 %4239 }
 0x52b   :  { %v2273_v52 = vsel %vm7479_vm9, %v2114_v49, %v7478_v56  ;;  %vm7480_vm7 = vmmov %vm7465_vm2  ;;  %vm7491_vm9 = vcmask 1045504   ;;  %v4242_v13 = vunpack.i.h.bf16 %v4240_v30  ;;  %v4241_v28 = vunpack.i.l.bf16 %v4240_v30 }
 0x52c   :  { %3813 = vmatprep.subr.msk.mxu1 %vm7480_vm7, %v1877_v5  ;;  %vm7482_vm13 = vmmov %vm7465_vm2 }
 0x52d   :  { %v2272_v48 = vsel %vm7482_vm13, %v2116_v19, %v7481_v4  ;;  %vm7483_vm8 = vmmov %vm7465_vm2  ;;  %vm7485_vm2 = vcmask 1043456   ;;  %vm7495_vm13 = vcmask 146432   ;;  %v4235_v18 = vpop.permute.xlu0 %4234 }
 0x52e   :  { %3811 = vmatpush1.msk.msra.mxu0 %vm7483_vm8, %v1796_v51  ;;  %v2277_v63 = vsel %vm7485_vm2, %v2273_v52, %v7484_v60  ;;  %vm7488_vm0 = vmmov %vm7485_vm2  ;;  %vm7500_vm2 = vcmask 1041408   ;;  %v2071_v51 = vld [vmem:[%s7040_s1 + $0x14] sm:$0x3]  ;;  %v4236_v58 = vunpack.i.l.bf16 %v4235_v18 }
 0x52f   :  { %v2279_v46 = vsel %vm7488_vm0, %v2275_v40, %v7487_v32  ;;  %v2281_v5 = vsel %vm7491_vm9, %v2277_v63, %v7490_v47  ;;  %vm7494_vm7 = vmmov %vm7491_vm9  ;;  %3812 = vmatmul.mubr.msk.f32.vlgmr.msra.gmra.mrb[8].mxu0 %vm7495_vm13, %v1557_v61  ;;  %3814 = vmatpush1.msk.msra.mxu1 %vm7500_vm2, %v1794_v34 }
 0x530   :  { %v2283_v43 = vsel %vm7494_vm7, %v2279_v46, %v7493_v29  ;;  %vm7497_vm8 = vmmov %vm7488_vm0  ;;  %v3896_v1 = vpack.c.bf16 %v2293_v27, %v2281_v5  ;;  %3815 = vmatmul.mubr.msk.f32.vlgmr.msra.gmra.mrb[8].mxu1 %vm7495_vm13, %v1557_v61  ;;  %2375 = vmatprep.mubr.f32.mxu0 %v7457_v9  ;;  %v7520_v5 = vld [vmem:[#allocation14_spill] sm:$0xff] }
 0x531   :  { %v2276_v12 = vsel %vm7497_vm8, %v2272_v48, %v7496_v0  ;;  %vm7499_vm11 = vmmov %vm7488_vm0  ;;  %v3900_v50 = vpack.c.bf16 %v2295_v44, %v2283_v43  ;;  %v2199_v44 = vsel %vm4612_vm14, %v7508_v31, %v2195_v45  ;;  %2446 = vmatprep.mubr.f32.mxu1 %v7457_v9  ;;  %v7523_v43 = vld [vmem:[#allocation15_spill] sm:$0xff]  ;;  %v2895_v31 = vpop.permute.xlu1 %2894 }
 0x532   :  { %v2278_v3 = vsel %vm7499_vm11, %v2274_v36, %v7498_v8  ;;  %vm7502_vm0 = vmmov %vm7494_vm7  ;;  %vm7505_vm7 = vcmp.lt.s32.totalorder %v4471_v7, 112  ;;  %3897 = vmatprep.subr.bf16.mxu0 %v3896_v1  ;;  %v4237_v36 = vunpack.i.h.bf16 %v4235_v18 }
 0x533   :  { %v2280_v33 = vsel %vm7502_vm0, %v2276_v12, %v7501_v39  ;;  %vm7504_vm9 = vmmov %vm7502_vm0  ;;  %v2193_v35 = vsel %vm7505_vm7, %v2187_v21, %v2189_v57  ;;  %3901 = vmatprep.subr.bf16.mxu1 %v3900_v50  ;;  %v7529_v39 = vld [vmem:[#allocation16_spill] sm:$0xff] }
 0x534   :  { %v2282_v20 = vsel %vm7504_vm9, %v2278_v3, %v7503_v25  ;;  %v3898_v59 = vpack.c.bf16 %v7506_v2, %v2280_v33  ;;  %v2197_v27 = vsel %vm4620_vm1, %v7507_v41, %v2193_v35  ;;  %vm7509_vm8 = vmmov %vm7500_vm2 }
 0x535   :  { %v3902_v23 = vpack.c.bf16 %v2294_v6, %v2282_v20  ;;  %vm7510_vm11 = vmmov %vm7500_vm2  ;;  %v7532_v20 = vld [vmem:[#allocation31_spill] sm:$0xff] }
 0x536   :  { %3899 = vmatpush1.bf16.msra.mxu0 %v3898_v59  ;;  %vm7511_vm2 = vmmov %vm7505_vm7 }
 0x537   :  { %3903 = vmatpush1.bf16.msra.mxu1 %v3902_v23  ;;  %3818 = vmatprep.subr.msk.mxu0 %vm7509_vm8, %v2197_v27  ;;  %v2194_v17 = vsel %vm7511_vm2, %v2185_v62, %v2187_v21  ;;  %vm7512_vm0 = vmmov %vm7511_vm2  ;;  %v7533_v23 = vld [vmem:[#allocation32_spill] sm:$0xff]  ;;  %v2893_v27 = vpop.permute.xlu0 %2892 }
 0x538   :  { %3821 = vmatprep.subr.msk.mxu1 %vm7510_vm11, %v2199_v44  ;;  %v2192_v42 = vsel %vm7512_vm0, %v2189_v57, %v2191_v24  ;;  %vm7513_vm9 = vmmov %vm7509_vm8  ;;  %vm7516_vm11 = vcmp.lt.s32.totalorder %v4471_v7, 1  ;;  %v7526_v57 = vld [vmem:[#allocation17_spill] sm:$0xff] }
 0x539   :  { %vm7514_vm7 = vmmov %vm7509_vm8  ;;  %v2874_v56 = vsel %vm7516_vm11, %v4236_v58, %v4237_v36 }
 0x53a   :  { %3819 = vmatpush1.msk.msra.mxu0 %vm7513_vm9, %v2194_v17  ;;  %vm7515_vm8 = vmmov %vm7495_vm13  ;;  %v2881_v22 = vrot.slane %v2874_v56, 6  ;;  %v7541_v56 = vld [vmem:[#allocation9_spill] sm:$0xff] }
 0x53b   :  { %3822 = vmatpush1.msk.msra.mxu1 %vm7514_vm7, %v2192_v42  ;;  %3820 = vmatmul.mubr.msk.f32.vlgmr.msra.gmra.mrb[10].mxu0 %vm7495_vm13, %v2071_v51  ;;  %vm7517_vm2 = vmmov %vm7516_vm11  ;;  %vm7534_vm7 = vcmp.lt.s32.totalorder %v4471_v7, 127 }
 0x53c   :  { %3823 = vmatmul.mubr.msk.f32.vlgmr.msra.gmra.mrb[10].mxu1 %vm7515_vm8, %v2071_v51  ;;  %2757 = vmatprep.mubr.f32.mxu0 %v7457_v9  ;;  %v2875_v52 = vsel %vm7517_vm2, %v4242_v13, %v4236_v58  ;;  %vm7518_vm0 = vmmov %vm7517_vm2  ;;  %v6190_v12 = vsel %vm4498_vm4, %v7523_v43, %v2881_v22  ;;  %v2902_v42 = vsel %vm7534_vm7, %v2893_v27, %v2895_v31 }
 0x53d   :  { %2828 = vmatprep.mubr.f32.mxu1 %v7457_v9  ;;  %v2880_v63 = vrot.slane %v2875_v52, 6  ;;  %v2872_v32 = vsel %vm7518_vm0, %v4241_v28, %v4242_v13  ;;  %vm7519_vm9 = vmmov %vm7518_vm0  ;;  %7525 = vst [vmem:[#allocation37_spill] sm:$0xff] %v6190_v12  ;;  %v2925_v3 = vrot.slane %v6190_v12, 2  ;;  %vm7542_vm2 = vnez %v7541_v56 }
 0x53e   :  { %v2873_v46 = vsel %vm7519_vm9, %v4237_v36, %v4241_v28  ;;  %v2883_v11 = vrot.slane %v2872_v32, 6  ;;  %vm7535_vm13 = vmmov %vm7534_vm7 }
 0x53f   :  { %v2882_v47 = vrot.slane %v2873_v46, 6  ;;  %v6185_v29 = vsel %vm4494_vm3, %v7520_v5, %v2880_v63  ;;  %vm7539_vm8 = vmmov %vm7534_vm7  ;;  %v7543_v63 = vld [vmem:[#allocation7_spill] sm:$0xff] }
 0x540   :  { %7522 = vst [vmem:[#allocation28_spill] sm:$0xff] %v6185_v29  ;;  %v2924_v8 = vrot.slane %v6185_v29, 2  ;;  %v6201_v50 = vsel %vm4506_vm6, %v7526_v57, %v2883_v11  ;;  %vm7540_vm11 = vmmov %vm7534_vm7  ;;  %vm7544_vm0 = vnez %v7543_v63 }
 0x541   :  { %7528 = vst [vmem:[#allocation10_spill] sm:$0xff] %v6201_v50  ;;  %v6206_v25 = vsel %vm4502_vm5, %v7529_v39, %v2882_v47  ;;  %v2927_v59 = vrot.slane %v6201_v50, 2  ;;  %vm7548_vm7 = vmmov %vm7519_vm9 }
 0x542   :  { %7531 = vst [vmem:[#allocation12_spill] sm:$0xff] %v6206_v25  ;;  %v4253_v35 = vpack.i.bf16 %v2925_v3, %v2924_v8  ;;  %v2926_v2 = vrot.slane %v6206_v25, 2  ;;  %v7546_v8 = vld [vmem:[#allocation36_spill] sm:$0xff]  ;;  %v7547_v3 = vld [vmem:[#allocation35_spill] sm:$0xff] }
 0x544   :  { %v4258_v41 = vpack.i.bf16 %v2927_v59, %v2926_v2 }
 0x5f0   :  { %v1548_v26 = vpop.f32.mrb[6].mxu1 }
 0x5f1   :  { %3798 = vst [vmem:[%s7041_s2 + $0x30] sm:$0x3] %v1548_v26  ;;  %v1550_v21 = vpop.f32.mrb[7].mxu1 }
 0x5f2   :  { %3799 = vst [vmem:[%s7041_s2 + $0x38] sm:$0x3] %v1550_v21 }
 0x5f3   :  { %v1477_v55 = vpop.f32.mrb[6].mxu0 }
 0x5f4   :  { %1553 = vst [vmem:[%s7041_s2 + $0x10] sm:$0x3] %v1477_v55  ;;  %v1479_v6 = vpop.f32.mrb[7].mxu0  ;;  %v2908_v55 = vrot.slane %v2902_v42, 6 }
 0x5f5   :  { %1554 = vst [vmem:[%s7041_s2 + $0x18] sm:$0x3] %v1479_v6 }
 0x5f6   :  { %v6227_v30 = vsel %vm7253_vm15, %v7520_v5, %v2908_v55 }
 0x5f7   :  { %v2992_v13 = vrot.slane %v6227_v30, 2 }
 0x602   :  { %v1979_v53 = vpop.f32.mrb[8].mxu0 }
 0x603   :  { %v2057_v54 = vrot.slane %v1979_v53, 6  ;;  %v1981_v40 = vpop.f32.mrb[9].mxu0  ;;  %v2050_v38 = vpop.f32.mrb[8].mxu1 }
 0x604   :  { %v2058_v49 = vrot.slane %v1981_v40, 6  ;;  %v2065_v62 = vrot.slane %v2050_v38, 6  ;;  %v2052_v61 = vpop.f32.mrb[9].mxu1 }
 0x605   :  { %2061 = vst [vmem:[%s7041_s2 + $0x10] sm:$0xc] %v2057_v54  ;;  %v2066_v34 = vrot.slane %v2052_v61, 6 }
 0x606   :  { %2062 = vst [vmem:[%s7041_s2 + $0x18] sm:$0xc] %v2058_v49  ;;  %3816 = vst [vmem:[%s7041_s2 + $0x30] sm:$0xc] %v2065_v62 }
 0x607   :  { %3817 = vst [vmem:[%s7041_s2 + $0x38] sm:$0xc] %v2066_v34 }
 0x60e   :  { %v6152_v19 = vpop.f32.mrb[10].mxu0 }
 0x60f   :  { %v6158_v24 = vpop.f32.mrb[10].mxu1  ;;  %2470 = vrot.lane.b32.xlu0 %v6152_v19, %s4415_s13  ;;  %v6162_v4 = vpop.f32.mrb[11].mxu0 }
 0x610   :  { %v6164_v48 = vpop.f32.mrb[11].mxu1  ;;  %v6168_v45 = vpack.i.bf16 %v6162_v4, %v6152_v19 }
 0x611   :  { %v6172_v60 = vpack.i.bf16 %v6164_v48, %v6158_v24 }
 0x613   :  { %4249 = vrot.lane.b32.xlu1 %v6172_v60, %s4416_s0  ;;  %2474 = vrot.lane.b32.xlu0 %v6158_v24, %s4415_s13 }
 0x617   :  { %2472 = vrot.lane.b32.xlu1 %v6162_v4, %s4415_s13  ;;  %4244 = vrot.lane.b32.xlu0 %v6168_v45, %s4416_s0 }
 0x61b   :  { %2476 = vrot.lane.b32.xlu1 %v6164_v48, %s4415_s13  ;;  %2896 = vrot.lane.b32.xlu0 %v7532_v20, %s4415_s13 }
 0x61f   :  { %2898 = vrot.lane.b32.xlu1 %v7533_v23, %s4415_s13  ;;  %4254 = vrot.lane.b32.xlu0 %v4253_v35, %s4417_s14 }
 0x623   :  { %4259 = vrot.lane.b32.xlu1 %v4258_v41, %s4417_s14  ;;  %4264 = vrot.lane.b32.xlu0 %v4253_v35, %s4418_s15 }
 0x627   :  { %4269 = vrot.lane.b32.xlu1 %v4258_v41, %s4418_s15 }
 0x681   :  { %v2471_v44 = vpop.permute.xlu0 %2470 }
 0x685   :  { %v4250_v51 = vpop.permute.xlu1 %4249  ;;  %v2475_v17 = vpop.permute.xlu0 %2474 }
 0x686   :  { %v4252_v59 = vunpack.i.h.bf16 %v4250_v51 }
 0x689   :  { %v2473_v26 = vpop.permute.xlu1 %2472  ;;  %v4245_v21 = vpop.permute.xlu0 %4244 }
 0x68a   :  { %v4247_v35 = vunpack.i.h.bf16 %v4245_v21  ;;  %v4246_v2 = vunpack.i.l.bf16 %v4245_v21 }
 0x68c   :  { %v2464_v41 = vsel %vm7519_vm9, %v4246_v2, %v4247_v35  ;;  %vm7551_vm9 = vmmov %vm7548_vm7 }
 0x68d   :  { %v2477_v6 = vpop.permute.xlu1 %2476  ;;  %v2897_v53 = vpop.permute.xlu0 %2896  ;;  %v6280_v55 = vsel %vm4498_vm4, %v6162_v4, %v2464_v41 }
 0x68e   :  { %v2901_v54 = vsel %vm7535_vm13, %v2895_v31, %v2897_v53  ;;  %v4251_v31 = vunpack.i.l.bf16 %v4250_v51  ;;  %vm7549_vm13 = vmmov %vm7548_vm7 }
 0x68f   :  { %v2909_v38 = vrot.slane %v2901_v54, 6 }
 0x690   :  { %v2463_v42 = vsel %vm7549_vm13, %v4247_v35, %v4251_v31  ;;  %v2462_v54 = vsel %vm7551_vm9, %v4251_v31, %v4252_v59  ;;  %v7562_v35 = vld [vmem:[#allocation34_spill] sm:$0xff] }
 0x691   :  { %v2899_v49 = vpop.permute.xlu1 %2898  ;;  %v6232_v62 = vsel %vm7254_vm10, %v7523_v43, %v2909_v38  ;;  %v6295_v38 = vsel %vm4502_vm5, %v6158_v24, %v2463_v42 }
 0x692   :  { %7538 = vst [vmem:[#allocation29_spill] sm:$0xff] %v6232_v62  ;;  %v2900_v61 = vsel %vm7539_vm8, %v2897_v53, %v2899_v49  ;;  %v2903_v34 = vsel %vm7540_vm11, %v2899_v49, %v2893_v27  ;;  %v2993_v36 = vrot.slane %v6232_v62, 2  ;;  %v2465_v27 = vsel %vm7548_vm7, %v4252_v59, %v4246_v2  ;;  %vm7550_vm11 = vmmov %vm7539_vm8 }
 0x693   :  { %v2910_v58 = vrot.slane %v2900_v61, 6  ;;  %v2911_v28 = vrot.slane %v2903_v34, 6  ;;  %v6275_v21 = vsel %vm4494_vm3, %v6152_v19, %v2465_v27  ;;  %v2479_v53 = vsel %vm7539_vm8, %v2473_v26, %v2475_v17  ;;  %vm7553_vm7 = vmmov %vm7539_vm8 }
 0x694   :  { %v4273_v32 = vpack.i.bf16 %v2993_v36, %v2992_v13  ;;  %v2480_v51 = vsel %vm7550_vm11, %v2471_v44, %v2473_v26  ;;  %v4323_v49 = vpack.i.bf16 %v6280_v55, %v6275_v21  ;;  %v2478_v26 = vsel %vm7553_vm7, %v2475_v17, %v2477_v6  ;;  %vm7554_vm13 = vmmov %vm7553_vm7 }
 0x695   :  { %v6243_v52 = vsel %vm7542_vm2, %v7529_v39, %v2910_v58  ;;  %v6248_v22 = vsel %vm7544_vm0, %v7526_v57, %v2911_v28  ;;  %v6302_v61 = vsel %vm7253_vm15, %v6152_v19, %v2480_v51  ;;  %v2481_v34 = vsel %vm7554_vm13, %v2477_v6, %v2471_v44  ;;  %v4260_v58 = vpop.permute.xlu1 %4259  ;;  %v4255_v28 = vpop.permute.xlu0 %4254 }
 0x696   :  { %7545 = vst [vmem:[#allocation38_spill] sm:$0xff] %v6248_v22  ;;  %v2994_v46 = vrot.slane %v6243_v52, 2  ;;  %v2995_v11 = vrot.slane %v6248_v22, 2  ;;  %4274 = vrot.lane.b32.xlu0 %v4273_v32, %s4417_s14  ;;  %v6326_v17 = vsel %vm7542_vm2, %v6158_v24, %v2478_v26  ;;  %v6331_v44 = vsel %vm7544_vm0, %v6164_v48, %v2481_v34  ;;  %v7556_v34 = vld [vmem:[#allocation33_spill] sm:$0xff] }
 0x697   :  { %v4338_v6 = vpack.i.bf16 %v6331_v44, %v6326_v17  ;;  %v2622_v2 = vrot.slane %v6302_v61, 6  ;;  %v4256_v59 = vunpack.i.l.bf16 %v4255_v28  ;;  %v2624_v31 = vrot.slane %v6326_v17, 6 }
 0x698   :  { %v4278_v47 = vpack.i.bf16 %v2995_v11, %v2994_v46  ;;  %v4257_v42 = vunpack.i.h.bf16 %v4255_v28  ;;  %vm7555_vm8 = vcmp.lt.s32.totalorder %v4471_v7, 16  ;;  %vm7557_vm11 = vcmask 1041408  }
 0x699   :  { %v4270_v32 = vpop.permute.xlu1 %4269  ;;  %vm7558_vm9 = vmmov %vm7555_vm8  ;;  %vm7560_vm13 = vcmp.lt.s32.totalorder %v4471_v7, 112 }
 0x69a   :  { %4279 = vrot.lane.b32.xlu1 %v4278_v47, %s4417_s14  ;;  %4284 = vrot.lane.b32.xlu0 %v7546_v8, %s4418_s15  ;;  %v4262_v47 = vunpack.i.h.bf16 %v4260_v58  ;;  %v4271_v41 = vunpack.i.l.bf16 %v4270_v32  ;;  %vm7559_vm7 = vmmov %vm7557_vm11 }
 0x69b   :  { %v6371_v28 = vsel %vm7559_vm7, %v6152_v19, %v2622_v2 }
 0x69e   :  { %4289 = vrot.lane.b32.xlu1 %v7547_v3, %s4418_s15  ;;  %4294 = vrot.lane.b32.xlu0 %v7546_v8, %s4417_s14  ;;  %v4265_v8 = vpop.permute.xlu0 %4264 }
 0x69f   :  { %v4267_v51 = vunpack.i.h.bf16 %v4265_v8 }
 0x6a2   :  { %4299 = vrot.lane.b32.xlu1 %v7547_v3, %s4417_s14  ;;  %3084 = vrot.lane.b32.xlu0 %v2992_v13, %s4418_s15  ;;  %v6318_v13 = vsel %vm4506_vm6, %v6164_v48, %v2462_v54  ;;  %v4261_v3 = vunpack.i.l.bf16 %v4260_v58  ;;  %v4266_v54 = vunpack.i.l.bf16 %v4265_v8 }
 0x6a6   :  { %3086 = vrot.lane.b32.xlu1 %v2993_v36, %s4418_s15  ;;  %4304 = vrot.lane.b32.xlu0 %v6168_v45, %s4417_s14  ;;  %v4328_v36 = vpack.i.bf16 %v6318_v13, %v6295_v38 }
 0x6aa   :  { %4309 = vrot.lane.b32.xlu1 %v6172_v60, %s4417_s14  ;;  %4314 = vrot.lane.b32.xlu0 %v6168_v45, %s4418_s15  ;;  %v6307_v45 = vsel %vm7254_vm10, %v6162_v4, %v2479_v53  ;;  %v2943_v53 = vsel %vm7555_vm8, %v4262_v47, %v4256_v59  ;;  %vm7561_vm8 = vmmov %vm7559_vm7 }
 0x6ab   :  { %7552 = vst [vmem:[#allocation40_spill] sm:$0xff] %v6307_v45  ;;  %v2948_v58 = vrot.slane %v2943_v53, 6 }
 0x6ae   :  { %4319 = vrot.lane.b32.xlu1 %v6172_v60, %s4418_s15  ;;  %4324 = vrot.lane.b32.xlu0 %v4323_v49, %s4418_s15  ;;  %v4333_v60 = vpack.i.bf16 %v6307_v45, %v6302_v61 }
 0x6b2   :  { %4329 = vrot.lane.b32.xlu1 %v4328_v36, %s4418_s15  ;;  %4334 = vrot.lane.b32.xlu0 %v4333_v60, %s4417_s14  ;;  %v2623_v60 = vrot.slane %v6307_v45, 6 }
 0x6b6   :  { %4339 = vrot.lane.b32.xlu1 %v4338_v6, %s4417_s14  ;;  %4344 = vrot.lane.b32.xlu0 %v4323_v49, %s4417_s14  ;;  %v4272_v49 = vunpack.i.h.bf16 %v4270_v32  ;;  %v2941_v6 = vsel %vm7558_vm9, %v4257_v42, %v4261_v3  ;;  %v2625_v32 = vrot.slane %v6331_v44, 6  ;;  %vm7564_vm9 = vmmov %vm7560_vm13 }
 0x6b7   :  { %v2950_v63 = vrot.slane %v2941_v6, 6  ;;  %v3038_v8 = vsel %vm7564_vm9, %v4266_v54, %v4267_v51 }
 0x6ba   :  { %4349 = vrot.lane.b32.xlu1 %v4328_v36, %s4417_s14  ;;  %2566 = vrot.lane.b32.xlu0 %v6302_v61, %s4418_s15  ;;  %v6363_v36 = vsel %vm7557_vm11, %v7556_v34, %v6227_v30  ;;  %vm7563_vm11 = vmmov %vm7559_vm7 }
 0x6bb   :  { %v3189_v27 = vsel %vm7563_vm11, %v7562_v35, %v6232_v62  ;;  %vm7565_vm7 = vmmov %vm7564_vm9  ;;  %v6400_v35 = vsel %vm7561_vm8, %v7533_v23, %v6248_v22  ;;  %vm7570_vm9 = vcmp.lt.s32.totalorder %v4471_v7, 16  ;;  %v6419_v23 = vsel %vm4605_vm12, %v6185_v29, %v2948_v58 }
 0x6bc   :  { %v3039_v56 = vsel %vm7565_vm7, %v4272_v49, %v4266_v54  ;;  %7568 = vst [vmem:[#allocation21_spill] sm:$0xff] %v6400_v35  ;;  %vm7569_vm11 = vmmov %vm7561_vm8  ;;  %v2942_v54 = vsel %vm7570_vm9, %v4256_v59, %v4257_v42 }
 0x6bd   :  { %vm7571_vm7 = vmmov %vm7561_vm8 }
 0x6be   :  { %2568 = vrot.lane.b32.xlu1 %v6307_v45, %s4418_s15  ;;  %2570 = vrot.lane.b32.xlu0 %v6326_v17, %s4418_s15  ;;  %v6410_v40 = vsel %vm7571_vm7, %v6164_v48, %v2625_v32  ;;  %vm7575_vm7 = vmmov %vm7570_vm9 }
 0x6bf   :  { %vm7577_vm0 = vmmov %vm7575_vm7 }
 0x6c2   :  { %2572 = vrot.lane.b32.xlu1 %v6331_v44, %s4418_s15  ;;  %3088 = vrot.lane.b32.xlu0 %v2994_v46, %s4418_s15  ;;  %v3037_v46 = vsel %vm7560_vm13, %v4267_v51, %v4271_v41  ;;  %vm7566_vm13 = vmmov %vm7561_vm8  ;;  %v6404_v51 = vsel %vm7569_vm11, %v6162_v4, %v2623_v60  ;;  %v3047_v60 = vrot.slane %v3039_v56, 6  ;;  %vm7574_vm11 = vcmp.lt.s32.totalorder %v4471_v7, 112 }
 0x6c3   :  { %v3045_v53 = vrot.slane %v3037_v46, 6  ;;  %v3836_v46 = vrot.slane %v3038_v8, 12  ;;  %v6433_v8 = vsel %vm7574_vm11, %v4271_v41, %v4272_v49 }
 0x6c6   :  { %3090 = vrot.lane.b32.xlu1 %v2995_v11, %s4418_s15  ;;  %v6380_v11 = vsel %vm7561_vm8, %v6158_v24, %v2624_v31  ;;  %v6395_v31 = vsel %vm7566_vm13, %v7532_v20, %v6243_v52  ;;  %vm7572_vm13 = vmmov %vm7570_vm9  ;;  %vm7573_vm8 = vnez %v7179_v15 }
 0x6c7   :  { %7567 = vst [vmem:[#allocation39_spill] sm:$0xff] %v6395_v31  ;;  %v6414_v20 = vsel %vm7572_vm13, %v4261_v3, %v4262_v47  ;;  %v6424_v59 = vsel %vm7573_vm8, %v6206_v25, %v2950_v63  ;;  %v3053_v47 = vsel %vm4620_vm1, %v6190_v12, %v3045_v53  ;;  %v6442_v53 = vsel %vm4612_vm14, %v6201_v50, %v3047_v60  ;;  %vm7576_vm13 = vmmov %vm7574_vm11 }
 0x6c8   :  { %v3149_v49 = vrot.slane %v3053_v47, 6  ;;  %vm7578_vm11 = vmmov %vm7577_vm0  ;;  %v3118_v31 = vrot.slane %v6424_v59, 2 }
 0x708   :  { %v4275_v26 = vpop.permute.xlu0 %4274 }
 0x709   :  { %v4277_v42 = vunpack.i.h.bf16 %v4275_v26  ;;  %v4276_v32 = vunpack.i.l.bf16 %v4275_v26 }
 0x70b   :  { %v3010_v9 = vsel %vm7578_vm11, %v4276_v32, %v4277_v42  ;;  %vm7582_vm11 = vmmov %vm7575_vm7 }
 0x70c   :  { %v4280_v2 = vpop.permute.xlu1 %4279  ;;  %v6389_v18 = vpop.permute.xlu0 %4284 }
 0x70d   :  { %v4282_v6 = vunpack.i.h.bf16 %v4280_v2  ;;  %v4281_v34 = vunpack.i.l.bf16 %v4280_v2  ;;  %v4287_v3 = vunpack.i.h.bf16 %v6389_v18  ;;  %v4286_v62 = vunpack.i.l.bf16 %v6389_v18 }
 0x70e   :  { %v3834_v18 = vrot.slane %v3010_v9, 12 }
 0x70f   :  { %v3009_v63 = vsel %vm7570_vm9, %v4277_v42, %v4281_v34  ;;  %v3011_v26 = vsel %vm7575_vm7, %v4282_v6, %v4276_v32  ;;  %vm7579_vm9 = vmmov %vm7577_vm0 }
 0x710   :  { %v4290_v0 = vpop.permute.xlu1 %4289  ;;  %v4295_v37 = vpop.permute.xlu0 %4294  ;;  %v3008_v60 = vsel %vm7579_vm9, %v4281_v34, %v4282_v6  ;;  %v3016_v35 = vrot.slane %v3011_v26, 6 }
 0x711   :  { %v4291_v2 = vunpack.i.l.bf16 %v4290_v0  ;;  %v4297_v58 = vunpack.i.h.bf16 %v4295_v37  ;;  %v4296_v33 = vunpack.i.l.bf16 %v4295_v37  ;;  %v4292_v1 = vunpack.i.h.bf16 %v4290_v0 }
 0x712   :  { %v3018_v0 = vrot.slane %v3009_v63, 6  ;;  %v3835_v6 = vrot.slane %v3008_v60, 12 }
 0x713   :  { %v3065_v37 = vsel %vm7576_vm13, %v4287_v3, %v4291_v2  ;;  %v2970_v56 = vsel %vm7577_vm0, %v4296_v33, %v4297_v58  ;;  %vm7580_vm0 = vmmov %vm7576_vm13  ;;  %vm7581_vm13 = vcmask 1043456  }
 0x714   :  { %v4300_v41 = vpop.permute.xlu1 %4299  ;;  %v6450_v25 = vpop.permute.xlu0 %3084  ;;  %v3073_v12 = vrot.slane %v3065_v37, 6  ;;  %v2977_v47 = vrot.slane %v2970_v56, 6  ;;  %v3067_v42 = vsel %vm7580_vm0, %v4292_v1, %v4286_v62  ;;  %v6466_v34 = vsel %vm7581_vm13, %v6363_v36, %v3836_v46  ;;  %vm7583_vm9 = vmmov %vm7581_vm13 }
 0x715   :  { %v4302_v22 = vunpack.i.h.bf16 %v4300_v41  ;;  %v4301_v29 = vunpack.i.l.bf16 %v4300_v41  ;;  %v6471_v26 = vsel %vm7583_vm9, %v3189_v27, %v3149_v49  ;;  %v6476_v37 = vsel %vm4605_vm12, %v6227_v30, %v3016_v35 }
 0x716   :  { %v6485_v9 = vsel %vm7580_vm0, %v4291_v2, %v4292_v1  ;;  %v3075_v36 = vrot.slane %v3067_v42, 6  ;;  %v6492_v46 = vsel %vm4620_vm1, %v7523_v43, %v3073_v12  ;;  %vm7584_vm13 = vcmask 1041408  }
 0x717   :  { %v2971_v32 = vsel %vm7575_vm7, %v4302_v22, %v4296_v33  ;;  %v2968_v63 = vsel %vm7582_vm11, %v4301_v29, %v4302_v22  ;;  %v6481_v33 = vsel %vm7573_vm8, %v6243_v52, %v3018_v0  ;;  %v2969_v22 = vsel %vm7575_vm7, %v4297_v58, %v4301_v29  ;;  %vm7585_vm11 = vmmov %vm7580_vm0 }
 0x718   :  { %v6462_v41 = vpop.permute.xlu1 %3086  ;;  %v4305_v56 = vpop.permute.xlu0 %4304  ;;  %v2976_v27 = vrot.slane %v2971_v32, 6  ;;  %v3177_v30 = vsel %vm7584_vm13, %v2942_v54, %v2977_v47  ;;  %v6497_v52 = vsel %vm7585_vm11, %v4286_v62, %v4287_v3  ;;  %v2979_v35 = vrot.slane %v2968_v63, 6  ;;  %vm7586_vm0 = vmmov %vm7575_vm7 }
 0x719   :  { %v4307_v49 = vunpack.i.h.bf16 %v4305_v56  ;;  %v4306_v1 = vunpack.i.l.bf16 %v4305_v56  ;;  %v2978_v29 = vrot.slane %v2969_v22, 6  ;;  %v6504_v54 = vsel %vm7583_vm9, %v3177_v30, %v3834_v18  ;;  %vm7587_vm7 = vmmov %vm7586_vm0 }
 0x71a   :  { %v2984_v62 = vsel %vm4605_vm12, %v7520_v5, %v2976_v27  ;;  %v6516_v63 = vsel %vm4612_vm14, %v7526_v57, %v3075_v36  ;;  %vm7588_vm13 = vmmov %vm7586_vm0  ;;  %vm7589_vm11 = vcmask 1041408  }
 0x71b   :  { %v6520_v56 = vsel %vm7588_vm13, %v4306_v1, %v4307_v49  ;;  %v3179_v5 = vsel %vm7589_vm11, %v6414_v20, %v2979_v35  ;;  %v2986_v27 = vsel %vm7573_vm8, %v7529_v39, %v2978_v29  ;;  %vm7590_vm9 = vmmov %vm7586_vm0  ;;  %vm7594_vm13 = vcmp.lt.s32.totalorder %v4471_v7, 112 }
 0x71c   :  { %v4310_v2 = vpop.permute.xlu1 %4309  ;;  %v4315_v42 = vpop.permute.xlu0 %4314  ;;  %v2587_v43 = vrot.slane %v6520_v56, 6 }
 0x71d   :  { %v4312_v58 = vunpack.i.h.bf16 %v4310_v2  ;;  %v4311_v0 = vunpack.i.l.bf16 %v4310_v2  ;;  %v4317_v18 = vunpack.i.h.bf16 %v4315_v42  ;;  %v4316_v22 = vunpack.i.l.bf16 %v4315_v42 }
 0x71f   :  { %v2511_v3 = vsel %vm7586_vm0, %v4307_v49, %v4311_v0  ;;  %v2513_v47 = vsel %vm7587_vm7, %v4312_v58, %v4306_v1  ;;  %v6529_v2 = vsel %vm7590_vm9, %v4311_v0, %v4312_v58  ;;  %vm7591_vm0 = vcmask 1043456   ;;  %vm7593_vm7 = vmmov %vm7589_vm11 }
 0x720   :  { %v4320_v30 = vpop.permute.xlu1 %4319  ;;  %v2514_v57 = vsel %vm4605_vm12, %v6152_v19, %v2513_v47  ;;  %v4325_v49 = vpop.permute.xlu0 %4324  ;;  %v2516_v1 = vsel %vm7573_vm8, %v6158_v24, %v2511_v3  ;;  %v6540_v29 = vsel %vm7591_vm0, %v3179_v5, %v3835_v6  ;;  %v7592_v58 = vrot.slane %v6419_v23, 2  ;;  %vm7595_vm11 = vmmov %vm7594_vm13 }
 0x721   :  { %v4322_v36 = vunpack.i.h.bf16 %v4320_v30  ;;  %v4321_v42 = vunpack.i.l.bf16 %v4320_v30  ;;  %v4327_v20 = vunpack.i.h.bf16 %v4325_v49  ;;  %v4326_v35 = vunpack.i.l.bf16 %v4325_v49  ;;  %vm7596_vm9 = vmmov %vm7595_vm11 }
 0x722   :  { %v6545_v19 = vsel %vm7593_vm7, %v7592_v58, %v2984_v62  ;;  %v2589_v0 = vrot.slane %v6529_v2, 6  ;;  %v2560_v24 = vsel %vm7594_vm13, %v4316_v22, %v4317_v18  ;;  %v6554_v30 = vrot.slane %v2514_v57, 6  ;;  %vm7597_vm0 = vmmov %vm7596_vm9 }
 0x723   :  { %v2561_v3 = vsel %vm7595_vm11, %v4322_v36, %v4316_v22  ;;  %v2544_v47 = vsel %vm7596_vm9, %v4326_v35, %v4327_v20  ;;  %v6556_v6 = vrot.slane %v2516_v1, 6  ;;  %v6560_v23 = vsel %vm7597_vm0, %v4321_v42, %v4322_v36  ;;  %vm7598_vm7 = vmmov %vm7597_vm0 }
 0x724   :  { %v4330_v56 = vpop.permute.xlu1 %4329  ;;  %v2559_v62 = vsel %vm7598_vm7, %v4317_v18, %v4321_v42  ;;  %v4335_v5 = vpop.permute.xlu0 %4334  ;;  %v2634_v49 = vrot.slane %v2544_v47, 4  ;;  %v2646_v45 = vrot.slane %v2560_v24, 2  ;;  %v2565_v57 = vsel %vm4612_vm14, %v6164_v48, %v2561_v3  ;;  %vm7600_vm11 = vmmov %vm7597_vm0 }
 0x725   :  { %v4332_v58 = vunpack.i.h.bf16 %v4330_v56  ;;  %v4331_v39 = vunpack.i.l.bf16 %v4330_v56  ;;  %v4337_v22 = vunpack.i.h.bf16 %v4335_v5  ;;  %v4336_v50 = vunpack.i.l.bf16 %v4335_v5  ;;  %vm7601_vm9 = vmmov %vm7597_vm0 }
 0x726   :  { %vm7599_vm13 = vcmask 1041408   ;;  %v2563_v18 = vsel %vm4620_vm1, %v6162_v4, %v2559_v62  ;;  %vm7602_vm7 = vcmp.lt.s32.totalorder %v4471_v7, 16  ;;  %v2649_v47 = vrot.slane %v2565_v57, 2 }
 0x727   :  { %v6570_v1 = vsel %vm7599_vm13, %v3118_v31, %v2986_v27  ;;  %v2542_v36 = vsel %vm7600_vm11, %v4331_v39, %v4332_v58  ;;  %v2543_v42 = vsel %vm7601_vm9, %v4327_v20, %v4331_v39  ;;  %v2545_v24 = vsel %vm7597_vm0, %v4332_v58, %v4326_v35  ;;  %vm7604_vm11 = vmmov %vm7602_vm7 }
 0x728   :  { %v4340_v48 = vpop.permute.xlu1 %4339  ;;  %v2547_v31 = vsel %vm4620_vm1, %v6280_v55, %v2543_v42  ;;  %v2549_v4 = vsel %vm4612_vm14, %v6318_v13, %v2545_v24  ;;  %v2528_v59 = vsel %vm7602_vm7, %v4336_v50, %v4337_v22  ;;  %v4345_v27 = vpop.permute.xlu0 %4344  ;;  %v2636_v20 = vrot.slane %v2542_v36, 4  ;;  %vm7605_vm9 = vmmov %vm7602_vm7 }
 0x729   :  { %v4342_v39 = vunpack.i.h.bf16 %v4340_v48  ;;  %vm7603_vm13 = vcmask 1043456   ;;  %v2635_v56 = vrot.slane %v2547_v31, 4  ;;  %v4341_v62 = vunpack.i.l.bf16 %v4340_v48  ;;  %vm7606_vm0 = vmmov %vm7602_vm7 }
 0x72a   :  { %v2670_v35 = vsel %vm7603_vm13, %v6371_v28, %v2634_v49  ;;  %v4347_v5 = vunpack.i.h.bf16 %v4345_v27  ;;  %v4346_v58 = vunpack.i.l.bf16 %v4345_v27  ;;  %v2647_v60 = vrot.slane %v2563_v18, 2  ;;  %vm7607_vm7 = vmmov %vm7606_vm0 }
 0x72b   :  { %v2637_v42 = vrot.slane %v2549_v4, 4  ;;  %v2599_v12 = vrot.slane %v2528_v59, 4  ;;  %v2529_v24 = vsel %vm7604_vm11, %v4342_v39, %v4336_v50  ;;  %v2526_v3 = vsel %vm7605_vm9, %v4341_v62, %v4342_v39 }
 0x72c   :  { %v4350_v32 = vpop.permute.xlu1 %4349  ;;  %v2527_v57 = vsel %vm7606_vm0, %v4337_v22, %v4341_v62  ;;  %v2530_v28 = vsel %vm4605_vm12, %v6302_v61, %v2529_v24  ;;  %v2496_v49 = vsel %vm7607_vm7, %v4346_v58, %v4347_v5  ;;  %v6603_v18 = vpop.permute.xlu0 %2566  ;;  %vm7608_vm13 = vcmask 1041408  }
 0x72d   :  { %v2532_v50 = vsel %vm7573_vm8, %v6326_v17, %v2527_v57  ;;  %v2655_v36 = vsel %vm7608_vm13, %v2496_v49, %v2587_v43  ;;  %vm7609_vm11 = vcmask 1045504   ;;  %vm7610_vm9 = vcmask 1043456  }
 0x72e   :  { %v2674_v48 = vsel %vm7609_vm11, %v2670_v35, %v2646_v45  ;;  %v2672_v22 = vsel %vm7610_vm9, %v6380_v11, %v2636_v20  ;;  %v4352_v31 = vunpack.i.h.bf16 %v4350_v32  ;;  %v4351_v4 = vunpack.i.l.bf16 %v4350_v32  ;;  %vm7611_vm0 = vmmov %vm7610_vm9 }
 0x72f   :  { %v2659_v61 = vsel %vm7611_vm0, %v2655_v36, %v2599_v12  ;;  %vm7612_vm2 = vmmov %vm7611_vm0  ;;  %v2598_v27 = vrot.slane %v2530_v28, 4  ;;  %v2601_v39 = vrot.slane %v2526_v3, 4  ;;  %v7613_v24 = vrot.slane %v6280_v55, 2 }
 0x730   :  { %v2671_v59 = vsel %vm7612_vm2, %v6404_v51, %v2635_v56  ;;  %v2569_v62 = vpop.permute.xlu1 %2568  ;;  %vm7614_vm7 = vmmov %vm7609_vm11  ;;  %v2600_v43 = vrot.slane %v2532_v50, 4  ;;  %vm7616_vm11 = vcmp.lt.s32.totalorder %v4471_v7, 16  ;;  %v2571_v12 = vpop.permute.xlu0 %2570  ;;  %vm7619_vm2 = vcmask 1041408  }
 0x731   :  { %v2663_v17 = vsel %vm7614_vm7, %v2659_v61, %v7613_v24  ;;  %vm7615_vm13 = vmmov %vm7611_vm0  ;;  %v2494_v11 = vsel %vm7616_vm11, %v4351_v4, %v4352_v31  ;;  %v2675_v20 = vsel %vm7614_vm7, %v2671_v59, %v2647_v60  ;;  %v7623_v57 = vrot.slane %v6318_v13, 2 }
 0x732   :  { %v2673_v45 = vsel %vm7615_vm13, %v6410_v40, %v2637_v42  ;;  %vm7617_vm9 = vmmov %vm7616_vm11  ;;  %v2657_v40 = vsel %vm7619_vm2, %v2494_v11, %v2589_v0  ;;  %v7630_v13 = vrot.slane %v6275_v21, 2  ;;  %v7635_v59 = vrot.slane %v6560_v23, 2 }
 0x733   :  { %v2495_v32 = vsel %vm7617_vm9, %v4347_v5, %v4351_v4  ;;  %vm7618_vm0 = vmmov %vm7617_vm9  ;;  %v3904_v5 = vpack.c.bf16 %v2675_v20, %v2663_v17  ;;  %vm7622_vm9 = vcmask 1043456   ;;  %v7633_v4 = vrot.slane %v6295_v38, 2 }
 0x734   :  { %v2497_v51 = vsel %vm7618_vm0, %v4352_v31, %v4346_v58  ;;  %v2500_v3 = vsel %vm7573_vm8, %v6295_v38, %v2495_v32  ;;  %vm7620_vm13 = vmmov %vm7619_vm2  ;;  %v2661_v58 = vsel %vm7622_vm9, %v2657_v40, %v2601_v39  ;;  %v2573_v42 = vpop.permute.xlu1 %2572  ;;  %v3089_v49 = vpop.permute.xlu0 %3088  ;;  %v7637_v17 = vrot.slane %v6481_v33, 6  ;;  %v7639_v38 = vld [vmem:[#allocation40_spill] sm:$0xff] }
 0x735   :  { %v2498_v55 = vsel %vm4605_vm12, %v6275_v21, %v2497_v51  ;;  %vm7621_vm11 = vmmov %vm7619_vm2  ;;  %3905 = vmatprep.subr.bf16.mxu0 %v3904_v5  ;;  %v7643_v32 = vrot.slane %v6492_v46, 4  ;;  %v7645_v33 = vrot.slane %v6476_v37, 6  ;;  %v3838_v51 = vrot.slane %v6497_v52, 10  ;;  %v7652_v37 = vld [vmem:[#allocation39_spill] sm:$0xff] }
 0x736   :  { %v2654_v35 = vsel %vm7620_vm13, %v2498_v55, %v6554_v30  ;;  %v2656_v56 = vsel %vm7621_vm11, %v2500_v3, %v6556_v6  ;;  %vm7624_vm0 = vmmov %vm7614_vm7  ;;  %vm7628_vm7 = vcmp.lt.s32.totalorder %v4471_v7, 112 }
 0x737   :  { %v2665_v28 = vsel %vm7624_vm0, %v2661_v58, %v7623_v57  ;;  %vm7625_vm8 = vmmov %vm7624_vm0  ;;  %v2575_v30 = vsel %vm7628_vm7, %v2569_v62, %v2571_v12  ;;  %v7659_v58 = vld [vmem:[#allocation12_spill] sm:$0xff] }
 0x738   :  { %v2677_v2 = vsel %vm7625_vm8, %v2673_v45, %v2649_v47  ;;  %vm7626_vm12 = vmmov %vm7622_vm9  ;;  %v2579_v45 = vsel %vm4620_vm1, %v7639_v38, %v2575_v30  ;;  %v3091_v23 = vpop.permute.xlu1 %3090  ;;  %v7660_v57 = vrot.slane %v7659_v58, 4 }
 0x739   :  { %v2658_v0 = vsel %vm7626_vm12, %v2654_v35, %v2598_v27  ;;  %vm7627_vm2 = vmmov %vm7622_vm9  ;;  %v3908_v50 = vpack.c.bf16 %v2677_v2, %v2665_v28  ;;  %v7656_v35 = vrot.slane %v6442_v53, 6  ;;  %v2453_v28 = vld [vmem:[%s7040_s1 + $0x16] sm:$0x3] }
 0x73a   :  { %v2660_v60 = vsel %vm7627_vm2, %v2656_v56, %v2600_v43  ;;  %vm7629_vm13 = vmmov %vm7628_vm7  ;;  %v7640_v43 = vld [vmem:[#allocation37_spill] sm:$0xff] }
 0x73b   :  { %v2577_v6 = vsel %vm7629_vm13, %v2573_v42, %v6603_v18  ;;  %vm7631_vm11 = vmmov %vm7624_vm0  ;;  %3909 = vmatprep.subr.bf16.mxu1 %v3908_v50  ;;  %v7657_v56 = vld [vmem:[#allocation21_spill] sm:$0xff] }
 0x73c   :  { %v2662_v36 = vsel %vm7631_vm11, %v2658_v0, %v7630_v13  ;;  %vm7632_vm8 = vmmov %vm7628_vm7  ;;  %v2581_v21 = vsel %vm4612_vm14, %v6331_v44, %v2577_v6  ;;  %vm7647_vm11 = vcmask 1041408   ;;  %v7662_v0 = vrot.slane %v6516_v63, 4  ;;  %v7668_v13 = vld [vmem:[#allocation38_spill] sm:$0xff] }
 0x73d   :  { %v3093_v47 = vsel %vm7632_vm8, %v6462_v41, %v3089_v49  ;;  %v3906_v31 = vpack.c.bf16 %v2674_v48, %v2662_v36  ;;  %vm7634_vm12 = vmmov %vm7624_vm0  ;;  %v3095_v55 = vsel %vm7632_vm8, %v3091_v23, %v6450_v25  ;;  %v7670_v36 = vrot.slane %v6485_v9, 10 }
 0x73e   :  { %v2664_v61 = vsel %vm7634_vm12, %v2660_v60, %v7633_v4  ;;  %vm7636_vm9 = vmmov %vm7624_vm0  ;;  %v3101_v39 = vrot.slane %v3093_v47, 6  ;;  %v3103_v20 = vrot.slane %v3095_v55, 6  ;;  %v7664_v60 = vld [vmem:[#allocation28_spill] sm:$0xff]  ;;  %v7678_v9 = vmov 0.0  }
 0x73f   :  { %v2676_v27 = vsel %vm7636_vm9, %v2672_v22, %v7635_v59  ;;  %vm7638_vm0 = vmmov %vm7627_vm2  ;;  %3907 = vmatpush1.bf16.msra.mxu0 %v3906_v31  ;;  %v7641_v22 = vrot.slane %v7640_v43, 4  ;;  %v7665_v30 = vrot.slane %v7664_v60, 4 }
 0x740   :  { %v3910_v24 = vpack.c.bf16 %v2676_v27, %v2664_v61  ;;  %v3182_v48 = vsel %vm7638_vm0, %v6570_v1, %v7637_v17  ;;  %vm7642_vm2 = vmmov %vm7636_vm9  ;;  %3824 = vmatprep.subr.msk.mxu0 %vm7647_vm11, %v2579_v45  ;;  %v2851_v61 = vld [vmem:[%s7040_s1 + $0x18] sm:$0x3] }
 0x741   :  { %v3185_v11 = vsel %vm7642_vm2, %v6504_v54, %v7641_v22  ;;  %vm7644_vm7 = vmmov %vm7642_vm2  ;;  %v7648_v54 = vld [vmem:[#allocation10_spill] sm:$0xff] }
 0x742   :  { %v3197_v44 = vsel %vm7644_vm7, %v6471_v26, %v7643_v32  ;;  %vm7646_vm13 = vmmov %vm7638_vm0  ;;  %3911 = vmatpush1.bf16.msra.mxu1 %v3910_v24  ;;  %v7649_v3 = vrot.slane %v7648_v54, 4  ;;  %v7651_v26 = vrot.slane %v6433_v8, 12 }
 0x743   :  { %v3180_v1 = vsel %vm7646_vm13, %v6545_v19, %v7645_v33  ;;  %vm7650_vm12 = vmmov %vm7642_vm2  ;;  %v7654_v19 = vld [vmem:[#allocation29_spill] sm:$0xff]  ;;  %v3912_v2 = vpack.c.bf16 %v3197_v44, %v3185_v11 }
 0x744   :  { %v3187_v46 = vsel %vm7650_vm12, %v6540_v29, %v7649_v3  ;;  %vm7653_vm9 = vmmov %vm7638_vm0  ;;  %v3109_v52 = vsel %vm4620_vm1, %v7654_v19, %v3101_v39  ;;  %v3186_v29 = vsel %vm7644_vm7, %v3182_v48, %v7660_v57 }
 0x745   :  { %v3194_v40 = vsel %vm7653_vm9, %v7652_v37, %v7651_v26  ;;  %vm7655_vm0 = vmmov %vm7647_vm11  ;;  %v3173_v47 = vrot.slane %v3109_v52, 2 }
 0x746   :  { %3827 = vmatprep.subr.msk.mxu1 %vm7655_vm0, %v2581_v21  ;;  %vm7658_vm2 = vmmov %vm7653_vm9 }
 0x747   :  { %v3195_v5 = vsel %vm7658_vm2, %v7657_v56, %v7656_v35  ;;  %vm7661_vm13 = vmmov %vm7632_vm8 }
 0x748   :  { %v2576_v8 = vsel %vm7661_vm13, %v6603_v18, %v2569_v62  ;;  %vm7663_vm11 = vmmov %vm7644_vm7  ;;  %v3111_v18 = vsel %vm4612_vm14, %v7668_v13, %v3103_v20 }
 0x749   :  { %v3199_v53 = vsel %vm7663_vm11, %v3195_v5, %v7662_v0  ;;  %vm7666_vm8 = vmmov %vm7644_vm7  ;;  %v3175_v31 = vrot.slane %v3111_v18, 2  ;;  %v7697_v18 = vld [vmem:[#allocation9_spill] sm:$0xff] }
 0x74a   :  { %v3184_v6 = vsel %vm7666_vm8, %v3180_v1, %v7665_v30  ;;  %vm7667_vm12 = vmmov %vm7661_vm13  ;;  %v3916_v62 = vpack.c.bf16 %v3199_v53, %v3187_v46  ;;  %vm7674_vm13 = vcmask 146432  }
 0x74b   :  { %v2574_v50 = vsel %vm7667_vm12, %v2571_v12, %v2573_v42  ;;  %vm7669_vm9 = vmmov %vm7655_vm0 }
 0x74c   :  { %3825 = vmatpush1.msk.msra.mxu0 %vm7669_vm9, %v2576_v8  ;;  %vm7671_vm0 = vmmov %vm7644_vm7 }
 0x74d   :  { %v3198_v63 = vsel %vm7671_vm0, %v3194_v40, %v7670_v36  ;;  %vm7672_vm2 = vmmov %vm7669_vm9  ;;  %3913 = vmatprep.subr.bf16.mxu0 %v3912_v2  ;;  %vm7679_vm9 = vcmp.lt.s32.totalorder %v4471_v7, 112  ;;  %v7699_v36 = vld [vmem:[#allocation7_spill] sm:$0xff] }
 0x74e   :  { %3828 = vmatpush1.msk.msra.mxu1 %vm7672_vm2, %v2574_v50  ;;  %vm7673_vm7 = vmmov %vm7671_vm0  ;;  %v3918_v12 = vpack.c.bf16 %v3198_v63, %v3186_v29 }
 0x74f   :  { %v3196_v4 = vsel %vm7673_vm7, %v6466_v34, %v3838_v51  ;;  %3829 = vmatmul.mubr.msk.f32.vlgmr.msra.gmra.mrb[12].mxu1 %vm7674_vm13, %v2453_v28  ;;  %3917 = vmatprep.subr.bf16.mxu1 %v3916_v62  ;;  %vm7675_vm11 = vmmov %vm7674_vm13  ;;  %v3092_v34 = vsel %vm7679_vm9, %v3089_v49, %v3091_v23 }
 0x750   :  { %v3914_v42 = vpack.c.bf16 %v3196_v4, %v3184_v6  ;;  %3826 = vmatmul.mubr.msk.f32.vlgmr.msra.gmra.mrb[12].mxu0 %vm7675_vm11, %v2453_v28  ;;  %3919 = vmatpush1.bf16.msra.mxu1 %v3918_v12  ;;  %vm7676_vm8 = vmmov %vm7672_vm2 }
 0x751   :  { %3845 = vmatprep.subr.msk.mxu1 %vm7676_vm8, %v3175_v31  ;;  %vm7677_vm12 = vmmov %vm7672_vm2  ;;  %3275 = vmatprep.mubr.f32.mxu0 %v7678_v9  ;;  %vm7683_vm8 = vcmp.lt.s32.totalorder %v4471_v7, 1 }
 0x752   :  { %3915 = vmatpush1.bf16.msra.mxu0 %v3914_v42  ;;  %3346 = vmatprep.mubr.f32.mxu1 %v7678_v9  ;;  %vm7680_vm0 = vmmov %vm7679_vm9 }
 0x753   :  { %3842 = vmatprep.subr.msk.mxu0 %vm7677_vm12, %v3173_v47  ;;  %v3094_v59 = vsel %vm7680_vm0, %v6450_v25, %v6462_v41  ;;  %vm7681_vm7 = vmmov %vm7672_vm2 }
 0x754   :  { %3846 = vmatpush1.msk.msra.mxu1 %vm7672_vm2, %v3092_v34  ;;  %vm7682_vm13 = vmmov %vm7675_vm11 }
 0x755   :  { %3847 = vmatmul.mubr.msk.f32.vlgmr.msra.gmra.mrb[14].mxu1 %vm7682_vm13, %v2851_v61  ;;  %vm7685_vm12 = vmmov %vm7683_vm8 }
 0x756   :  { %3843 = vmatpush1.msk.msra.mxu0 %vm7681_vm7, %v3094_v59  ;;  %3728 = vmatprep.mubr.f32.mxu1 %v7678_v9  ;;  %vm7686_vm9 = vmmov %vm7683_vm8 }
 0x757   :  { %3844 = vmatmul.mubr.msk.f32.vlgmr.msra.gmra.mrb[14].mxu0 %vm7675_vm11, %v2851_v61  ;;  %vm7687_vm0 = vmmov %vm7683_vm8 }
 0x758   :  { %3657 = vmatprep.mubr.f32.mxu0 %v7678_v9 }
 0x822   :  { %v2830_v49 = vpop.f32.mrb[12].mxu1 }
 0x823   :  { %v2845_v27 = vrot.slane %v2830_v49, 4  ;;  %v2759_v39 = vpop.f32.mrb[12].mxu0  ;;  %v2832_v24 = vpop.f32.mrb[13].mxu1 }
 0x824   :  { %v2837_v21 = vrot.slane %v2759_v39, 4  ;;  %v2846_v17 = vrot.slane %v2832_v24, 4  ;;  %v2761_v48 = vpop.f32.mrb[13].mxu0 }
 0x825   :  { %3830 = vst [vmem:[%s7041_s2 + $0x30] sm:$0x30] %v2845_v27  ;;  %v2838_v25 = vrot.slane %v2761_v48, 4 }
 0x826   :  { %2841 = vst [vmem:[%s7041_s2 + $0x10] sm:$0x30] %v2837_v21  ;;  %3831 = vst [vmem:[%s7041_s2 + $0x38] sm:$0x30] %v2846_v17 }
 0x827   :  { %2842 = vst [vmem:[%s7041_s2 + $0x18] sm:$0x30] %v2838_v25 }
 0x828   :  { %v6767_v41 = vpop.f32.mrb[14].mxu1 }
 0x829   :  { %v6771_v45 = vpop.f32.mrb[15].mxu1 }
 0x82a   :  { %v6769_v38 = vpop.f32.mrb[14].mxu0  ;;  %v4358_v43 = vpack.i.bf16 %v6771_v45, %v6767_v41 }
 0x82b   :  { %3370 = vrot.lane.b32.xlu0 %v6769_v38, %s4415_s13  ;;  %v6775_v23 = vpop.f32.mrb[15].mxu0 }
 0x82c   :  { %v4353_v22 = vpack.i.bf16 %v6775_v23, %v6769_v38  ;;  %4359 = vrot.lane.b32.xlu1 %v4358_v43, %s4416_s0 }
 0x82f   :  { %4354 = vrot.lane.b32.xlu0 %v4353_v22, %s4416_s0 }
 0x830   :  { %3372 = vrot.lane.b32.xlu1 %v6775_v23, %s4415_s13 }
 0x833   :  { %3374 = vrot.lane.b32.xlu0 %v6767_v41, %s4415_s13 }
 0x834   :  { %3376 = vrot.lane.b32.xlu1 %v6771_v45, %s4415_s13 }
 0x837   :  { %4364 = vrot.lane.b32.xlu0 %v4353_v22, %s4417_s14 }
 0x838   :  { %4369 = vrot.lane.b32.xlu1 %v4358_v43, %s4417_s14 }
 0x83b   :  { %4374 = vrot.lane.b32.xlu0 %v4353_v22, %s4418_s15 }
 0x83c   :  { %4379 = vrot.lane.b32.xlu1 %v4358_v43, %s4418_s15 }
 0x89d   :  { %v3371_v11 = vpop.permute.xlu0 %3370 }
 0x89e   :  { %v4360_v32 = vpop.permute.xlu1 %4359 }
 0x89f   :  { %v4362_v44 = vunpack.i.h.bf16 %v4360_v32  ;;  %v4361_v33 = vunpack.i.l.bf16 %v4360_v32 }
 0x8a1   :  { %v4355_v1 = vpop.permute.xlu0 %4354  ;;  %v3362_v51 = vsel %vm7683_vm8, %v4361_v33, %v4362_v44  ;;  %vm7705_vm8 = vnez %v7175_v14 }
 0x8a2   :  { %v4357_v55 = vunpack.i.h.bf16 %v4355_v1  ;;  %v4356_v54 = vunpack.i.l.bf16 %v4355_v1  ;;  %v3373_v3 = vpop.permute.xlu1 %3372  ;;  %v6798_v26 = vsel %vm4506_vm6, %v6771_v45, %v3362_v51  ;;  %vm7691_vm6 = vcmp.lt.s32.totalorder %v4471_v7, 127 }
 0x8a3   :  { %v3380_v57 = vsel %vm7691_vm6, %v3371_v11, %v3373_v3  ;;  %vm7692_vm2 = vmmov %vm7691_vm6 }
 0x8a4   :  { %v3363_v37 = vsel %vm7685_vm12, %v4357_v55, %v4361_v33  ;;  %v3364_v40 = vsel %vm7686_vm9, %v4356_v54, %v4357_v55  ;;  %v3365_v19 = vsel %vm7687_vm0, %v4362_v44, %v4356_v54  ;;  %v6832_v60 = vsel %vm7253_vm15, %v6769_v38, %v3380_v57 }
 0x8a5   :  { %v6809_v20 = vsel %vm4502_vm5, %v6767_v41, %v3363_v37  ;;  %v6814_v56 = vsel %vm4494_vm3, %v6769_v38, %v3365_v19  ;;  %v6819_v58 = vsel %vm4498_vm4, %v6775_v23, %v3364_v40  ;;  %v3375_v29 = vpop.permute.xlu0 %3374  ;;  %vm7695_vm3 = vmmov %vm7692_vm2  ;;  %vm7698_vm5 = vnez %v7697_v18 }
 0x8a6   :  { %v3379_v8 = vsel %vm7692_vm2, %v3373_v3, %v3375_v29  ;;  %v3377_v28 = vpop.permute.xlu1 %3376  ;;  %v4388_v2 = vpack.i.bf16 %v6798_v26, %v6809_v20  ;;  %v4383_v0 = vpack.i.bf16 %v6819_v58, %v6814_v56  ;;  %vm7696_vm4 = vmmov %vm7692_vm2  ;;  %vm7700_vm15 = vnez %v7699_v36 }
 0x8a7   :  { %v6837_v6 = vsel %vm7254_vm10, %v6775_v23, %v3379_v8  ;;  %v3378_v50 = vsel %vm7695_vm3, %v3375_v29, %v3377_v28  ;;  %v3381_v13 = vsel %vm7696_vm4, %v3377_v28, %v3371_v11  ;;  %v3522_v49 = vrot.slane %v6832_v60, 6 }
 0x8a8   :  { %v6846_v62 = vsel %vm7698_vm5, %v6767_v41, %v3378_v50  ;;  %v6851_v63 = vsel %vm7700_vm15, %v6771_v45, %v3381_v13  ;;  %4389 = vrot.lane.b32.xlu1 %v4388_v2, %s4418_s15  ;;  %4384 = vrot.lane.b32.xlu0 %v4383_v0, %s4418_s15  ;;  %v4393_v47 = vpack.i.bf16 %v6837_v6, %v6832_v60  ;;  %v3523_v27 = vrot.slane %v6837_v6, 6 }
 0x8a9   :  { %v4398_v31 = vpack.i.bf16 %v6851_v63, %v6846_v62  ;;  %v4365_v12 = vpop.permute.xlu0 %4364  ;;  %vm7701_vm10 = vcmp.lt.s32.totalorder %v4471_v7, 16  ;;  %v3512_v17 = vrot.slane %v6809_v20, 2  ;;  %v3524_v48 = vrot.slane %v6846_v62, 6 }
 0x8aa   :  { %v4370_v4 = vpop.permute.xlu1 %4369  ;;  %v4367_v61 = vunpack.i.h.bf16 %v4365_v12  ;;  %v4366_v34 = vunpack.i.l.bf16 %v4365_v12  ;;  %vm7702_vm7 = vmmov %vm7701_vm10  ;;  %v3510_v22 = vrot.slane %v6814_v56, 2  ;;  %v3525_v11 = vrot.slane %v6851_v63, 6 }
 0x8ab   :  { %v4372_v42 = vunpack.i.h.bf16 %v4370_v4  ;;  %v4371_v9 = vunpack.i.l.bf16 %v4370_v4  ;;  %vm7703_vm13 = vmmov %vm7702_vm7  ;;  %vm7706_vm12 = vnez %v7179_v15  ;;  %vm7707_vm9 = vcmask 1041408  }
 0x8ac   :  { %4394 = vrot.lane.b32.xlu0 %v4393_v47, %s4417_s14  ;;  %4399 = vrot.lane.b32.xlu1 %v4398_v31, %s4417_s14  ;;  %v6883_v32 = vsel %vm7703_vm13, %v4366_v34, %v4367_v61  ;;  %vm7704_vm11 = vmmov %vm7702_vm7  ;;  %v3566_v54 = vsel %vm7707_vm9, %v6769_v38, %v3522_v49  ;;  %v3511_v3 = vrot.slane %v6819_v58, 2  ;;  %v3513_v37 = vrot.slane %v6798_v26, 2 }
 0x8ad   :  { %v3411_v39 = vsel %vm7701_vm10, %v4367_v61, %v4371_v9  ;;  %v3413_v24 = vsel %vm7702_vm7, %v4372_v42, %v4366_v34  ;;  %v4375_v21 = vpop.permute.xlu0 %4374  ;;  %v6887_v44 = vsel %vm7704_vm11, %v4371_v9, %v4372_v42  ;;  %vm7708_vm0 = vmmov %vm7707_vm9  ;;  %v3487_v19 = vrot.slane %v6883_v32, 6 }
 0x8ae   :  { %v4380_v59 = vpop.permute.xlu1 %4379  ;;  %v3414_v33 = vsel %vm7705_vm8, %v6769_v38, %v3413_v24  ;;  %v3416_v1 = vsel %vm7706_vm12, %v6767_v41, %v3411_v39  ;;  %v4377_v51 = vunpack.i.h.bf16 %v4375_v21  ;;  %v4376_v55 = vunpack.i.l.bf16 %v4375_v21  ;;  %vm7709_vm6 = vmmov %vm7708_vm0 }
 0x8af   :  { %v4382_v25 = vunpack.i.h.bf16 %v4380_v59  ;;  %v4381_v43 = vunpack.i.l.bf16 %v4380_v59  ;;  %v3567_v46 = vsel %vm7708_vm0, %v6775_v23, %v3523_v27  ;;  %v3568_v40 = vsel %vm7709_vm6, %v6767_v41, %v3524_v48  ;;  %vm7712_vm4 = vmmov %vm7708_vm0 }
 0x8b0   :  { %4404 = vrot.lane.b32.xlu0 %v4383_v0, %s4417_s14  ;;  %4409 = vrot.lane.b32.xlu1 %v4388_v2, %s4417_s14  ;;  %vm7710_vm2 = vcmp.lt.s32.totalorder %v4471_v7, 112  ;;  %v6908_v5 = vrot.slane %v3414_v33, 6  ;;  %v6910_v38 = vrot.slane %v3416_v1, 6  ;;  %v3489_v57 = vrot.slane %v6887_v44, 6 }
 0x8b1   :  { %v3459_v52 = vsel %vm7710_vm2, %v4377_v51, %v4381_v43  ;;  %vm7711_vm3 = vmmov %vm7710_vm2  ;;  %v3569_v28 = vsel %vm7712_vm4, %v6771_v45, %v3525_v11  ;;  %vm7719_vm9 = vcmask 1043456   ;;  %vm7721_vm6 = vcmp.lt.s32.totalorder %v4471_v7, 16 }
 0x8b2   :  { %v3461_v35 = vsel %vm7711_vm3, %v4382_v25, %v4376_v55  ;;  %vm7713_vm5 = vmmov %vm7710_vm2  ;;  %v3463_v13 = vsel %vm4620_vm1, %v6775_v23, %v3459_v52 }
 0x8b3   :  { %v3460_v30 = vsel %vm7713_vm5, %v4376_v55, %v4377_v51  ;;  %vm7714_vm15 = vmmov %vm7710_vm2  ;;  %v3465_v18 = vsel %vm4612_vm14, %v6771_v45, %v3461_v35 }
 0x8b4   :  { %3466 = vrot.lane.b32.xlu0 %v6832_v60, %s4418_s15  ;;  %3468 = vrot.lane.b32.xlu1 %v6837_v6, %s4418_s15  ;;  %v6919_v50 = vsel %vm7714_vm15, %v4381_v43, %v4382_v25  ;;  %vm7715_vm10 = vmmov %vm7710_vm2  ;;  %v3546_v34 = vrot.slane %v3460_v30, 2  ;;  %v3547_v25 = vrot.slane %v3463_v13, 2  ;;  %v3549_v43 = vrot.slane %v3465_v18, 2 }
 0x8b5   :  { %vm7716_vm7 = vmmov %vm7710_vm2  ;;  %v3548_v39 = vrot.slane %v6919_v50, 2 }
 0x8b6   :  { %vm7717_vm13 = vmmov %vm7710_vm2 }
 0x8b7   :  { %vm7718_vm11 = vmmov %vm7710_vm2 }
 0x8b8   :  { %3470 = vrot.lane.b32.xlu0 %v6846_v62, %s4418_s15  ;;  %3472 = vrot.lane.b32.xlu1 %v6851_v63, %s4418_s15  ;;  %vm7720_vm0 = vmmov %vm7719_vm9 }
 0x8b9   :  { %vm7722_vm2 = vmmov %vm7721_vm6 }
 0x8ba   :  { %vm7723_vm3 = vmmov %vm7722_vm2 }
 0x8bb   :  { %vm7724_vm4 = vmmov %vm7722_vm2 }
 0x8bc   :  { %vm7725_vm5 = vmmov %vm7720_vm0 }
 0x8bd   :  { %vm7726_vm15 = vmmov %vm7720_vm0 }
 0x91a   :  { %v4390_v29 = vpop.permute.xlu1 %4389  ;;  %v4385_v8 = vpop.permute.xlu0 %4384 }
 0x91b   :  { %v4392_v41 = vunpack.i.h.bf16 %v4390_v29  ;;  %v4391_v2 = vunpack.i.l.bf16 %v4390_v29  ;;  %v4387_v0 = vunpack.i.h.bf16 %v4385_v8  ;;  %v4386_v53 = vunpack.i.l.bf16 %v4385_v8 }
 0x91d   :  { %v3442_v36 = vsel %vm7715_vm10, %v4391_v2, %v4392_v41  ;;  %v3443_v47 = vsel %vm7716_vm7, %v4387_v0, %v4391_v2  ;;  %v3444_v31 = vsel %vm7717_vm13, %v4386_v53, %v4387_v0  ;;  %v3445_v4 = vsel %vm7718_vm11, %v4392_v41, %v4386_v53  ;;  %vm7728_vm7 = vmmov %vm7722_vm2 }
 0x91e   :  { %v3536_v12 = vrot.slane %v3442_v36, 4  ;;  %v3447_v23 = vsel %vm4620_vm1, %v6819_v58, %v3443_v47  ;;  %v3449_v45 = vsel %vm4612_vm14, %v6798_v26, %v3445_v4  ;;  %v3534_v42 = vrot.slane %v3444_v31, 4  ;;  %v4395_v9 = vpop.permute.xlu0 %4394  ;;  %v4400_v61 = vpop.permute.xlu1 %4399  ;;  %vm7729_vm13 = vmmov %vm7722_vm2 }
 0x91f   :  { %v3535_v59 = vrot.slane %v3447_v23, 4  ;;  %v4397_v49 = vunpack.i.h.bf16 %v4395_v9  ;;  %v4396_v27 = vunpack.i.l.bf16 %v4395_v9  ;;  %v3537_v24 = vrot.slane %v3449_v45, 4 }
 0x920   :  { %v4402_v21 = vunpack.i.h.bf16 %v4400_v61  ;;  %v4401_v48 = vunpack.i.l.bf16 %v4400_v61  ;;  %v3570_v11 = vsel %vm7719_vm9, %v3566_v54, %v3534_v42  ;;  %v3572_v33 = vsel %vm7720_vm0, %v3568_v40, %v3536_v12  ;;  %vm7732_vm0 = vmmov %vm7722_vm2 }
 0x921   :  { %v3428_v1 = vsel %vm7721_vm6, %v4396_v27, %v4397_v49  ;;  %v3571_v41 = vsel %vm7725_vm5, %v3567_v46, %v3535_v59  ;;  %v3573_v53 = vsel %vm7726_vm15, %v3569_v28, %v3537_v24  ;;  %vm7727_vm10 = vcmask 1045504   ;;  %vm7733_vm6 = vmmov %vm7732_vm0 }
 0x922   :  { %v3426_v51 = vsel %vm7722_vm2, %v4401_v48, %v4402_v21  ;;  %v3427_v55 = vsel %vm7723_vm3, %v4397_v49, %v4401_v48  ;;  %v3429_v52 = vsel %vm7724_vm4, %v4402_v21, %v4396_v27  ;;  %v4405_v35 = vpop.permute.xlu0 %4404  ;;  %v4410_v29 = vpop.permute.xlu1 %4409  ;;  %v3574_v30 = vsel %vm7727_vm10, %v3570_v11, %v3546_v34  ;;  %vm7730_vm11 = vmmov %vm7727_vm10 }
 0x923   :  { %v3430_v54 = vsel %vm7705_vm8, %v6832_v60, %v3429_v52  ;;  %v3432_v40 = vsel %vm7706_vm12, %v6846_v62, %v3427_v55  ;;  %v4407_v8 = vunpack.i.h.bf16 %v4405_v35  ;;  %v4406_v2 = vunpack.i.l.bf16 %v4405_v35  ;;  %vm7736_vm4 = vmmov %vm7727_vm10 }
 0x924   :  { %v4412_v0 = vunpack.i.h.bf16 %v4410_v29  ;;  %v3499_v50 = vrot.slane %v3428_v1, 4  ;;  %v3498_v13 = vrot.slane %v3430_v54, 4  ;;  %v3501_v18 = vrot.slane %v3426_v51, 4  ;;  %vm7738_vm10 = vmmov %vm7726_vm15 }
 0x925   :  { %v4411_v36 = vunpack.i.l.bf16 %v4410_v29  ;;  %v3500_v47 = vrot.slane %v3432_v40, 4  ;;  %v3396_v60 = vsel %vm7728_vm7, %v4406_v2, %v4407_v8  ;;  %v3575_v46 = vsel %vm7730_vm11, %v3571_v41, %v3547_v25  ;;  %vm7741_vm7 = vmmov %vm7736_vm4 }
 0x926   :  { %v3397_v62 = vsel %vm7729_vm13, %v4412_v0, %v4406_v2  ;;  %v3467_v31 = vpop.permute.xlu0 %3466  ;;  %v3469_v4 = vpop.permute.xlu1 %3468  ;;  %vm7731_vm9 = vcmask 1041408   ;;  %vm7742_vm13 = vmmov %vm7736_vm4 }
 0x927   :  { %v3555_v28 = vsel %vm7731_vm9, %v3396_v60, %v3487_v19  ;;  %v3394_v12 = vsel %vm7732_vm0, %v4411_v36, %v4412_v0  ;;  %v3395_v23 = vsel %vm7733_vm6, %v4407_v8, %v4411_v36  ;;  %v3398_v45 = vsel %vm7705_vm8, %v6814_v56, %v3397_v62  ;;  %vm7734_vm2 = vmmov %vm7731_vm9 }
 0x928   :  { %v3400_v42 = vsel %vm7706_vm12, %v6809_v20, %v3395_v23  ;;  %v3554_v9 = vsel %vm7734_vm2, %v3398_v45, %v6908_v5  ;;  %vm7735_vm3 = vmmov %vm7734_vm2  ;;  %v3577_v19 = vsel %vm7736_vm4, %v3573_v53, %v3549_v43  ;;  %v3559_v34 = vsel %vm7726_vm15, %v3555_v28, %v3499_v50  ;;  %v3353_v20 = vld [vmem:[%s7040_s1 + $0x1a] sm:$0x3] }
 0x929   :  { %v3557_v32 = vsel %vm7735_vm3, %v3394_v12, %v3489_v57  ;;  %vm7737_vm5 = vmmov %vm7734_vm2  ;;  %vm7744_vm9 = vcmp.lt.s32.totalorder %v4471_v7, 112 }
 0x92a   :  { %v3556_v61 = vsel %vm7737_vm5, %v3400_v42, %v6910_v38  ;;  %v3561_v14 = vsel %vm7738_vm10, %v3557_v32, %v3501_v18  ;;  %vm7739_vm8 = vmmov %vm7738_vm10  ;;  %v3471_v15 = vpop.permute.xlu0 %3470  ;;  %v3473_v49 = vpop.permute.xlu1 %3472  ;;  %vm7753_vm10 = vcmask 146432  }
 0x92b   :  { %v3558_v59 = vsel %vm7739_vm8, %v3554_v9, %v3498_v13  ;;  %vm7740_vm12 = vmmov %vm7736_vm4  ;;  %v3565_v44 = vsel %vm7741_vm7, %v3561_v14, %v3513_v37  ;;  %v3475_v27 = vsel %vm7744_vm9, %v3469_v4, %v3471_v15 }
 0x92c   :  { %v3563_v5 = vsel %vm7740_vm12, %v3559_v34, %v3511_v3  ;;  %v3562_v38 = vsel %vm7742_vm13, %v3558_v59, %v3510_v22  ;;  %vm7743_vm11 = vmmov %vm7739_vm8  ;;  %v3924_v3 = vpack.c.bf16 %v3577_v19, %v3565_v44  ;;  %v3479_v56 = vsel %vm4620_vm1, %v6837_v6, %v3475_v27 }
 0x92d   :  { %v3560_v57 = vsel %vm7743_vm11, %v3556_v61, %v3500_v47  ;;  %vm7745_vm0 = vmmov %vm7744_vm9  ;;  %v3920_v21 = vpack.c.bf16 %v3575_v46, %v3563_v5  ;;  %v3922_v48 = vpack.c.bf16 %v3574_v30, %v3562_v38 }
 0x92e   :  { %v3477_v24 = vsel %vm7745_vm0, %v3473_v49, %v3467_v31  ;;  %vm7746_vm6 = vmmov %vm7736_vm4  ;;  %3925 = vmatprep.subr.bf16.mxu1 %v3924_v3 }
 0x92f   :  { %v3576_v58 = vsel %vm7746_vm6, %v3572_v33, %v3548_v39  ;;  %vm7747_vm2 = vmmov %vm7736_vm4  ;;  %3921 = vmatprep.subr.bf16.mxu0 %v3920_v21  ;;  %v3481_v37 = vsel %vm4612_vm14, %v6851_v63, %v3477_v24 }
 0x930   :  { %v3564_v26 = vsel %vm7747_vm2, %v3560_v57, %v3512_v17  ;;  %3923 = vmatpush1.bf16.msra.mxu0 %v3922_v48  ;;  %vm7748_vm4 = vmmov %vm7735_vm3 }
 0x931   :  { %v3926_v22 = vpack.c.bf16 %v3576_v58, %v3564_v26  ;;  %3848 = vmatprep.subr.msk.mxu0 %vm7735_vm3, %v3479_v56  ;;  %vm7749_vm5 = vmmov %vm7745_vm0 }
 0x932   :  { %v3476_v16 = vsel %vm7749_vm5, %v3467_v31, %v3469_v4  ;;  %vm7750_vm1 = vmmov %vm7745_vm0 }
 0x933   :  { %3927 = vmatpush1.bf16.msra.mxu1 %v3926_v22  ;;  %v3474_v6 = vsel %vm7750_vm1, %v3471_v15, %v3473_v49  ;;  %vm7751_vm15 = vmmov %vm7735_vm3 }
 0x934   :  { %3851 = vmatprep.subr.msk.mxu1 %vm7748_vm4, %v3481_v37  ;;  %3849 = vmatpush1.msk.msra.mxu0 %vm7751_vm15, %v3476_v16  ;;  %vm7752_vm14 = vmmov %vm7735_vm3 }
 0x935   :  { %3850 = vmatmul.mubr.msk.f32.vlgmr.msra.gmra.mrb[16].mxu0 %vm7753_vm10, %v3353_v20  ;;  %vm7754_vm8 = vmmov %vm7753_vm10 }
 0x937   :  { %3852 = vmatpush1.msk.msra.mxu1 %vm7752_vm14, %v3474_v6 }
 0x938   :  { %3853 = vmatmul.mubr.msk.f32.vlgmr.msra.gmra.mrb[16].mxu1 %vm7754_vm8, %v3353_v20 }
 0xa08   :  { %v3659_v10 = vpop.f32.mrb[16].mxu0 }
 0xa09   :  { %v3737_v63 = vrot.slane %v3659_v10, 2  ;;  %v3661_v39 = vpop.f32.mrb[17].mxu0 }
 0xa0a   :  { %v3738_v43 = vrot.slane %v3661_v39, 2 }
 0xa0b   :  { %v3730_v17 = vpop.f32.mrb[16].mxu1  ;;  %3741 = vst [vmem:[%s7041_s2 + $0x10] sm:$0xc0] %v3737_v63 }
 0xa0c   :  { %v3745_v25 = vrot.slane %v3730_v17, 2  ;;  %v3732_v11 = vpop.f32.mrb[17].mxu1  ;;  %3742 = vst [vmem:[%s7041_s2 + $0x18] sm:$0xc0] %v3738_v43 }
 0xa0d   :  { %v3746_v7 = vrot.slane %v3732_v11, 2 }
 0xa0e   :  { %3854 = vst [vmem:[%s7041_s2 + $0x30] sm:$0xc0] %v3745_v25 }
 0xa0f   :  { %3855 = vst [vmem:[%s7041_s2 + $0x38] sm:$0xc0] %v3746_v7 }

</bundles_post_ra>
